<compile_context>
chip_gen: v7x
topology: tpu7x:2x2x1
jax: 0.10.0
libtpu: 0.0.40
codegen_flags: <defaults>
</compile_context>

<pallas_src>
import functools

import jax
import jax.numpy as jnp
from jax.experimental import pallas as pl
from jax.experimental.pallas import tpu as pltpu  # noqa: F401  (kept for TPU-specific tuning hooks)


# --------------------------- fused RNN forward kernel ---------------------------
def fused_rnn_kernel(*refs, n_layers, seq_len, batch, hidden_dim, output_dim):
    # ---- unpack refs: inputs..., outputs... ----
    x_ref = refs[0]
    layer_refs = []
    idx = 1
    for _ in range(n_layers):
        layer_refs.append((refs[idx], refs[idx + 1], refs[idx + 2]))  # w_ih, w_hh, bias
        idx += 3
    h0_ref, c0_ref, fcw_ref, fcb_ref = refs[idx:idx + 4]
    out_ref, hn_ref, cn_ref = refs[idx + 4:idx + 7]

    S, B = seq_len, batch

    layer_in = x_ref[...]                                   # (S*B, E) time-major rows
    h_seq = None
    for layer in range(n_layers):
        wih_ref, whh_ref, b_ref = layer_refs[layer]

        # Hoisted input projection: one tall matmul per gate for ALL timesteps.
        proj = [jnp.dot(layer_in, wih_ref[g], preferred_element_type=jnp.float32)
                + b_ref[g]
                for g in range(4)]                          # each (S*B, H)
        whh = [whh_ref[g] for g in range(4)]                # hoist weight loads

        h = h0_ref[layer].astype(jnp.float32)               # (B, H)
        c = c0_ref[layer].astype(jnp.float32)               # (B, H)

        h_seq = []
        for t in range(S):                                  # fully unrolled (S static)
            lo = t * B
            pre = [proj[g][lo:lo + B, :]
                   + jnp.dot(h, whh[g], preferred_element_type=jnp.float32)
                   for g in range(4)]                       # each (B, H)
            i_g = jax.nn.sigmoid(pre[0])
            f_g = jax.nn.sigmoid(pre[1])
            g_g = jnp.tanh(pre[2])
            o_g = jax.nn.sigmoid(pre[3])
            c = f_g * c + i_g * g_g
            h = o_g * jnp.tanh(c)
            h_seq.append(h)

        hn_ref[layer] = h.astype(hn_ref.dtype)
        cn_ref[layer] = c.astype(cn_ref.dtype)

        if layer + 1 < n_layers:
            # TODO(synk): PyTorch applies inter-layer dropout only in training
            # mode; inference semantics used here (no dropout).
            layer_in = jnp.concatenate(h_seq, axis=0)       # (S*B, H) for next layer

    # fc1 applied to every timestep then out[:, -1]  ==  fc1(last timestep h).
    h_last = h_seq[-1]                                      # (B, H)
    out_ref[...] = (jnp.dot(h_last, fcw_ref[...], preferred_element_type=jnp.float32)
                    + fcb_ref[...]).astype(out_ref.dtype)


def rnn_forward(params, nn_input, hidden):
    """nn_input: (B, S) int32; hidden: (h0, c0) each (n_layers, B, H)."""
    h0_all, c0_all = hidden
    B, S = nn_input.shape
    E = params["embed"].shape[1]
    L = len(params["lstm"])
    H = h0_all.shape[-1]
    O = params["fc_w_t"].shape[-1]

    # Embedding lookup (gather) — glue in plain JAX; flatten time-major.
    x = jnp.take(params["embed"], nn_input, axis=0)          # (B, S, E)
    x_tm = jnp.transpose(x, (1, 0, 2)).reshape(S * B, E)     # (S*B, E)

    flat_inputs = [x_tm]
    for lp in params["lstm"]:
        flat_inputs += [lp["w_ih_t"], lp["w_hh_t"], lp["bias"]]
    flat_inputs += [h0_all, c0_all, params["fc_w_t"], params["fc_b"].reshape(1, O)]

    kernel = functools.partial(fused_rnn_kernel, n_layers=L, seq_len=S,
                               batch=B, hidden_dim=H, output_dim=O)
    out, h_n, c_n = pl.pallas_call(
        kernel,
        out_shape=(
            jax.ShapeDtypeStruct((B, O), jnp.float32),
            jax.ShapeDtypeStruct((L, B, H), jnp.float32),
            jax.ShapeDtypeStruct((L, B, H), jnp.float32),
        ),
    )(*flat_inputs)
    return out, (h_n, c_n)


# ----------------------------- pure-JAX reference ------------------------------
def rnn_reference(params, nn_input, hidden):
    h0_all, c0_all = hidden
    x = jnp.take(params["embed"], nn_input, axis=0)
    x_tm = jnp.transpose(x, (1, 0, 2))                       # (S, B, E)
    h_ns, c_ns = [], []
    layer_in = x_tm
    for layer, lp in enumerate(params["lstm"]):

        def step(carry, x_t, lp=lp):
            h, c = carry
            pre = [x_t @ lp["w_ih_t"][g] + h @ lp["w_hh_t"][g] + lp["bias"][g]
                   for g in range(4)]
            i = jax.nn.sigmoid(pre[0])
            f = jax.nn.sigmoid(pre[1])
            g = jnp.tanh(pre[2])
            o = jax.nn.sigmoid(pre[3])
            c = f * c + i * g
            h = o * jnp.tanh(c)
            return (h, c), h

        (h_n, c_n), h_seq = jax.lax.scan(step, (h0_all[layer], c0_all[layer]),
                                         layer_in)
        h_ns.append(h_n)
        c_ns.append(c_n)
        layer_in = h_seq
    out = layer_in[-1] @ params["fc_w_t"] + params["fc_b"]
    return out, (jnp.stack(h_ns, axis=0), jnp.stack(c_ns, axis=0))


# ------------------------------------ main -------------------------------------
def init_params(key, vocab_size, output_size, embedding_dim, hidden_dim, n_layers):
    keys = jax.random.split(key, 1 + 4 * n_layers + 2)
    ki = iter(keys)
    bound = 1.0 / jnp.sqrt(hidden_dim)

    embed = jax.random.normal(next(ki), (vocab_size, embedding_dim), jnp.float32)

    lstm = []
    for layer in range(n_layers):
        in_dim = embedding_dim if layer == 0 else hidden_dim
        w_ih = jax.random.uniform(next(ki), (4 * hidden_dim, in_dim),
                                  jnp.float32, -bound, bound)
        w_hh = jax.random.uniform(next(ki), (4 * hidden_dim, hidden_dim),
                                  jnp.float32, -bound, bound)
        b_ih = jax.random.uniform(next(ki), (4 * hidden_dim,),
                                  jnp.float32, -bound, bound)
        b_hh = jax.random.uniform(next(ki), (4 * hidden_dim,),
                                  jnp.float32, -bound, bound)
        lstm.append({
            # per-gate stacked, PyTorch gate order [i, f, g, o]
            "w_ih_t": jnp.transpose(w_ih.reshape(4, hidden_dim, in_dim),
                                    (0, 2, 1)),              # (4, in_dim, H)
            "w_hh_t": jnp.transpose(w_hh.reshape(4, hidden_dim, hidden_dim),
                                    (0, 2, 1)),              # (4, H, H)
            "bias": (b_ih + b_hh).reshape(4, 1, hidden_dim),  # (4, 1, H)
        })

    fc_w = jax.random.uniform(next(ki), (output_size, hidden_dim),
                              jnp.float32, -bound, bound)
    fc_b = jax.random.uniform(next(ki), (output_size,),
                              jnp.float32, -bound, bound)
    return {"embed": embed, "lstm": lstm, "fc_w_t": fc_w.T, "fc_b": fc_b}


if __name__ == "__main__":
    vocab_size = 50
    output_size = 50
    embedding_dim = 32
    hidden_dim = 32
    n_layers = 2
    batch_size = 2
    seq_length = 8

    key = jax.random.PRNGKey(0)
    pkey, dkey = jax.random.split(key)
    params = init_params(pkey, vocab_size, output_size, embedding_dim,
                         hidden_dim, n_layers)

    nn_input = jax.random.randint(dkey, (batch_size, seq_length), 0, vocab_size,
                                  dtype=jnp.int32)
    hidden = (jnp.zeros((n_layers, batch_size, hidden_dim), jnp.float32),
              jnp.zeros((n_layers, batch_size, hidden_dim), jnp.float32))

    fwd = jax.jit(rnn_forward)
    out, (h_n, c_n) = fwd(params, nn_input, hidden)
    jax.block_until_ready((out, h_n, c_n))

    ref_out, (ref_h, ref_c) = rnn_reference(params, nn_input, hidden)
    assert out.shape == (batch_size, output_size)
    assert h_n.shape == (n_layers, batch_size, hidden_dim)
    assert c_n.shape == (n_layers, batch_size, hidden_dim)
    assert jnp.allclose(out, ref_out, atol=1e-4, rtol=1e-4)
    assert jnp.allclose(h_n, ref_h, atol=1e-4, rtol=1e-4)
    assert jnp.allclose(c_n, ref_c, atol=1e-4, rtol=1e-4)

    print("KERNEL_OK")
</pallas_src>

<mosaic_0001>
module attributes {stable_mosaic.version = 11 : i64} {
  func.func @fused_rnn_kernel(%arg0: memref<16x32xf32, #tpu.memory_space<vmem>>, %arg1: memref<4x32x32xf32, #tpu.memory_space<vmem>>, %arg2: memref<4x32x32xf32, #tpu.memory_space<vmem>>, %arg3: memref<4x1x32xf32, #tpu.memory_space<vmem>>, %arg4: memref<4x32x32xf32, #tpu.memory_space<vmem>>, %arg5: memref<4x32x32xf32, #tpu.memory_space<vmem>>, %arg6: memref<4x1x32xf32, #tpu.memory_space<vmem>>, %arg7: memref<2x2x32xf32, #tpu.memory_space<vmem>>, %arg8: memref<2x2x32xf32, #tpu.memory_space<vmem>>, %arg9: memref<32x50xf32, #tpu.memory_space<vmem>>, %arg10: memref<1x50xf32, #tpu.memory_space<vmem>>, %arg11: memref<2x50xf32, #tpu.memory_space<vmem>>, %arg12: memref<2x2x32xf32, #tpu.memory_space<vmem>>, %arg13: memref<2x2x32xf32, #tpu.memory_space<vmem>>) attributes {dimension_semantics = [], scalar_prefetch = 0 : i64, scratch_operands = 0 : i64, tpu.core_type = #tpu.core_type<tc>} {
    %c0 = arith.constant 0 : index
    %c0_0 = arith.constant 0 : index
    %0 = vector.load %arg0[%c0, %c0_0] : memref<16x32xf32, #tpu.memory_space<vmem>>, vector<16x32xf32>
    %c0_1 = arith.constant 0 : index
    %c0_2 = arith.constant 0 : index
    %c0_3 = arith.constant 0 : index
    %1 = vector.load %arg1[%c0_1, %c0_2, %c0_3] : memref<4x32x32xf32, #tpu.memory_space<vmem>>, vector<1x32x32xf32>
    %2 = vector.shape_cast %1 : vector<1x32x32xf32> to vector<32x32xf32>
    %cst = arith.constant dense<0.000000e+00> : vector<16x32xf32>
    %3 = tpu.matmul %0, %2, %cst {dimension_numbers = #tpu.dot_dimension_numbers<[1], [0], [0], [1], [0, 0, 1, 1], [], []>} : vector<16x32xf32>, vector<32x32xf32>, vector<16x32xf32> -> vector<16x32xf32>
    %c0_4 = arith.constant 0 : index
    %c0_5 = arith.constant 0 : index
    %c0_6 = arith.constant 0 : index
    %4 = vector.load %arg3[%c0_4, %c0_5, %c0_6] : memref<4x1x32xf32, #tpu.memory_space<vmem>>, vector<1x1x32xf32>
    %5 = vector.shape_cast %4 : vector<1x1x32xf32> to vector<1x32xf32>
    %6 = vector.broadcast %5 : vector<1x32xf32> to vector<16x32xf32>
    %7 = arith.addf %3, %6 : vector<16x32xf32>
    %c1 = arith.constant 1 : index
    %c0_7 = arith.constant 0 : index
    %c0_8 = arith.constant 0 : index
    %8 = vector.load %arg1[%c1, %c0_7, %c0_8] : memref<4x32x32xf32, #tpu.memory_space<vmem>>, vector<1x32x32xf32>
    %9 = vector.shape_cast %8 : vector<1x32x32xf32> to vector<32x32xf32>
    %cst_9 = arith.constant dense<0.000000e+00> : vector<16x32xf32>
    %10 = tpu.matmul %0, %9, %cst_9 {dimension_numbers = #tpu.dot_dimension_numbers<[1], [0], [0], [1], [0, 0, 1, 1], [], []>} : vector<16x32xf32>, vector<32x32xf32>, vector<16x32xf32> -> vector<16x32xf32>
    %c1_10 = arith.constant 1 : index
    %c0_11 = arith.constant 0 : index
    %c0_12 = arith.constant 0 : index
    %11 = vector.load %arg3[%c1_10, %c0_11, %c0_12] : memref<4x1x32xf32, #tpu.memory_space<vmem>>, vector<1x1x32xf32>
    %12 = vector.shape_cast %11 : vector<1x1x32xf32> to vector<1x32xf32>
    %13 = vector.broadcast %12 : vector<1x32xf32> to vector<16x32xf32>
    %14 = arith.addf %10, %13 : vector<16x32xf32>
    %c2 = arith.constant 2 : index
    %c0_13 = arith.constant 0 : index
    %c0_14 = arith.constant 0 : index
    %15 = vector.load %arg1[%c2, %c0_13, %c0_14] : memref<4x32x32xf32, #tpu.memory_space<vmem>>, vector<1x32x32xf32>
    %16 = vector.shape_cast %15 : vector<1x32x32xf32> to vector<32x32xf32>
    %cst_15 = arith.constant dense<0.000000e+00> : vector<16x32xf32>
    %17 = tpu.matmul %0, %16, %cst_15 {dimension_numbers = #tpu.dot_dimension_numbers<[1], [0], [0], [1], [0, 0, 1, 1], [], []>} : vector<16x32xf32>, vector<32x32xf32>, vector<16x32xf32> -> vector<16x32xf32>
    %c2_16 = arith.constant 2 : index
    %c0_17 = arith.constant 0 : index
    %c0_18 = arith.constant 0 : index
    %18 = vector.load %arg3[%c2_16, %c0_17, %c0_18] : memref<4x1x32xf32, #tpu.memory_space<vmem>>, vector<1x1x32xf32>
    %19 = vector.shape_cast %18 : vector<1x1x32xf32> to vector<1x32xf32>
    %20 = vector.broadcast %19 : vector<1x32xf32> to vector<16x32xf32>
    %21 = arith.addf %17, %20 : vector<16x32xf32>
    %c3 = arith.constant 3 : index
    %c0_19 = arith.constant 0 : index
    %c0_20 = arith.constant 0 : index
    %22 = vector.load %arg1[%c3, %c0_19, %c0_20] : memref<4x32x32xf32, #tpu.memory_space<vmem>>, vector<1x32x32xf32>
    %23 = vector.shape_cast %22 : vector<1x32x32xf32> to vector<32x32xf32>
    %cst_21 = arith.constant dense<0.000000e+00> : vector<16x32xf32>
    %24 = tpu.matmul %0, %23, %cst_21 {dimension_numbers = #tpu.dot_dimension_numbers<[1], [0], [0], [1], [0, 0, 1, 1], [], []>} : vector<16x32xf32>, vector<32x32xf32>, vector<16x32xf32> -> vector<16x32xf32>
    %c3_22 = arith.constant 3 : index
    %c0_23 = arith.constant 0 : index
    %c0_24 = arith.constant 0 : index
    %25 = vector.load %arg3[%c3_22, %c0_23, %c0_24] : memref<4x1x32xf32, #tpu.memory_space<vmem>>, vector<1x1x32xf32>
    %26 = vector.shape_cast %25 : vector<1x1x32xf32> to vector<1x32xf32>
    %27 = vector.broadcast %26 : vector<1x32xf32> to vector<16x32xf32>
    %28 = arith.addf %24, %27 : vector<16x32xf32>
    %c0_25 = arith.constant 0 : index
    %c0_26 = arith.constant 0 : index
    %c0_27 = arith.constant 0 : index
    %29 = vector.load %arg2[%c0_25, %c0_26, %c0_27] : memref<4x32x32xf32, #tpu.memory_space<vmem>>, vector<1x32x32xf32>
    %30 = vector.shape_cast %29 : vector<1x32x32xf32> to vector<32x32xf32>
    %c1_28 = arith.constant 1 : index
    %c0_29 = arith.constant 0 : index
    %c0_30 = arith.constant 0 : index
    %31 = vector.load %arg2[%c1_28, %c0_29, %c0_30] : memref<4x32x32xf32, #tpu.memory_space<vmem>>, vector<1x32x32xf32>
    %32 = vector.shape_cast %31 : vector<1x32x32xf32> to vector<32x32xf32>
    %c2_31 = arith.constant 2 : index
    %c0_32 = arith.constant 0 : index
    %c0_33 = arith.constant 0 : index
    %33 = vector.load %arg2[%c2_31, %c0_32, %c0_33] : memref<4x32x32xf32, #tpu.memory_space<vmem>>, vector<1x32x32xf32>
    %34 = vector.shape_cast %33 : vector<1x32x32xf32> to vector<32x32xf32>
    %c3_34 = arith.constant 3 : index
    %c0_35 = arith.constant 0 : index
    %c0_36 = arith.constant 0 : index
    %35 = vector.load %arg2[%c3_34, %c0_35, %c0_36] : memref<4x32x32xf32, #tpu.memory_space<vmem>>, vector<1x32x32xf32>
    %36 = vector.shape_cast %35 : vector<1x32x32xf32> to vector<32x32xf32>
    %c0_37 = arith.constant 0 : index
    %c0_38 = arith.constant 0 : index
    %c0_39 = arith.constant 0 : index
    %37 = vector.load %arg7[%c0_37, %c0_38, %c0_39] : memref<2x2x32xf32, #tpu.memory_space<vmem>>, vector<1x2x32xf32>
    %38 = vector.shape_cast %37 : vector<1x2x32xf32> to vector<2x32xf32>
    %c0_40 = arith.constant 0 : index
    %c0_41 = arith.constant 0 : index
    %c0_42 = arith.constant 0 : index
    %39 = vector.load %arg8[%c0_40, %c0_41, %c0_42] : memref<2x2x32xf32, #tpu.memory_space<vmem>>, vector<1x2x32xf32>
    %40 = vector.shape_cast %39 : vector<1x2x32xf32> to vector<2x32xf32>
    %41 = vector.extract_strided_slice %7 {offsets = [0, 0], sizes = [2, 32], strides = [1, 1]} : vector<16x32xf32> to vector<2x32xf32>
    %cst_43 = arith.constant dense<0.000000e+00> : vector<2x32xf32>
    %42 = tpu.matmul %38, %30, %cst_43 {dimension_numbers = #tpu.dot_dimension_numbers<[1], [0], [0], [1], [0, 0, 1, 1], [], []>} : vector<2x32xf32>, vector<32x32xf32>, vector<2x32xf32> -> vector<2x32xf32>
    %43 = arith.addf %41, %42 : vector<2x32xf32>
    %44 = vector.extract_strided_slice %14 {offsets = [0, 0], sizes = [2, 32], strides = [1, 1]} : vector<16x32xf32> to vector<2x32xf32>
    %cst_44 = arith.constant dense<0.000000e+00> : vector<2x32xf32>
    %45 = tpu.matmul %38, %32, %cst_44 {dimension_numbers = #tpu.dot_dimension_numbers<[1], [0], [0], [1], [0, 0, 1, 1], [], []>} : vector<2x32xf32>, vector<32x32xf32>, vector<2x32xf32> -> vector<2x32xf32>
    %46 = arith.addf %44, %45 : vector<2x32xf32>
    %47 = vector.extract_strided_slice %21 {offsets = [0, 0], sizes = [2, 32], strides = [1, 1]} : vector<16x32xf32> to vector<2x32xf32>
    %cst_45 = arith.constant dense<0.000000e+00> : vector<2x32xf32>
    %48 = tpu.matmul %38, %34, %cst_45 {dimension_numbers = #tpu.dot_dimension_numbers<[1], [0], [0], [1], [0, 0, 1, 1], [], []>} : vector<2x32xf32>, vector<32x32xf32>, vector<2x32xf32> -> vector<2x32xf32>
    %49 = arith.addf %47, %48 : vector<2x32xf32>
    %50 = vector.extract_strided_slice %28 {offsets = [0, 0], sizes = [2, 32], strides = [1, 1]} : vector<16x32xf32> to vector<2x32xf32>
    %cst_46 = arith.constant dense<0.000000e+00> : vector<2x32xf32>
    %51 = tpu.matmul %38, %36, %cst_46 {dimension_numbers = #tpu.dot_dimension_numbers<[1], [0], [0], [1], [0, 0, 1, 1], [], []>} : vector<2x32xf32>, vector<32x32xf32>, vector<2x32xf32> -> vector<2x32xf32>
    %52 = arith.addf %50, %51 : vector<2x32xf32>
    %53 = arith.negf %43 : vector<2x32xf32>
    %54 = math.exp %53 : vector<2x32xf32>
    %cst_47 = arith.constant 1.000000e+00 : f32
    %55 = vector.broadcast %cst_47 : f32 to vector<2x32xf32>
    %56 = arith.addf %55, %54 : vector<2x32xf32>
    %57 = arith.divf %55, %56 : vector<2x32xf32>
    %58 = arith.negf %46 : vector<2x32xf32>
    %59 = math.exp %58 : vector<2x32xf32>
    %cst_48 = arith.constant 1.000000e+00 : f32
    %60 = vector.broadcast %cst_48 : f32 to vector<2x32xf32>
    %61 = arith.addf %60, %59 : vector<2x32xf32>
    %62 = arith.divf %60, %61 : vector<2x32xf32>
    %63 = math.tanh %49 : vector<2x32xf32>
    %64 = arith.negf %52 : vector<2x32xf32>
    %65 = math.exp %64 : vector<2x32xf32>
    %cst_49 = arith.constant 1.000000e+00 : f32
    %66 = vector.broadcast %cst_49 : f32 to vector<2x32xf32>
    %67 = arith.addf %66, %65 : vector<2x32xf32>
    %68 = arith.divf %66, %67 : vector<2x32xf32>
    %69 = arith.mulf %62, %40 : vector<2x32xf32>
    %70 = arith.mulf %57, %63 : vector<2x32xf32>
    %71 = arith.addf %69, %70 : vector<2x32xf32>
    %72 = math.tanh %71 : vector<2x32xf32>
    %73 = arith.mulf %68, %72 : vector<2x32xf32>
    %74 = vector.extract_strided_slice %7 {offsets = [2, 0], sizes = [2, 32], strides = [1, 1]} : vector<16x32xf32> to vector<2x32xf32>
    %cst_50 = arith.constant dense<0.000000e+00> : vector<2x32xf32>
    %75 = tpu.matmul %73, %30, %cst_50 {dimension_numbers = #tpu.dot_dimension_numbers<[1], [0], [0], [1], [0, 0, 1, 1], [], []>} : vector<2x32xf32>, vector<32x32xf32>, vector<2x32xf32> -> vector<2x32xf32>
    %76 = arith.addf %74, %75 : vector<2x32xf32>
    %77 = vector.extract_strided_slice %14 {offsets = [2, 0], sizes = [2, 32], strides = [1, 1]} : vector<16x32xf32> to vector<2x32xf32>
    %cst_51 = arith.constant dense<0.000000e+00> : vector<2x32xf32>
    %78 = tpu.matmul %73, %32, %cst_51 {dimension_numbers = #tpu.dot_dimension_numbers<[1], [0], [0], [1], [0, 0, 1, 1], [], []>} : vector<2x32xf32>, vector<32x32xf32>, vector<2x32xf32> -> vector<2x32xf32>
    %79 = arith.addf %77, %78 : vector<2x32xf32>
    %80 = vector.extract_strided_slice %21 {offsets = [2, 0], sizes = [2, 32], strides = [1, 1]} : vector<16x32xf32> to vector<2x32xf32>
    %cst_52 = arith.constant dense<0.000000e+00> : vector<2x32xf32>
    %81 = tpu.matmul %73, %34, %cst_52 {dimension_numbers = #tpu.dot_dimension_numbers<[1], [0], [0], [1], [0, 0, 1, 1], [], []>} : vector<2x32xf32>, vector<32x32xf32>, vector<2x32xf32> -> vector<2x32xf32>
    %82 = arith.addf %80, %81 : vector<2x32xf32>
    %83 = vector.extract_strided_slice %28 {offsets = [2, 0], sizes = [2, 32], strides = [1, 1]} : vector<16x32xf32> to vector<2x32xf32>
    %cst_53 = arith.constant dense<0.000000e+00> : vector<2x32xf32>
    %84 = tpu.matmul %73, %36, %cst_53 {dimension_numbers = #tpu.dot_dimension_numbers<[1], [0], [0], [1], [0, 0, 1, 1], [], []>} : vector<2x32xf32>, vector<32x32xf32>, vector<2x32xf32> -> vector<2x32xf32>
    %85 = arith.addf %83, %84 : vector<2x32xf32>
    %86 = arith.negf %76 : vector<2x32xf32>
    %87 = math.exp %86 : vector<2x32xf32>
    %cst_54 = arith.constant 1.000000e+00 : f32
    %88 = vector.broadcast %cst_54 : f32 to vector<2x32xf32>
    %89 = arith.addf %88, %87 : vector<2x32xf32>
    %90 = arith.divf %88, %89 : vector<2x32xf32>
    %91 = arith.negf %79 : vector<2x32xf32>
    %92 = math.exp %91 : vector<2x32xf32>
    %cst_55 = arith.constant 1.000000e+00 : f32
    %93 = vector.broadcast %cst_55 : f32 to vector<2x32xf32>
    %94 = arith.addf %93, %92 : vector<2x32xf32>
    %95 = arith.divf %93, %94 : vector<2x32xf32>
    %96 = math.tanh %82 : vector<2x32xf32>
    %97 = arith.negf %85 : vector<2x32xf32>
    %98 = math.exp %97 : vector<2x32xf32>
    %cst_56 = arith.constant 1.000000e+00 : f32
    %99 = vector.broadcast %cst_56 : f32 to vector<2x32xf32>
    %100 = arith.addf %99, %98 : vector<2x32xf32>
    %101 = arith.divf %99, %100 : vector<2x32xf32>
    %102 = arith.mulf %95, %71 : vector<2x32xf32>
    %103 = arith.mulf %90, %96 : vector<2x32xf32>
    %104 = arith.addf %102, %103 : vector<2x32xf32>
    %105 = math.tanh %104 : vector<2x32xf32>
    %106 = arith.mulf %101, %105 : vector<2x32xf32>
    %107 = vector.extract_strided_slice %7 {offsets = [4, 0], sizes = [2, 32], strides = [1, 1]} : vector<16x32xf32> to vector<2x32xf32>
    %cst_57 = arith.constant dense<0.000000e+00> : vector<2x32xf32>
    %108 = tpu.matmul %106, %30, %cst_57 {dimension_numbers = #tpu.dot_dimension_numbers<[1], [0], [0], [1], [0, 0, 1, 1], [], []>} : vector<2x32xf32>, vector<32x32xf32>, vector<2x32xf32> -> vector<2x32xf32>
    %109 = arith.addf %107, %108 : vector<2x32xf32>
    %110 = vector.extract_strided_slice %14 {offsets = [4, 0], sizes = [2, 32], strides = [1, 1]} : vector<16x32xf32> to vector<2x32xf32>
    %cst_58 = arith.constant dense<0.000000e+00> : vector<2x32xf32>
    %111 = tpu.matmul %106, %32, %cst_58 {dimension_numbers = #tpu.dot_dimension_numbers<[1], [0], [0], [1], [0, 0, 1, 1], [], []>} : vector<2x32xf32>, vector<32x32xf32>, vector<2x32xf32> -> vector<2x32xf32>
    %112 = arith.addf %110, %111 : vector<2x32xf32>
    %113 = vector.extract_strided_slice %21 {offsets = [4, 0], sizes = [2, 32], strides = [1, 1]} : vector<16x32xf32> to vector<2x32xf32>
    %cst_59 = arith.constant dense<0.000000e+00> : vector<2x32xf32>
    %114 = tpu.matmul %106, %34, %cst_59 {dimension_numbers = #tpu.dot_dimension_numbers<[1], [0], [0], [1], [0, 0, 1, 1], [], []>} : vector<2x32xf32>, vector<32x32xf32>, vector<2x32xf32> -> vector<2x32xf32>
    %115 = arith.addf %113, %114 : vector<2x32xf32>
    %116 = vector.extract_strided_slice %28 {offsets = [4, 0], sizes = [2, 32], strides = [1, 1]} : vector<16x32xf32> to vector<2x32xf32>
    %cst_60 = arith.constant dense<0.000000e+00> : vector<2x32xf32>
    %117 = tpu.matmul %106, %36, %cst_60 {dimension_numbers = #tpu.dot_dimension_numbers<[1], [0], [0], [1], [0, 0, 1, 1], [], []>} : vector<2x32xf32>, vector<32x32xf32>, vector<2x32xf32> -> vector<2x32xf32>
    %118 = arith.addf %116, %117 : vector<2x32xf32>
    %119 = arith.negf %109 : vector<2x32xf32>
    %120 = math.exp %119 : vector<2x32xf32>
    %cst_61 = arith.constant 1.000000e+00 : f32
    %121 = vector.broadcast %cst_61 : f32 to vector<2x32xf32>
    %122 = arith.addf %121, %120 : vector<2x32xf32>
    %123 = arith.divf %121, %122 : vector<2x32xf32>
    %124 = arith.negf %112 : vector<2x32xf32>
    %125 = math.exp %124 : vector<2x32xf32>
    %cst_62 = arith.constant 1.000000e+00 : f32
    %126 = vector.broadcast %cst_62 : f32 to vector<2x32xf32>
    %127 = arith.addf %126, %125 : vector<2x32xf32>
    %128 = arith.divf %126, %127 : vector<2x32xf32>
    %129 = math.tanh %115 : vector<2x32xf32>
    %130 = arith.negf %118 : vector<2x32xf32>
    %131 = math.exp %130 : vector<2x32xf32>
    %cst_63 = arith.constant 1.000000e+00 : f32
    %132 = vector.broadcast %cst_63 : f32 to vector<2x32xf32>
    %133 = arith.addf %132, %131 : vector<2x32xf32>
    %134 = arith.divf %132, %133 : vector<2x32xf32>
    %135 = arith.mulf %128, %104 : vector<2x32xf32>
    %136 = arith.mulf %123, %129 : vector<2x32xf32>
    %137 = arith.addf %135, %136 : vector<2x32xf32>
    %138 = math.tanh %137 : vector<2x32xf32>
    %139 = arith.mulf %134, %138 : vector<2x32xf32>
    %140 = vector.extract_strided_slice %7 {offsets = [6, 0], sizes = [2, 32], strides = [1, 1]} : vector<16x32xf32> to vector<2x32xf32>
    %cst_64 = arith.constant dense<0.000000e+00> : vector<2x32xf32>
    %141 = tpu.matmul %139, %30, %cst_64 {dimension_numbers = #tpu.dot_dimension_numbers<[1], [0], [0], [1], [0, 0, 1, 1], [], []>} : vector<2x32xf32>, vector<32x32xf32>, vector<2x32xf32> -> vector<2x32xf32>
    %142 = arith.addf %140, %141 : vector<2x32xf32>
    %143 = vector.extract_strided_slice %14 {offsets = [6, 0], sizes = [2, 32], strides = [1, 1]} : vector<16x32xf32> to vector<2x32xf32>
    %cst_65 = arith.constant dense<0.000000e+00> : vector<2x32xf32>
    %144 = tpu.matmul %139, %32, %cst_65 {dimension_numbers = #tpu.dot_dimension_numbers<[1], [0], [0], [1], [0, 0, 1, 1], [], []>} : vector<2x32xf32>, vector<32x32xf32>, vector<2x32xf32> -> vector<2x32xf32>
    %145 = arith.addf %143, %144 : vector<2x32xf32>
    %146 = vector.extract_strided_slice %21 {offsets = [6, 0], sizes = [2, 32], strides = [1, 1]} : vector<16x32xf32> to vector<2x32xf32>
    %cst_66 = arith.constant dense<0.000000e+00> : vector<2x32xf32>
    %147 = tpu.matmul %139, %34, %cst_66 {dimension_numbers = #tpu.dot_dimension_numbers<[1], [0], [0], [1], [0, 0, 1, 1], [], []>} : vector<2x32xf32>, vector<32x32xf32>, vector<2x32xf32> -> vector<2x32xf32>
    %148 = arith.addf %146, %147 : vector<2x32xf32>
    %149 = vector.extract_strided_slice %28 {offsets = [6, 0], sizes = [2, 32], strides = [1, 1]} : vector<16x32xf32> to vector<2x32xf32>
    %cst_67 = arith.constant dense<0.000000e+00> : vector<2x32xf32>
    %150 = tpu.matmul %139, %36, %cst_67 {dimension_numbers = #tpu.dot_dimension_numbers<[1], [0], [0], [1], [0, 0, 1, 1], [], []>} : vector<2x32xf32>, vector<32x32xf32>, vector<2x32xf32> -> vector<2x32xf32>
    %151 = arith.addf %149, %150 : vector<2x32xf32>
    %152 = arith.negf %142 : vector<2x32xf32>
    %153 = math.exp %152 : vector<2x32xf32>
    %cst_68 = arith.constant 1.000000e+00 : f32
    %154 = vector.broadcast %cst_68 : f32 to vector<2x32xf32>
    %155 = arith.addf %154, %153 : vector<2x32xf32>
    %156 = arith.divf %154, %155 : vector<2x32xf32>
    %157 = arith.negf %145 : vector<2x32xf32>
    %158 = math.exp %157 : vector<2x32xf32>
    %cst_69 = arith.constant 1.000000e+00 : f32
    %159 = vector.broadcast %cst_69 : f32 to vector<2x32xf32>
    %160 = arith.addf %159, %158 : vector<2x32xf32>
    %161 = arith.divf %159, %160 : vector<2x32xf32>
    %162 = math.tanh %148 : vector<2x32xf32>
    %163 = arith.negf %151 : vector<2x32xf32>
    %164 = math.exp %163 : vector<2x32xf32>
    %cst_70 = arith.constant 1.000000e+00 : f32
    %165 = vector.broadcast %cst_70 : f32 to vector<2x32xf32>
    %166 = arith.addf %165, %164 : vector<2x32xf32>
    %167 = arith.divf %165, %166 : vector<2x32xf32>
    %168 = arith.mulf %161, %137 : vector<2x32xf32>
    %169 = arith.mulf %156, %162 : vector<2x32xf32>
    %170 = arith.addf %168, %169 : vector<2x32xf32>
    %171 = math.tanh %170 : vector<2x32xf32>
    %172 = arith.mulf %167, %171 : vector<2x32xf32>
    %173 = vector.extract_strided_slice %7 {offsets = [8, 0], sizes = [2, 32], strides = [1, 1]} : vector<16x32xf32> to vector<2x32xf32>
    %cst_71 = arith.constant dense<0.000000e+00> : vector<2x32xf32>
    %174 = tpu.matmul %172, %30, %cst_71 {dimension_numbers = #tpu.dot_dimension_numbers<[1], [0], [0], [1], [0, 0, 1, 1], [], []>} : vector<2x32xf32>, vector<32x32xf32>, vector<2x32xf32> -> vector<2x32xf32>
    %175 = arith.addf %173, %174 : vector<2x32xf32>
    %176 = vector.extract_strided_slice %14 {offsets = [8, 0], sizes = [2, 32], strides = [1, 1]} : vector<16x32xf32> to vector<2x32xf32>
    %cst_72 = arith.constant dense<0.000000e+00> : vector<2x32xf32>
    %177 = tpu.matmul %172, %32, %cst_72 {dimension_numbers = #tpu.dot_dimension_numbers<[1], [0], [0], [1], [0, 0, 1, 1], [], []>} : vector<2x32xf32>, vector<32x32xf32>, vector<2x32xf32> -> vector<2x32xf32>
    %178 = arith.addf %176, %177 : vector<2x32xf32>
    %179 = vector.extract_strided_slice %21 {offsets = [8, 0], sizes = [2, 32], strides = [1, 1]} : vector<16x32xf32> to vector<2x32xf32>
    %cst_73 = arith.constant dense<0.000000e+00> : vector<2x32xf32>
    %180 = tpu.matmul %172, %34, %cst_73 {dimension_numbers = #tpu.dot_dimension_numbers<[1], [0], [0], [1], [0, 0, 1, 1], [], []>} : vector<2x32xf32>, vector<32x32xf32>, vector<2x32xf32> -> vector<2x32xf32>
    %181 = arith.addf %179, %180 : vector<2x32xf32>
    %182 = vector.extract_strided_slice %28 {offsets = [8, 0], sizes = [2, 32], strides = [1, 1]} : vector<16x32xf32> to vector<2x32xf32>
    %cst_74 = arith.constant dense<0.000000e+00> : vector<2x32xf32>
    %183 = tpu.matmul %172, %36, %cst_74 {dimension_numbers = #tpu.dot_dimension_numbers<[1], [0], [0], [1], [0, 0, 1, 1], [], []>} : vector<2x32xf32>, vector<32x32xf32>, vector<2x32xf32> -> vector<2x32xf32>
    %184 = arith.addf %182, %183 : vector<2x32xf32>
    %185 = arith.negf %175 : vector<2x32xf32>
    %186 = math.exp %185 : vector<2x32xf32>
    %cst_75 = arith.constant 1.000000e+00 : f32
    %187 = vector.broadcast %cst_75 : f32 to vector<2x32xf32>
    %188 = arith.addf %187, %186 : vector<2x32xf32>
    %189 = arith.divf %187, %188 : vector<2x32xf32>
    %190 = arith.negf %178 : vector<2x32xf32>
    %191 = math.exp %190 : vector<2x32xf32>
    %cst_76 = arith.constant 1.000000e+00 : f32
    %192 = vector.broadcast %cst_76 : f32 to vector<2x32xf32>
    %193 = arith.addf %192, %191 : vector<2x32xf32>
    %194 = arith.divf %192, %193 : vector<2x32xf32>
    %195 = math.tanh %181 : vector<2x32xf32>
    %196 = arith.negf %184 : vector<2x32xf32>
    %197 = math.exp %196 : vector<2x32xf32>
    %cst_77 = arith.constant 1.000000e+00 : f32
    %198 = vector.broadcast %cst_77 : f32 to vector<2x32xf32>
    %199 = arith.addf %198, %197 : vector<2x32xf32>
    %200 = arith.divf %198, %199 : vector<2x32xf32>
    %201 = arith.mulf %194, %170 : vector<2x32xf32>
    %202 = arith.mulf %189, %195 : vector<2x32xf32>
    %203 = arith.addf %201, %202 : vector<2x32xf32>
    %204 = math.tanh %203 : vector<2x32xf32>
    %205 = arith.mulf %200, %204 : vector<2x32xf32>
    %206 = vector.extract_strided_slice %7 {offsets = [10, 0], sizes = [2, 32], strides = [1, 1]} : vector<16x32xf32> to vector<2x32xf32>
    %cst_78 = arith.constant dense<0.000000e+00> : vector<2x32xf32>
    %207 = tpu.matmul %205, %30, %cst_78 {dimension_numbers = #tpu.dot_dimension_numbers<[1], [0], [0], [1], [0, 0, 1, 1], [], []>} : vector<2x32xf32>, vector<32x32xf32>, vector<2x32xf32> -> vector<2x32xf32>
    %208 = arith.addf %206, %207 : vector<2x32xf32>
    %209 = vector.extract_strided_slice %14 {offsets = [10, 0], sizes = [2, 32], strides = [1, 1]} : vector<16x32xf32> to vector<2x32xf32>
    %cst_79 = arith.constant dense<0.000000e+00> : vector<2x32xf32>
    %210 = tpu.matmul %205, %32, %cst_79 {dimension_numbers = #tpu.dot_dimension_numbers<[1], [0], [0], [1], [0, 0, 1, 1], [], []>} : vector<2x32xf32>, vector<32x32xf32>, vector<2x32xf32> -> vector<2x32xf32>
    %211 = arith.addf %209, %210 : vector<2x32xf32>
    %212 = vector.extract_strided_slice %21 {offsets = [10, 0], sizes = [2, 32], strides = [1, 1]} : vector<16x32xf32> to vector<2x32xf32>
    %cst_80 = arith.constant dense<0.000000e+00> : vector<2x32xf32>
    %213 = tpu.matmul %205, %34, %cst_80 {dimension_numbers = #tpu.dot_dimension_numbers<[1], [0], [0], [1], [0, 0, 1, 1], [], []>} : vector<2x32xf32>, vector<32x32xf32>, vector<2x32xf32> -> vector<2x32xf32>
    %214 = arith.addf %212, %213 : vector<2x32xf32>
    %215 = vector.extract_strided_slice %28 {offsets = [10, 0], sizes = [2, 32], strides = [1, 1]} : vector<16x32xf32> to vector<2x32xf32>
    %cst_81 = arith.constant dense<0.000000e+00> : vector<2x32xf32>
    %216 = tpu.matmul %205, %36, %cst_81 {dimension_numbers = #tpu.dot_dimension_numbers<[1], [0], [0], [1], [0, 0, 1, 1], [], []>} : vector<2x32xf32>, vector<32x32xf32>, vector<2x32xf32> -> vector<2x32xf32>
    %217 = arith.addf %215, %216 : vector<2x32xf32>
    %218 = arith.negf %208 : vector<2x32xf32>
    %219 = math.exp %218 : vector<2x32xf32>
    %cst_82 = arith.constant 1.000000e+00 : f32
    %220 = vector.broadcast %cst_82 : f32 to vector<2x32xf32>
    %221 = arith.addf %220, %219 : vector<2x32xf32>
    %222 = arith.divf %220, %221 : vector<2x32xf32>
    %223 = arith.negf %211 : vector<2x32xf32>
    %224 = math.exp %223 : vector<2x32xf32>
    %cst_83 = arith.constant 1.000000e+00 : f32
    %225 = vector.broadcast %cst_83 : f32 to vector<2x32xf32>
    %226 = arith.addf %225, %224 : vector<2x32xf32>
    %227 = arith.divf %225, %226 : vector<2x32xf32>
    %228 = math.tanh %214 : vector<2x32xf32>
    %229 = arith.negf %217 : vector<2x32xf32>
    %230 = math.exp %229 : vector<2x32xf32>
    %cst_84 = arith.constant 1.000000e+00 : f32
    %231 = vector.broadcast %cst_84 : f32 to vector<2x32xf32>
    %232 = arith.addf %231, %230 : vector<2x32xf32>
    %233 = arith.divf %231, %232 : vector<2x32xf32>
    %234 = arith.mulf %227, %203 : vector<2x32xf32>
    %235 = arith.mulf %222, %228 : vector<2x32xf32>
    %236 = arith.addf %234, %235 : vector<2x32xf32>
    %237 = math.tanh %236 : vector<2x32xf32>
    %238 = arith.mulf %233, %237 : vector<2x32xf32>
    %239 = vector.extract_strided_slice %7 {offsets = [12, 0], sizes = [2, 32], strides = [1, 1]} : vector<16x32xf32> to vector<2x32xf32>
    %cst_85 = arith.constant dense<0.000000e+00> : vector<2x32xf32>
    %240 = tpu.matmul %238, %30, %cst_85 {dimension_numbers = #tpu.dot_dimension_numbers<[1], [0], [0], [1], [0, 0, 1, 1], [], []>} : vector<2x32xf32>, vector<32x32xf32>, vector<2x32xf32> -> vector<2x32xf32>
    %241 = arith.addf %239, %240 : vector<2x32xf32>
    %242 = vector.extract_strided_slice %14 {offsets = [12, 0], sizes = [2, 32], strides = [1, 1]} : vector<16x32xf32> to vector<2x32xf32>
    %cst_86 = arith.constant dense<0.000000e+00> : vector<2x32xf32>
    %243 = tpu.matmul %238, %32, %cst_86 {dimension_numbers = #tpu.dot_dimension_numbers<[1], [0], [0], [1], [0, 0, 1, 1], [], []>} : vector<2x32xf32>, vector<32x32xf32>, vector<2x32xf32> -> vector<2x32xf32>
    %244 = arith.addf %242, %243 : vector<2x32xf32>
    %245 = vector.extract_strided_slice %21 {offsets = [12, 0], sizes = [2, 32], strides = [1, 1]} : vector<16x32xf32> to vector<2x32xf32>
    %cst_87 = arith.constant dense<0.000000e+00> : vector<2x32xf32>
    %246 = tpu.matmul %238, %34, %cst_87 {dimension_numbers = #tpu.dot_dimension_numbers<[1], [0], [0], [1], [0, 0, 1, 1], [], []>} : vector<2x32xf32>, vector<32x32xf32>, vector<2x32xf32> -> vector<2x32xf32>
    %247 = arith.addf %245, %246 : vector<2x32xf32>
    %248 = vector.extract_strided_slice %28 {offsets = [12, 0], sizes = [2, 32], strides = [1, 1]} : vector<16x32xf32> to vector<2x32xf32>
    %cst_88 = arith.constant dense<0.000000e+00> : vector<2x32xf32>
    %249 = tpu.matmul %238, %36, %cst_88 {dimension_numbers = #tpu.dot_dimension_numbers<[1], [0], [0], [1], [0, 0, 1, 1], [], []>} : vector<2x32xf32>, vector<32x32xf32>, vector<2x32xf32> -> vector<2x32xf32>
    %250 = arith.addf %248, %249 : vector<2x32xf32>
    %251 = arith.negf %241 : vector<2x32xf32>
    %252 = math.exp %251 : vector<2x32xf32>
    %cst_89 = arith.constant 1.000000e+00 : f32
    %253 = vector.broadcast %cst_89 : f32 to vector<2x32xf32>
    %254 = arith.addf %253, %252 : vector<2x32xf32>
    %255 = arith.divf %253, %254 : vector<2x32xf32>
    %256 = arith.negf %244 : vector<2x32xf32>
    %257 = math.exp %256 : vector<2x32xf32>
    %cst_90 = arith.constant 1.000000e+00 : f32
    %258 = vector.broadcast %cst_90 : f32 to vector<2x32xf32>
    %259 = arith.addf %258, %257 : vector<2x32xf32>
    %260 = arith.divf %258, %259 : vector<2x32xf32>
    %261 = math.tanh %247 : vector<2x32xf32>
    %262 = arith.negf %250 : vector<2x32xf32>
    %263 = math.exp %262 : vector<2x32xf32>
    %cst_91 = arith.constant 1.000000e+00 : f32
    %264 = vector.broadcast %cst_91 : f32 to vector<2x32xf32>
    %265 = arith.addf %264, %263 : vector<2x32xf32>
    %266 = arith.divf %264, %265 : vector<2x32xf32>
    %267 = arith.mulf %260, %236 : vector<2x32xf32>
    %268 = arith.mulf %255, %261 : vector<2x32xf32>
    %269 = arith.addf %267, %268 : vector<2x32xf32>
    %270 = math.tanh %269 : vector<2x32xf32>
    %271 = arith.mulf %266, %270 : vector<2x32xf32>
    %272 = vector.extract_strided_slice %7 {offsets = [14, 0], sizes = [2, 32], strides = [1, 1]} : vector<16x32xf32> to vector<2x32xf32>
    %cst_92 = arith.constant dense<0.000000e+00> : vector<2x32xf32>
    %273 = tpu.matmul %271, %30, %cst_92 {dimension_numbers = #tpu.dot_dimension_numbers<[1], [0], [0], [1], [0, 0, 1, 1], [], []>} : vector<2x32xf32>, vector<32x32xf32>, vector<2x32xf32> -> vector<2x32xf32>
    %274 = arith.addf %272, %273 : vector<2x32xf32>
    %275 = vector.extract_strided_slice %14 {offsets = [14, 0], sizes = [2, 32], strides = [1, 1]} : vector<16x32xf32> to vector<2x32xf32>
    %cst_93 = arith.constant dense<0.000000e+00> : vector<2x32xf32>
    %276 = tpu.matmul %271, %32, %cst_93 {dimension_numbers = #tpu.dot_dimension_numbers<[1], [0], [0], [1], [0, 0, 1, 1], [], []>} : vector<2x32xf32>, vector<32x32xf32>, vector<2x32xf32> -> vector<2x32xf32>
    %277 = arith.addf %275, %276 : vector<2x32xf32>
    %278 = vector.extract_strided_slice %21 {offsets = [14, 0], sizes = [2, 32], strides = [1, 1]} : vector<16x32xf32> to vector<2x32xf32>
    %cst_94 = arith.constant dense<0.000000e+00> : vector<2x32xf32>
    %279 = tpu.matmul %271, %34, %cst_94 {dimension_numbers = #tpu.dot_dimension_numbers<[1], [0], [0], [1], [0, 0, 1, 1], [], []>} : vector<2x32xf32>, vector<32x32xf32>, vector<2x32xf32> -> vector<2x32xf32>
    %280 = arith.addf %278, %279 : vector<2x32xf32>
    %281 = vector.extract_strided_slice %28 {offsets = [14, 0], sizes = [2, 32], strides = [1, 1]} : vector<16x32xf32> to vector<2x32xf32>
    %cst_95 = arith.constant dense<0.000000e+00> : vector<2x32xf32>
    %282 = tpu.matmul %271, %36, %cst_95 {dimension_numbers = #tpu.dot_dimension_numbers<[1], [0], [0], [1], [0, 0, 1, 1], [], []>} : vector<2x32xf32>, vector<32x32xf32>, vector<2x32xf32> -> vector<2x32xf32>
    %283 = arith.addf %281, %282 : vector<2x32xf32>
    %284 = arith.negf %274 : vector<2x32xf32>
    %285 = math.exp %284 : vector<2x32xf32>
    %cst_96 = arith.constant 1.000000e+00 : f32
    %286 = vector.broadcast %cst_96 : f32 to vector<2x32xf32>
    %287 = arith.addf %286, %285 : vector<2x32xf32>
    %288 = arith.divf %286, %287 : vector<2x32xf32>
    %289 = arith.negf %277 : vector<2x32xf32>
    %290 = math.exp %289 : vector<2x32xf32>
    %cst_97 = arith.constant 1.000000e+00 : f32
    %291 = vector.broadcast %cst_97 : f32 to vector<2x32xf32>
    %292 = arith.addf %291, %290 : vector<2x32xf32>
    %293 = arith.divf %291, %292 : vector<2x32xf32>
    %294 = math.tanh %280 : vector<2x32xf32>
    %295 = arith.negf %283 : vector<2x32xf32>
    %296 = math.exp %295 : vector<2x32xf32>
    %cst_98 = arith.constant 1.000000e+00 : f32
    %297 = vector.broadcast %cst_98 : f32 to vector<2x32xf32>
    %298 = arith.addf %297, %296 : vector<2x32xf32>
    %299 = arith.divf %297, %298 : vector<2x32xf32>
    %300 = arith.mulf %293, %269 : vector<2x32xf32>
    %301 = arith.mulf %288, %294 : vector<2x32xf32>
    %302 = arith.addf %300, %301 : vector<2x32xf32>
    %303 = math.tanh %302 : vector<2x32xf32>
    %304 = arith.mulf %299, %303 : vector<2x32xf32>
    %c0_99 = arith.constant 0 : index
    %c0_100 = arith.constant 0 : index
    %c0_101 = arith.constant 0 : index
    %305 = vector.load %arg12[%c0_99, %c0_100, %c0_101] : memref<2x2x32xf32, #tpu.memory_space<vmem>>, vector<1x2x32xf32>
    %306 = vector.shape_cast %305 : vector<1x2x32xf32> to vector<2x32xf32>
    %307 = vector.shape_cast %304 : vector<2x32xf32> to vector<1x2x32xf32>
    tpu.vector_store %arg12[%c0_99, %c0_100, %c0_101], %307 {strides = array<i32>} : memref<2x2x32xf32, #tpu.memory_space<vmem>>, vector<1x2x32xf32>,
    %c0_102 = arith.constant 0 : index
    %c0_103 = arith.constant 0 : index
    %c0_104 = arith.constant 0 : index
    %308 = vector.load %arg13[%c0_102, %c0_103, %c0_104] : memref<2x2x32xf32, #tpu.memory_space<vmem>>, vector<1x2x32xf32>
    %309 = vector.shape_cast %308 : vector<1x2x32xf32> to vector<2x32xf32>
    %310 = vector.shape_cast %302 : vector<2x32xf32> to vector<1x2x32xf32>
    tpu.vector_store %arg13[%c0_102, %c0_103, %c0_104], %310 {strides = array<i32>} : memref<2x2x32xf32, #tpu.memory_space<vmem>>, vector<1x2x32xf32>,
    %311 = tpu.concatenate %73, %106, %139, %172, %205, %238, %271, %304 in 0 : vector<2x32xf32>, vector<2x32xf32>, vector<2x32xf32>, vector<2x32xf32>, vector<2x32xf32>, vector<2x32xf32>, vector<2x32xf32>, vector<2x32xf32> -> vector<16x32xf32>
    %c0_105 = arith.constant 0 : index
    %c0_106 = arith.constant 0 : index
    %c0_107 = arith.constant 0 : index
    %312 = vector.load %arg4[%c0_105, %c0_106, %c0_107] : memref<4x32x32xf32, #tpu.memory_space<vmem>>, vector<1x32x32xf32>
    %313 = vector.shape_cast %312 : vector<1x32x32xf32> to vector<32x32xf32>
    %cst_108 = arith.constant dense<0.000000e+00> : vector<16x32xf32>
    %314 = tpu.matmul %311, %313, %cst_108 {dimension_numbers = #tpu.dot_dimension_numbers<[1], [0], [0], [1], [0, 0, 1, 1], [], []>} : vector<16x32xf32>, vector<32x32xf32>, vector<16x32xf32> -> vector<16x32xf32>
    %c0_109 = arith.constant 0 : index
    %c0_110 = arith.constant 0 : index
    %c0_111 = arith.constant 0 : index
    %315 = vector.load %arg6[%c0_109, %c0_110, %c0_111] : memref<4x1x32xf32, #tpu.memory_space<vmem>>, vector<1x1x32xf32>
    %316 = vector.shape_cast %315 : vector<1x1x32xf32> to vector<1x32xf32>
    %317 = vector.broadcast %316 : vector<1x32xf32> to vector<16x32xf32>
    %318 = arith.addf %314, %317 : vector<16x32xf32>
    %c1_112 = arith.constant 1 : index
    %c0_113 = arith.constant 0 : index
    %c0_114 = arith.constant 0 : index
    %319 = vector.load %arg4[%c1_112, %c0_113, %c0_114] : memref<4x32x32xf32, #tpu.memory_space<vmem>>, vector<1x32x32xf32>
    %320 = vector.shape_cast %319 : vector<1x32x32xf32> to vector<32x32xf32>
    %cst_115 = arith.constant dense<0.000000e+00> : vector<16x32xf32>
    %321 = tpu.matmul %311, %320, %cst_115 {dimension_numbers = #tpu.dot_dimension_numbers<[1], [0], [0], [1], [0, 0, 1, 1], [], []>} : vector<16x32xf32>, vector<32x32xf32>, vector<16x32xf32> -> vector<16x32xf32>
    %c1_116 = arith.constant 1 : index
    %c0_117 = arith.constant 0 : index
    %c0_118 = arith.constant 0 : index
    %322 = vector.load %arg6[%c1_116, %c0_117, %c0_118] : memref<4x1x32xf32, #tpu.memory_space<vmem>>, vector<1x1x32xf32>
    %323 = vector.shape_cast %322 : vector<1x1x32xf32> to vector<1x32xf32>
    %324 = vector.broadcast %323 : vector<1x32xf32> to vector<16x32xf32>
    %325 = arith.addf %321, %324 : vector<16x32xf32>
    %c2_119 = arith.constant 2 : index
    %c0_120 = arith.constant 0 : index
    %c0_121 = arith.constant 0 : index
    %326 = vector.load %arg4[%c2_119, %c0_120, %c0_121] : memref<4x32x32xf32, #tpu.memory_space<vmem>>, vector<1x32x32xf32>
    %327 = vector.shape_cast %326 : vector<1x32x32xf32> to vector<32x32xf32>
    %cst_122 = arith.constant dense<0.000000e+00> : vector<16x32xf32>
    %328 = tpu.matmul %311, %327, %cst_122 {dimension_numbers = #tpu.dot_dimension_numbers<[1], [0], [0], [1], [0, 0, 1, 1], [], []>} : vector<16x32xf32>, vector<32x32xf32>, vector<16x32xf32> -> vector<16x32xf32>
    %c2_123 = arith.constant 2 : index
    %c0_124 = arith.constant 0 : index
    %c0_125 = arith.constant 0 : index
    %329 = vector.load %arg6[%c2_123, %c0_124, %c0_125] : memref<4x1x32xf32, #tpu.memory_space<vmem>>, vector<1x1x32xf32>
    %330 = vector.shape_cast %329 : vector<1x1x32xf32> to vector<1x32xf32>
    %331 = vector.broadcast %330 : vector<1x32xf32> to vector<16x32xf32>
    %332 = arith.addf %328, %331 : vector<16x32xf32>
    %c3_126 = arith.constant 3 : index
    %c0_127 = arith.constant 0 : index
    %c0_128 = arith.constant 0 : index
    %333 = vector.load %arg4[%c3_126, %c0_127, %c0_128] : memref<4x32x32xf32, #tpu.memory_space<vmem>>, vector<1x32x32xf32>
    %334 = vector.shape_cast %333 : vector<1x32x32xf32> to vector<32x32xf32>
    %cst_129 = arith.constant dense<0.000000e+00> : vector<16x32xf32>
    %335 = tpu.matmul %311, %334, %cst_129 {dimension_numbers = #tpu.dot_dimension_numbers<[1], [0], [0], [1], [0, 0, 1, 1], [], []>} : vector<16x32xf32>, vector<32x32xf32>, vector<16x32xf32> -> vector<16x32xf32>
    %c3_130 = arith.constant 3 : index
    %c0_131 = arith.constant 0 : index
    %c0_132 = arith.constant 0 : index
    %336 = vector.load %arg6[%c3_130, %c0_131, %c0_132] : memref<4x1x32xf32, #tpu.memory_space<vmem>>, vector<1x1x32xf32>
    %337 = vector.shape_cast %336 : vector<1x1x32xf32> to vector<1x32xf32>
    %338 = vector.broadcast %337 : vector<1x32xf32> to vector<16x32xf32>
    %339 = arith.addf %335, %338 : vector<16x32xf32>
    %c0_133 = arith.constant 0 : index
    %c0_134 = arith.constant 0 : index
    %c0_135 = arith.constant 0 : index
    %340 = vector.load %arg5[%c0_133, %c0_134, %c0_135] : memref<4x32x32xf32, #tpu.memory_space<vmem>>, vector<1x32x32xf32>
    %341 = vector.shape_cast %340 : vector<1x32x32xf32> to vector<32x32xf32>
    %c1_136 = arith.constant 1 : index
    %c0_137 = arith.constant 0 : index
    %c0_138 = arith.constant 0 : index
    %342 = vector.load %arg5[%c1_136, %c0_137, %c0_138] : memref<4x32x32xf32, #tpu.memory_space<vmem>>, vector<1x32x32xf32>
    %343 = vector.shape_cast %342 : vector<1x32x32xf32> to vector<32x32xf32>
    %c2_139 = arith.constant 2 : index
    %c0_140 = arith.constant 0 : index
    %c0_141 = arith.constant 0 : index
    %344 = vector.load %arg5[%c2_139, %c0_140, %c0_141] : memref<4x32x32xf32, #tpu.memory_space<vmem>>, vector<1x32x32xf32>
    %345 = vector.shape_cast %344 : vector<1x32x32xf32> to vector<32x32xf32>
    %c3_142 = arith.constant 3 : index
    %c0_143 = arith.constant 0 : index
    %c0_144 = arith.constant 0 : index
    %346 = vector.load %arg5[%c3_142, %c0_143, %c0_144] : memref<4x32x32xf32, #tpu.memory_space<vmem>>, vector<1x32x32xf32>
    %347 = vector.shape_cast %346 : vector<1x32x32xf32> to vector<32x32xf32>
    %c1_145 = arith.constant 1 : index
    %c0_146 = arith.constant 0 : index
    %c0_147 = arith.constant 0 : index
    %348 = vector.load %arg7[%c1_145, %c0_146, %c0_147] : memref<2x2x32xf32, #tpu.memory_space<vmem>>, vector<1x2x32xf32>
    %349 = vector.shape_cast %348 : vector<1x2x32xf32> to vector<2x32xf32>
    %c1_148 = arith.constant 1 : index
    %c0_149 = arith.constant 0 : index
    %c0_150 = arith.constant 0 : index
    %350 = vector.load %arg8[%c1_148, %c0_149, %c0_150] : memref<2x2x32xf32, #tpu.memory_space<vmem>>, vector<1x2x32xf32>
    %351 = vector.shape_cast %350 : vector<1x2x32xf32> to vector<2x32xf32>
    %352 = vector.extract_strided_slice %318 {offsets = [0, 0], sizes = [2, 32], strides = [1, 1]} : vector<16x32xf32> to vector<2x32xf32>
    %cst_151 = arith.constant dense<0.000000e+00> : vector<2x32xf32>
    %353 = tpu.matmul %349, %341, %cst_151 {dimension_numbers = #tpu.dot_dimension_numbers<[1], [0], [0], [1], [0, 0, 1, 1], [], []>} : vector<2x32xf32>, vector<32x32xf32>, vector<2x32xf32> -> vector<2x32xf32>
    %354 = arith.addf %352, %353 : vector<2x32xf32>
    %355 = vector.extract_strided_slice %325 {offsets = [0, 0], sizes = [2, 32], strides = [1, 1]} : vector<16x32xf32> to vector<2x32xf32>
    %cst_152 = arith.constant dense<0.000000e+00> : vector<2x32xf32>
    %356 = tpu.matmul %349, %343, %cst_152 {dimension_numbers = #tpu.dot_dimension_numbers<[1], [0], [0], [1], [0, 0, 1, 1], [], []>} : vector<2x32xf32>, vector<32x32xf32>, vector<2x32xf32> -> vector<2x32xf32>
    %357 = arith.addf %355, %356 : vector<2x32xf32>
    %358 = vector.extract_strided_slice %332 {offsets = [0, 0], sizes = [2, 32], strides = [1, 1]} : vector<16x32xf32> to vector<2x32xf32>
    %cst_153 = arith.constant dense<0.000000e+00> : vector<2x32xf32>
    %359 = tpu.matmul %349, %345, %cst_153 {dimension_numbers = #tpu.dot_dimension_numbers<[1], [0], [0], [1], [0, 0, 1, 1], [], []>} : vector<2x32xf32>, vector<32x32xf32>, vector<2x32xf32> -> vector<2x32xf32>
    %360 = arith.addf %358, %359 : vector<2x32xf32>
    %361 = vector.extract_strided_slice %339 {offsets = [0, 0], sizes = [2, 32], strides = [1, 1]} : vector<16x32xf32> to vector<2x32xf32>
    %cst_154 = arith.constant dense<0.000000e+00> : vector<2x32xf32>
    %362 = tpu.matmul %349, %347, %cst_154 {dimension_numbers = #tpu.dot_dimension_numbers<[1], [0], [0], [1], [0, 0, 1, 1], [], []>} : vector<2x32xf32>, vector<32x32xf32>, vector<2x32xf32> -> vector<2x32xf32>
    %363 = arith.addf %361, %362 : vector<2x32xf32>
    %364 = arith.negf %354 : vector<2x32xf32>
    %365 = math.exp %364 : vector<2x32xf32>
    %cst_155 = arith.constant 1.000000e+00 : f32
    %366 = vector.broadcast %cst_155 : f32 to vector<2x32xf32>
    %367 = arith.addf %366, %365 : vector<2x32xf32>
    %368 = arith.divf %366, %367 : vector<2x32xf32>
    %369 = arith.negf %357 : vector<2x32xf32>
    %370 = math.exp %369 : vector<2x32xf32>
    %cst_156 = arith.constant 1.000000e+00 : f32
    %371 = vector.broadcast %cst_156 : f32 to vector<2x32xf32>
    %372 = arith.addf %371, %370 : vector<2x32xf32>
    %373 = arith.divf %371, %372 : vector<2x32xf32>
    %374 = math.tanh %360 : vector<2x32xf32>
    %375 = arith.negf %363 : vector<2x32xf32>
    %376 = math.exp %375 : vector<2x32xf32>
    %cst_157 = arith.constant 1.000000e+00 : f32
    %377 = vector.broadcast %cst_157 : f32 to vector<2x32xf32>
    %378 = arith.addf %377, %376 : vector<2x32xf32>
    %379 = arith.divf %377, %378 : vector<2x32xf32>
    %380 = arith.mulf %373, %351 : vector<2x32xf32>
    %381 = arith.mulf %368, %374 : vector<2x32xf32>
    %382 = arith.addf %380, %381 : vector<2x32xf32>
    %383 = math.tanh %382 : vector<2x32xf32>
    %384 = arith.mulf %379, %383 : vector<2x32xf32>
    %385 = vector.extract_strided_slice %318 {offsets = [2, 0], sizes = [2, 32], strides = [1, 1]} : vector<16x32xf32> to vector<2x32xf32>
    %cst_158 = arith.constant dense<0.000000e+00> : vector<2x32xf32>
    %386 = tpu.matmul %384, %341, %cst_158 {dimension_numbers = #tpu.dot_dimension_numbers<[1], [0], [0], [1], [0, 0, 1, 1], [], []>} : vector<2x32xf32>, vector<32x32xf32>, vector<2x32xf32> -> vector<2x32xf32>
    %387 = arith.addf %385, %386 : vector<2x32xf32>
    %388 = vector.extract_strided_slice %325 {offsets = [2, 0], sizes = [2, 32], strides = [1, 1]} : vector<16x32xf32> to vector<2x32xf32>
    %cst_159 = arith.constant dense<0.000000e+00> : vector<2x32xf32>
    %389 = tpu.matmul %384, %343, %cst_159 {dimension_numbers = #tpu.dot_dimension_numbers<[1], [0], [0], [1], [0, 0, 1, 1], [], []>} : vector<2x32xf32>, vector<32x32xf32>, vector<2x32xf32> -> vector<2x32xf32>
    %390 = arith.addf %388, %389 : vector<2x32xf32>
    %391 = vector.extract_strided_slice %332 {offsets = [2, 0], sizes = [2, 32], strides = [1, 1]} : vector<16x32xf32> to vector<2x32xf32>
    %cst_160 = arith.constant dense<0.000000e+00> : vector<2x32xf32>
    %392 = tpu.matmul %384, %345, %cst_160 {dimension_numbers = #tpu.dot_dimension_numbers<[1], [0], [0], [1], [0, 0, 1, 1], [], []>} : vector<2x32xf32>, vector<32x32xf32>, vector<2x32xf32> -> vector<2x32xf32>
    %393 = arith.addf %391, %392 : vector<2x32xf32>
    %394 = vector.extract_strided_slice %339 {offsets = [2, 0], sizes = [2, 32], strides = [1, 1]} : vector<16x32xf32> to vector<2x32xf32>
    %cst_161 = arith.constant dense<0.000000e+00> : vector<2x32xf32>
    %395 = tpu.matmul %384, %347, %cst_161 {dimension_numbers = #tpu.dot_dimension_numbers<[1], [0], [0], [1], [0, 0, 1, 1], [], []>} : vector<2x32xf32>, vector<32x32xf32>, vector<2x32xf32> -> vector<2x32xf32>
    %396 = arith.addf %394, %395 : vector<2x32xf32>
    %397 = arith.negf %387 : vector<2x32xf32>
    %398 = math.exp %397 : vector<2x32xf32>
    %cst_162 = arith.constant 1.000000e+00 : f32
    %399 = vector.broadcast %cst_162 : f32 to vector<2x32xf32>
    %400 = arith.addf %399, %398 : vector<2x32xf32>
    %401 = arith.divf %399, %400 : vector<2x32xf32>
    %402 = arith.negf %390 : vector<2x32xf32>
    %403 = math.exp %402 : vector<2x32xf32>
    %cst_163 = arith.constant 1.000000e+00 : f32
    %404 = vector.broadcast %cst_163 : f32 to vector<2x32xf32>
    %405 = arith.addf %404, %403 : vector<2x32xf32>
    %406 = arith.divf %404, %405 : vector<2x32xf32>
    %407 = math.tanh %393 : vector<2x32xf32>
    %408 = arith.negf %396 : vector<2x32xf32>
    %409 = math.exp %408 : vector<2x32xf32>
    %cst_164 = arith.constant 1.000000e+00 : f32
    %410 = vector.broadcast %cst_164 : f32 to vector<2x32xf32>
    %411 = arith.addf %410, %409 : vector<2x32xf32>
    %412 = arith.divf %410, %411 : vector<2x32xf32>
    %413 = arith.mulf %406, %382 : vector<2x32xf32>
    %414 = arith.mulf %401, %407 : vector<2x32xf32>
    %415 = arith.addf %413, %414 : vector<2x32xf32>
    %416 = math.tanh %415 : vector<2x32xf32>
    %417 = arith.mulf %412, %416 : vector<2x32xf32>
    %418 = vector.extract_strided_slice %318 {offsets = [4, 0], sizes = [2, 32], strides = [1, 1]} : vector<16x32xf32> to vector<2x32xf32>
    %cst_165 = arith.constant dense<0.000000e+00> : vector<2x32xf32>
    %419 = tpu.matmul %417, %341, %cst_165 {dimension_numbers = #tpu.dot_dimension_numbers<[1], [0], [0], [1], [0, 0, 1, 1], [], []>} : vector<2x32xf32>, vector<32x32xf32>, vector<2x32xf32> -> vector<2x32xf32>
    %420 = arith.addf %418, %419 : vector<2x32xf32>
    %421 = vector.extract_strided_slice %325 {offsets = [4, 0], sizes = [2, 32], strides = [1, 1]} : vector<16x32xf32> to vector<2x32xf32>
    %cst_166 = arith.constant dense<0.000000e+00> : vector<2x32xf32>
    %422 = tpu.matmul %417, %343, %cst_166 {dimension_numbers = #tpu.dot_dimension_numbers<[1], [0], [0], [1], [0, 0, 1, 1], [], []>} : vector<2x32xf32>, vector<32x32xf32>, vector<2x32xf32> -> vector<2x32xf32>
    %423 = arith.addf %421, %422 : vector<2x32xf32>
    %424 = vector.extract_strided_slice %332 {offsets = [4, 0], sizes = [2, 32], strides = [1, 1]} : vector<16x32xf32> to vector<2x32xf32>
    %cst_167 = arith.constant dense<0.000000e+00> : vector<2x32xf32>
    %425 = tpu.matmul %417, %345, %cst_167 {dimension_numbers = #tpu.dot_dimension_numbers<[1], [0], [0], [1], [0, 0, 1, 1], [], []>} : vector<2x32xf32>, vector<32x32xf32>, vector<2x32xf32> -> vector<2x32xf32>
    %426 = arith.addf %424, %425 : vector<2x32xf32>
    %427 = vector.extract_strided_slice %339 {offsets = [4, 0], sizes = [2, 32], strides = [1, 1]} : vector<16x32xf32> to vector<2x32xf32>
    %cst_168 = arith.constant dense<0.000000e+00> : vector<2x32xf32>
    %428 = tpu.matmul %417, %347, %cst_168 {dimension_numbers = #tpu.dot_dimension_numbers<[1], [0], [0], [1], [0, 0, 1, 1], [], []>} : vector<2x32xf32>, vector<32x32xf32>, vector<2x32xf32> -> vector<2x32xf32>
    %429 = arith.addf %427, %428 : vector<2x32xf32>
    %430 = arith.negf %420 : vector<2x32xf32>
    %431 = math.exp %430 : vector<2x32xf32>
    %cst_169 = arith.constant 1.000000e+00 : f32
    %432 = vector.broadcast %cst_169 : f32 to vector<2x32xf32>
    %433 = arith.addf %432, %431 : vector<2x32xf32>
    %434 = arith.divf %432, %433 : vector<2x32xf32>
    %435 = arith.negf %423 : vector<2x32xf32>
    %436 = math.exp %435 : vector<2x32xf32>
    %cst_170 = arith.constant 1.000000e+00 : f32
    %437 = vector.broadcast %cst_170 : f32 to vector<2x32xf32>
    %438 = arith.addf %437, %436 : vector<2x32xf32>
    %439 = arith.divf %437, %438 : vector<2x32xf32>
    %440 = math.tanh %426 : vector<2x32xf32>
    %441 = arith.negf %429 : vector<2x32xf32>
    %442 = math.exp %441 : vector<2x32xf32>
    %cst_171 = arith.constant 1.000000e+00 : f32
    %443 = vector.broadcast %cst_171 : f32 to vector<2x32xf32>
    %444 = arith.addf %443, %442 : vector<2x32xf32>
    %445 = arith.divf %443, %444 : vector<2x32xf32>
    %446 = arith.mulf %439, %415 : vector<2x32xf32>
    %447 = arith.mulf %434, %440 : vector<2x32xf32>
    %448 = arith.addf %446, %447 : vector<2x32xf32>
    %449 = math.tanh %448 : vector<2x32xf32>
    %450 = arith.mulf %445, %449 : vector<2x32xf32>
    %451 = vector.extract_strided_slice %318 {offsets = [6, 0], sizes = [2, 32], strides = [1, 1]} : vector<16x32xf32> to vector<2x32xf32>
    %cst_172 = arith.constant dense<0.000000e+00> : vector<2x32xf32>
    %452 = tpu.matmul %450, %341, %cst_172 {dimension_numbers = #tpu.dot_dimension_numbers<[1], [0], [0], [1], [0, 0, 1, 1], [], []>} : vector<2x32xf32>, vector<32x32xf32>, vector<2x32xf32> -> vector<2x32xf32>
    %453 = arith.addf %451, %452 : vector<2x32xf32>
    %454 = vector.extract_strided_slice %325 {offsets = [6, 0], sizes = [2, 32], strides = [1, 1]} : vector<16x32xf32> to vector<2x32xf32>
    %cst_173 = arith.constant dense<0.000000e+00> : vector<2x32xf32>
    %455 = tpu.matmul %450, %343, %cst_173 {dimension_numbers = #tpu.dot_dimension_numbers<[1], [0], [0], [1], [0, 0, 1, 1], [], []>} : vector<2x32xf32>, vector<32x32xf32>, vector<2x32xf32> -> vector<2x32xf32>
    %456 = arith.addf %454, %455 : vector<2x32xf32>
    %457 = vector.extract_strided_slice %332 {offsets = [6, 0], sizes = [2, 32], strides = [1, 1]} : vector<16x32xf32> to vector<2x32xf32>
    %cst_174 = arith.constant dense<0.000000e+00> : vector<2x32xf32>
    %458 = tpu.matmul %450, %345, %cst_174 {dimension_numbers = #tpu.dot_dimension_numbers<[1], [0], [0], [1], [0, 0, 1, 1], [], []>} : vector<2x32xf32>, vector<32x32xf32>, vector<2x32xf32> -> vector<2x32xf32>
    %459 = arith.addf %457, %458 : vector<2x32xf32>
    %460 = vector.extract_strided_slice %339 {offsets = [6, 0], sizes = [2, 32], strides = [1, 1]} : vector<16x32xf32> to vector<2x32xf32>
    %cst_175 = arith.constant dense<0.000000e+00> : vector<2x32xf32>
    %461 = tpu.matmul %450, %347, %cst_175 {dimension_numbers = #tpu.dot_dimension_numbers<[1], [0], [0], [1], [0, 0, 1, 1], [], []>} : vector<2x32xf32>, vector<32x32xf32>, vector<2x32xf32> -> vector<2x32xf32>
    %462 = arith.addf %460, %461 : vector<2x32xf32>
    %463 = arith.negf %453 : vector<2x32xf32>
    %464 = math.exp %463 : vector<2x32xf32>
    %cst_176 = arith.constant 1.000000e+00 : f32
    %465 = vector.broadcast %cst_176 : f32 to vector<2x32xf32>
    %466 = arith.addf %465, %464 : vector<2x32xf32>
    %467 = arith.divf %465, %466 : vector<2x32xf32>
    %468 = arith.negf %456 : vector<2x32xf32>
    %469 = math.exp %468 : vector<2x32xf32>
    %cst_177 = arith.constant 1.000000e+00 : f32
    %470 = vector.broadcast %cst_177 : f32 to vector<2x32xf32>
    %471 = arith.addf %470, %469 : vector<2x32xf32>
    %472 = arith.divf %470, %471 : vector<2x32xf32>
    %473 = math.tanh %459 : vector<2x32xf32>
    %474 = arith.negf %462 : vector<2x32xf32>
    %475 = math.exp %474 : vector<2x32xf32>
    %cst_178 = arith.constant 1.000000e+00 : f32
    %476 = vector.broadcast %cst_178 : f32 to vector<2x32xf32>
    %477 = arith.addf %476, %475 : vector<2x32xf32>
    %478 = arith.divf %476, %477 : vector<2x32xf32>
    %479 = arith.mulf %472, %448 : vector<2x32xf32>
    %480 = arith.mulf %467, %473 : vector<2x32xf32>
    %481 = arith.addf %479, %480 : vector<2x32xf32>
    %482 = math.tanh %481 : vector<2x32xf32>
    %483 = arith.mulf %478, %482 : vector<2x32xf32>
    %484 = vector.extract_strided_slice %318 {offsets = [8, 0], sizes = [2, 32], strides = [1, 1]} : vector<16x32xf32> to vector<2x32xf32>
    %cst_179 = arith.constant dense<0.000000e+00> : vector<2x32xf32>
    %485 = tpu.matmul %483, %341, %cst_179 {dimension_numbers = #tpu.dot_dimension_numbers<[1], [0], [0], [1], [0, 0, 1, 1], [], []>} : vector<2x32xf32>, vector<32x32xf32>, vector<2x32xf32> -> vector<2x32xf32>
    %486 = arith.addf %484, %485 : vector<2x32xf32>
    %487 = vector.extract_strided_slice %325 {offsets = [8, 0], sizes = [2, 32], strides = [1, 1]} : vector<16x32xf32> to vector<2x32xf32>
    %cst_180 = arith.constant dense<0.000000e+00> : vector<2x32xf32>
    %488 = tpu.matmul %483, %343, %cst_180 {dimension_numbers = #tpu.dot_dimension_numbers<[1], [0], [0], [1], [0, 0, 1, 1], [], []>} : vector<2x32xf32>, vector<32x32xf32>, vector<2x32xf32> -> vector<2x32xf32>
    %489 = arith.addf %487, %488 : vector<2x32xf32>
    %490 = vector.extract_strided_slice %332 {offsets = [8, 0], sizes = [2, 32], strides = [1, 1]} : vector<16x32xf32> to vector<2x32xf32>
    %cst_181 = arith.constant dense<0.000000e+00> : vector<2x32xf32>
    %491 = tpu.matmul %483, %345, %cst_181 {dimension_numbers = #tpu.dot_dimension_numbers<[1], [0], [0], [1], [0, 0, 1, 1], [], []>} : vector<2x32xf32>, vector<32x32xf32>, vector<2x32xf32> -> vector<2x32xf32>
    %492 = arith.addf %490, %491 : vector<2x32xf32>
    %493 = vector.extract_strided_slice %339 {offsets = [8, 0], sizes = [2, 32], strides = [1, 1]} : vector<16x32xf32> to vector<2x32xf32>
    %cst_182 = arith.constant dense<0.000000e+00> : vector<2x32xf32>
    %494 = tpu.matmul %483, %347, %cst_182 {dimension_numbers = #tpu.dot_dimension_numbers<[1], [0], [0], [1], [0, 0, 1, 1], [], []>} : vector<2x32xf32>, vector<32x32xf32>, vector<2x32xf32> -> vector<2x32xf32>
    %495 = arith.addf %493, %494 : vector<2x32xf32>
    %496 = arith.negf %486 : vector<2x32xf32>
    %497 = math.exp %496 : vector<2x32xf32>
    %cst_183 = arith.constant 1.000000e+00 : f32
    %498 = vector.broadcast %cst_183 : f32 to vector<2x32xf32>
    %499 = arith.addf %498, %497 : vector<2x32xf32>
    %500 = arith.divf %498, %499 : vector<2x32xf32>
    %501 = arith.negf %489 : vector<2x32xf32>
    %502 = math.exp %501 : vector<2x32xf32>
    %cst_184 = arith.constant 1.000000e+00 : f32
    %503 = vector.broadcast %cst_184 : f32 to vector<2x32xf32>
    %504 = arith.addf %503, %502 : vector<2x32xf32>
    %505 = arith.divf %503, %504 : vector<2x32xf32>
    %506 = math.tanh %492 : vector<2x32xf32>
    %507 = arith.negf %495 : vector<2x32xf32>
    %508 = math.exp %507 : vector<2x32xf32>
    %cst_185 = arith.constant 1.000000e+00 : f32
    %509 = vector.broadcast %cst_185 : f32 to vector<2x32xf32>
    %510 = arith.addf %509, %508 : vector<2x32xf32>
    %511 = arith.divf %509, %510 : vector<2x32xf32>
    %512 = arith.mulf %505, %481 : vector<2x32xf32>
    %513 = arith.mulf %500, %506 : vector<2x32xf32>
    %514 = arith.addf %512, %513 : vector<2x32xf32>
    %515 = math.tanh %514 : vector<2x32xf32>
    %516 = arith.mulf %511, %515 : vector<2x32xf32>
    %517 = vector.extract_strided_slice %318 {offsets = [10, 0], sizes = [2, 32], strides = [1, 1]} : vector<16x32xf32> to vector<2x32xf32>
    %cst_186 = arith.constant dense<0.000000e+00> : vector<2x32xf32>
    %518 = tpu.matmul %516, %341, %cst_186 {dimension_numbers = #tpu.dot_dimension_numbers<[1], [0], [0], [1], [0, 0, 1, 1], [], []>} : vector<2x32xf32>, vector<32x32xf32>, vector<2x32xf32> -> vector<2x32xf32>
    %519 = arith.addf %517, %518 : vector<2x32xf32>
    %520 = vector.extract_strided_slice %325 {offsets = [10, 0], sizes = [2, 32], strides = [1, 1]} : vector<16x32xf32> to vector<2x32xf32>
    %cst_187 = arith.constant dense<0.000000e+00> : vector<2x32xf32>
    %521 = tpu.matmul %516, %343, %cst_187 {dimension_numbers = #tpu.dot_dimension_numbers<[1], [0], [0], [1], [0, 0, 1, 1], [], []>} : vector<2x32xf32>, vector<32x32xf32>, vector<2x32xf32> -> vector<2x32xf32>
    %522 = arith.addf %520, %521 : vector<2x32xf32>
    %523 = vector.extract_strided_slice %332 {offsets = [10, 0], sizes = [2, 32], strides = [1, 1]} : vector<16x32xf32> to vector<2x32xf32>
    %cst_188 = arith.constant dense<0.000000e+00> : vector<2x32xf32>
    %524 = tpu.matmul %516, %345, %cst_188 {dimension_numbers = #tpu.dot_dimension_numbers<[1], [0], [0], [1], [0, 0, 1, 1], [], []>} : vector<2x32xf32>, vector<32x32xf32>, vector<2x32xf32> -> vector<2x32xf32>
    %525 = arith.addf %523, %524 : vector<2x32xf32>
    %526 = vector.extract_strided_slice %339 {offsets = [10, 0], sizes = [2, 32], strides = [1, 1]} : vector<16x32xf32> to vector<2x32xf32>
    %cst_189 = arith.constant dense<0.000000e+00> : vector<2x32xf32>
    %527 = tpu.matmul %516, %347, %cst_189 {dimension_numbers = #tpu.dot_dimension_numbers<[1], [0], [0], [1], [0, 0, 1, 1], [], []>} : vector<2x32xf32>, vector<32x32xf32>, vector<2x32xf32> -> vector<2x32xf32>
    %528 = arith.addf %526, %527 : vector<2x32xf32>
    %529 = arith.negf %519 : vector<2x32xf32>
    %530 = math.exp %529 : vector<2x32xf32>
    %cst_190 = arith.constant 1.000000e+00 : f32
    %531 = vector.broadcast %cst_190 : f32 to vector<2x32xf32>
    %532 = arith.addf %531, %530 : vector<2x32xf32>
    %533 = arith.divf %531, %532 : vector<2x32xf32>
    %534 = arith.negf %522 : vector<2x32xf32>
    %535 = math.exp %534 : vector<2x32xf32>
    %cst_191 = arith.constant 1.000000e+00 : f32
    %536 = vector.broadcast %cst_191 : f32 to vector<2x32xf32>
    %537 = arith.addf %536, %535 : vector<2x32xf32>
    %538 = arith.divf %536, %537 : vector<2x32xf32>
    %539 = math.tanh %525 : vector<2x32xf32>
    %540 = arith.negf %528 : vector<2x32xf32>
    %541 = math.exp %540 : vector<2x32xf32>
    %cst_192 = arith.constant 1.000000e+00 : f32
    %542 = vector.broadcast %cst_192 : f32 to vector<2x32xf32>
    %543 = arith.addf %542, %541 : vector<2x32xf32>
    %544 = arith.divf %542, %543 : vector<2x32xf32>
    %545 = arith.mulf %538, %514 : vector<2x32xf32>
    %546 = arith.mulf %533, %539 : vector<2x32xf32>
    %547 = arith.addf %545, %546 : vector<2x32xf32>
    %548 = math.tanh %547 : vector<2x32xf32>
    %549 = arith.mulf %544, %548 : vector<2x32xf32>
    %550 = vector.extract_strided_slice %318 {offsets = [12, 0], sizes = [2, 32], strides = [1, 1]} : vector<16x32xf32> to vector<2x32xf32>
    %cst_193 = arith.constant dense<0.000000e+00> : vector<2x32xf32>
    %551 = tpu.matmul %549, %341, %cst_193 {dimension_numbers = #tpu.dot_dimension_numbers<[1], [0], [0], [1], [0, 0, 1, 1], [], []>} : vector<2x32xf32>, vector<32x32xf32>, vector<2x32xf32> -> vector<2x32xf32>
    %552 = arith.addf %550, %551 : vector<2x32xf32>
    %553 = vector.extract_strided_slice %325 {offsets = [12, 0], sizes = [2, 32], strides = [1, 1]} : vector<16x32xf32> to vector<2x32xf32>
    %cst_194 = arith.constant dense<0.000000e+00> : vector<2x32xf32>
    %554 = tpu.matmul %549, %343, %cst_194 {dimension_numbers = #tpu.dot_dimension_numbers<[1], [0], [0], [1], [0, 0, 1, 1], [], []>} : vector<2x32xf32>, vector<32x32xf32>, vector<2x32xf32> -> vector<2x32xf32>
    %555 = arith.addf %553, %554 : vector<2x32xf32>
    %556 = vector.extract_strided_slice %332 {offsets = [12, 0], sizes = [2, 32], strides = [1, 1]} : vector<16x32xf32> to vector<2x32xf32>
    %cst_195 = arith.constant dense<0.000000e+00> : vector<2x32xf32>
    %557 = tpu.matmul %549, %345, %cst_195 {dimension_numbers = #tpu.dot_dimension_numbers<[1], [0], [0], [1], [0, 0, 1, 1], [], []>} : vector<2x32xf32>, vector<32x32xf32>, vector<2x32xf32> -> vector<2x32xf32>
    %558 = arith.addf %556, %557 : vector<2x32xf32>
    %559 = vector.extract_strided_slice %339 {offsets = [12, 0], sizes = [2, 32], strides = [1, 1]} : vector<16x32xf32> to vector<2x32xf32>
    %cst_196 = arith.constant dense<0.000000e+00> : vector<2x32xf32>
    %560 = tpu.matmul %549, %347, %cst_196 {dimension_numbers = #tpu.dot_dimension_numbers<[1], [0], [0], [1], [0, 0, 1, 1], [], []>} : vector<2x32xf32>, vector<32x32xf32>, vector<2x32xf32> -> vector<2x32xf32>
    %561 = arith.addf %559, %560 : vector<2x32xf32>
    %562 = arith.negf %552 : vector<2x32xf32>
    %563 = math.exp %562 : vector<2x32xf32>
    %cst_197 = arith.constant 1.000000e+00 : f32
    %564 = vector.broadcast %cst_197 : f32 to vector<2x32xf32>
    %565 = arith.addf %564, %563 : vector<2x32xf32>
    %566 = arith.divf %564, %565 : vector<2x32xf32>
    %567 = arith.negf %555 : vector<2x32xf32>
    %568 = math.exp %567 : vector<2x32xf32>
    %cst_198 = arith.constant 1.000000e+00 : f32
    %569 = vector.broadcast %cst_198 : f32 to vector<2x32xf32>
    %570 = arith.addf %569, %568 : vector<2x32xf32>
    %571 = arith.divf %569, %570 : vector<2x32xf32>
    %572 = math.tanh %558 : vector<2x32xf32>
    %573 = arith.negf %561 : vector<2x32xf32>
    %574 = math.exp %573 : vector<2x32xf32>
    %cst_199 = arith.constant 1.000000e+00 : f32
    %575 = vector.broadcast %cst_199 : f32 to vector<2x32xf32>
    %576 = arith.addf %575, %574 : vector<2x32xf32>
    %577 = arith.divf %575, %576 : vector<2x32xf32>
    %578 = arith.mulf %571, %547 : vector<2x32xf32>
    %579 = arith.mulf %566, %572 : vector<2x32xf32>
    %580 = arith.addf %578, %579 : vector<2x32xf32>
    %581 = math.tanh %580 : vector<2x32xf32>
    %582 = arith.mulf %577, %581 : vector<2x32xf32>
    %583 = vector.extract_strided_slice %318 {offsets = [14, 0], sizes = [2, 32], strides = [1, 1]} : vector<16x32xf32> to vector<2x32xf32>
    %cst_200 = arith.constant dense<0.000000e+00> : vector<2x32xf32>
    %584 = tpu.matmul %582, %341, %cst_200 {dimension_numbers = #tpu.dot_dimension_numbers<[1], [0], [0], [1], [0, 0, 1, 1], [], []>} : vector<2x32xf32>, vector<32x32xf32>, vector<2x32xf32> -> vector<2x32xf32>
    %585 = arith.addf %583, %584 : vector<2x32xf32>
    %586 = vector.extract_strided_slice %325 {offsets = [14, 0], sizes = [2, 32], strides = [1, 1]} : vector<16x32xf32> to vector<2x32xf32>
    %cst_201 = arith.constant dense<0.000000e+00> : vector<2x32xf32>
    %587 = tpu.matmul %582, %343, %cst_201 {dimension_numbers = #tpu.dot_dimension_numbers<[1], [0], [0], [1], [0, 0, 1, 1], [], []>} : vector<2x32xf32>, vector<32x32xf32>, vector<2x32xf32> -> vector<2x32xf32>
    %588 = arith.addf %586, %587 : vector<2x32xf32>
    %589 = vector.extract_strided_slice %332 {offsets = [14, 0], sizes = [2, 32], strides = [1, 1]} : vector<16x32xf32> to vector<2x32xf32>
    %cst_202 = arith.constant dense<0.000000e+00> : vector<2x32xf32>
    %590 = tpu.matmul %582, %345, %cst_202 {dimension_numbers = #tpu.dot_dimension_numbers<[1], [0], [0], [1], [0, 0, 1, 1], [], []>} : vector<2x32xf32>, vector<32x32xf32>, vector<2x32xf32> -> vector<2x32xf32>
    %591 = arith.addf %589, %590 : vector<2x32xf32>
    %592 = vector.extract_strided_slice %339 {offsets = [14, 0], sizes = [2, 32], strides = [1, 1]} : vector<16x32xf32> to vector<2x32xf32>
    %cst_203 = arith.constant dense<0.000000e+00> : vector<2x32xf32>
    %593 = tpu.matmul %582, %347, %cst_203 {dimension_numbers = #tpu.dot_dimension_numbers<[1], [0], [0], [1], [0, 0, 1, 1], [], []>} : vector<2x32xf32>, vector<32x32xf32>, vector<2x32xf32> -> vector<2x32xf32>
    %594 = arith.addf %592, %593 : vector<2x32xf32>
    %595 = arith.negf %585 : vector<2x32xf32>
    %596 = math.exp %595 : vector<2x32xf32>
    %cst_204 = arith.constant 1.000000e+00 : f32
    %597 = vector.broadcast %cst_204 : f32 to vector<2x32xf32>
    %598 = arith.addf %597, %596 : vector<2x32xf32>
    %599 = arith.divf %597, %598 : vector<2x32xf32>
    %600 = arith.negf %588 : vector<2x32xf32>
    %601 = math.exp %600 : vector<2x32xf32>
    %cst_205 = arith.constant 1.000000e+00 : f32
    %602 = vector.broadcast %cst_205 : f32 to vector<2x32xf32>
    %603 = arith.addf %602, %601 : vector<2x32xf32>
    %604 = arith.divf %602, %603 : vector<2x32xf32>
    %605 = math.tanh %591 : vector<2x32xf32>
    %606 = arith.negf %594 : vector<2x32xf32>
    %607 = math.exp %606 : vector<2x32xf32>
    %cst_206 = arith.constant 1.000000e+00 : f32
    %608 = vector.broadcast %cst_206 : f32 to vector<2x32xf32>
    %609 = arith.addf %608, %607 : vector<2x32xf32>
    %610 = arith.divf %608, %609 : vector<2x32xf32>
    %611 = arith.mulf %604, %580 : vector<2x32xf32>
    %612 = arith.mulf %599, %605 : vector<2x32xf32>
    %613 = arith.addf %611, %612 : vector<2x32xf32>
    %614 = math.tanh %613 : vector<2x32xf32>
    %615 = arith.mulf %610, %614 : vector<2x32xf32>
    %c1_207 = arith.constant 1 : index
    %c0_208 = arith.constant 0 : index
    %c0_209 = arith.constant 0 : index
    %616 = vector.load %arg12[%c1_207, %c0_208, %c0_209] : memref<2x2x32xf32, #tpu.memory_space<vmem>>, vector<1x2x32xf32>
    %617 = vector.shape_cast %616 : vector<1x2x32xf32> to vector<2x32xf32>
    %618 = vector.shape_cast %615 : vector<2x32xf32> to vector<1x2x32xf32>
    tpu.vector_store %arg12[%c1_207, %c0_208, %c0_209], %618 {strides = array<i32>} : memref<2x2x32xf32, #tpu.memory_space<vmem>>, vector<1x2x32xf32>,
    %c1_210 = arith.constant 1 : index
    %c0_211 = arith.constant 0 : index
    %c0_212 = arith.constant 0 : index
    %619 = vector.load %arg13[%c1_210, %c0_211, %c0_212] : memref<2x2x32xf32, #tpu.memory_space<vmem>>, vector<1x2x32xf32>
    %620 = vector.shape_cast %619 : vector<1x2x32xf32> to vector<2x32xf32>
    %621 = vector.shape_cast %613 : vector<2x32xf32> to vector<1x2x32xf32>
    tpu.vector_store %arg13[%c1_210, %c0_211, %c0_212], %621 {strides = array<i32>} : memref<2x2x32xf32, #tpu.memory_space<vmem>>, vector<1x2x32xf32>,
    %c0_213 = arith.constant 0 : index
    %c0_214 = arith.constant 0 : index
    %622 = vector.load %arg9[%c0_213, %c0_214] : memref<32x50xf32, #tpu.memory_space<vmem>>, vector<32x50xf32>
    %cst_215 = arith.constant dense<0.000000e+00> : vector<2x50xf32>
    %623 = tpu.matmul %615, %622, %cst_215 {dimension_numbers = #tpu.dot_dimension_numbers<[1], [0], [0], [1], [0, 0, 1, 1], [], []>} : vector<2x32xf32>, vector<32x50xf32>, vector<2x50xf32> -> vector<2x50xf32>
    %c0_216 = arith.constant 0 : index
    %c0_217 = arith.constant 0 : index
    %624 = vector.load %arg10[%c0_216, %c0_217] : memref<1x50xf32, #tpu.memory_space<vmem>>, vector<1x50xf32>
    %625 = vector.broadcast %624 : vector<1x50xf32> to vector<2x50xf32>
    %626 = arith.addf %623, %625 : vector<2x50xf32>
    %c0_218 = arith.constant 0 : index
    %c0_219 = arith.constant 0 : index
    %627 = vector.load %arg11[%c0_218, %c0_219] : memref<2x50xf32, #tpu.memory_space<vmem>>, vector<2x50xf32>
    tpu.vector_store %arg11[%c0_218, %c0_219], %626 {strides = array<i32>} : memref<2x50xf32, #tpu.memory_space<vmem>>, vector<2x50xf32>,
    return
  }
}

</mosaic_0001>

<bundles_post_ra>
// kernel: rnn_forward.1
= control target key start
LH: loop header
LB: loop body
LE: loop exit
PB: predicated region body
PF: predicated region fallthrough
CT: control target
= control target key end

     0   :  { %19 = vsyncpa [#allocation3], 0  ;;  %s9330_s0 = inlined_call_operand.vmem [shape: f32[16,32], index: 0, kind: input, shape index: {}]   ;;  %s9331_s1 = inlined_call_operand.vmem [shape: f32[4,32,32], index: 1, kind: input, shape index: {}]   ;;  %s9332_s2 = inlined_call_operand.vmem [shape: f32[4,32,32], index: 2, kind: input, shape index: {}]   ;;  %s9333_s3 = inlined_call_operand.vmem [shape: f32[4,1,32], index: 3, kind: input, shape index: {}]   ;;  %s9334_s4 = inlined_call_operand.hbm [shape: f32[4,32,32], index: 4, kind: input, shape index: {}]   ;;  %s9335_s5 = inlined_call_operand.hbm [shape: f32[4,32,32], index: 5, kind: input, shape index: {}]   ;;  %s9336_s6 = inlined_call_operand.vmem [shape: f32[4,1,32], index: 6, kind: input, shape index: {}]   ;;  %s9337_s7 = inlined_call_operand.vmem [shape: f32[2,2,32], index: 7, kind: input, shape index: {}]   ;;  %s9338_s8 = inlined_call_operand.vmem [shape: f32[2,2,32], index: 8, kind: input, shape index: {}]   ;;  %s9339_s9 = inlined_call_operand.vmem [shape: f32[32,50], index: 9, kind: input, shape index: {}]   ;;  %s9340_s10 = inlined_call_operand.vmem [shape: f32[1,50], index: 10, kind: input, shape index: {}]   ;;  %s9341_s11 = inlined_call_operand.hbm [shape: f32[2,50], index: 11, kind: output, shape index: {0}]   ;;  %s9342_s12 = inlined_call_operand.hbm [shape: f32[2,2,32], index: 12, kind: output, shape index: {1}]   ;;  %s9343_s13 = inlined_call_operand.hbm [shape: f32[2,2,32], index: 13, kind: output, shape index: {2}]  }
   0x1   :  { %20 = vsyncpa [#allocation6], 0 }
   0x2   :  { %21 = vsyncpa [#allocation4], 0 }
   0x3   :  { %22 = vsyncpa [#allocation9], 0  ;;  %s8338_s25 = smov [#allocation2]   ;;  %s8220_s29 = scalar_lea.hbm %s9334_s4, 2048 }
   0x4   :  { %s36_s26 = sshll.u32 %s8338_s25, 4  ;;  %p8221_p0 = scmp.ne.s32.totalorder %s9334_s4, %s8220_s29  ;;  %s37_s26 = int_to_ptr.vmem [resolvable:$true] %s36_s26 }
   0x5   :  { %p8224_p1 = scmp.lt.u32.totalorder %s8220_s29, %s9334_s4 }
   0x7   :  { %p8226_p2 = pnand %p8224_p1, %p8221_p0 }
   0x9   :  { %8229 = shalt.err (!%p8226_p2)
}
   0xa   :  { %s8230_s17 = scalar_lea.vmem %s37_s26, 2048  ;;  %p8235_p4 = scmp.lt.s32.totalorder %s37_s26, %s37_s26 }
   0xb   :  { %p8231_p3 = scmp.ne.s32.totalorder %s37_s26, %s8230_s17  ;;  %p8236_p5 = scmp.lt.s32.totalorder %s8230_s17, %s8230_s17 }
   0xd   :  { %p8237_p6 = por %p8236_p5, %p8235_p4 }
   0xf   :  { %p8238_p7 = pnand %p8237_p6, %p8231_p3 }
  0x11   :  { %8241 = shalt.err (!%p8238_p7)
}
  0x12   :  { %s8339_s18 = smov 128   ;;  %s8340_s19 = smov 8  }
  0x13   :  { %42 = dma.hbm_to_vmem [thread:$0]  %s9334_s4, 2048, %s37_s26, [#allocation3], %s8339_s18, %s8339_s18, %s8340_s19  }
  0x14   :  { %s8341_s22 = smov [#allocation5]   ;;  %s8242_s27 = scalar_lea.hbm %s9335_s5, 2048 }
  0x15   :  { %s48_s23 = sshll.u32 %s8341_s22, 4  ;;  %p8243_p8 = scmp.ne.s32.totalorder %s9335_s5, %s8242_s27  ;;  %s49_s23 = int_to_ptr.vmem [resolvable:$true] %s48_s23 }
  0x16   :  { %p8246_p9 = scmp.lt.u32.totalorder %s8242_s27, %s9335_s5 }
  0x18   :  { %p8248_p10 = pnand %p8246_p9, %p8243_p8 }
  0x1a   :  { %8251 = shalt.err (!%p8248_p10)
}
  0x1b   :  { %s8252_s15 = scalar_lea.vmem %s49_s23, 2048  ;;  %p8257_p12 = scmp.lt.s32.totalorder %s49_s23, %s49_s23 }
  0x1c   :  { %p8253_p11 = scmp.ne.s32.totalorder %s49_s23, %s8252_s15  ;;  %p8258_p13 = scmp.lt.s32.totalorder %s8252_s15, %s8252_s15 }
  0x1e   :  { %p8259_p0 = por %p8258_p13, %p8257_p12 }
  0x20   :  { %p8260_p1 = pnand %p8259_p0, %p8253_p11 }
  0x22   :  { %8263 = shalt.err (!%p8260_p1)
}
  0x23   :  { %54 = dma.hbm_to_vmem [thread:$0]  %s9335_s5, 2048, %s49_s23, [#allocation6], %s8339_s18, %s8339_s18, %s8340_s19  }
  0x24   :  { %8330 = dma.done.wait [#allocation3], 2048  }
  0x25   :  { %8331 = vsyncadd [#allocation3], 4294965248 }
  0x26   :  { %8332 = dma.done.wait [#allocation6], 2048  }
  0x27   :  { %8333 = vsyncadd [#allocation6], 4294965248  ;;  %v73_v0 = vld [vmem:[%s9331_s1] sm:$0xff]  ;;  %v74_v1 = vld [vmem:[%s9331_s1 + $0x8] sm:$0xff]  ;;  %vm84_vm0 = vcmask 261120   ;;  %v8342_v31 = vmov 0.0|0.0  }
  0x28   :  { %v6155_v2 = vld [vmem:[%s9331_s1 + $0x20] sm:$0xff]  ;;  %v7498_v3 = vpack.c.bf16 %v74_v1, %v73_v0  ;;  %v6156_v4 = vld [vmem:[%s9331_s1 + $0x28] sm:$0xff]  ;;  %v75_v5 = vld [vmem:[%s9331_s1 + $0x10] sm:$0xff]  ;;  %vm8343_vm1 = vmmov 0   ;;  %v8344_v41 = vmov 0.0   ;;  %vm3040_vm2 = vcmask 1041408  }
  0x29   :  { %v76_v6 = vld [vmem:[%s9331_s1 + $0x18] sm:$0xff]  ;;  %v7506_v7 = vpack.c.bf16 %v6156_v4, %v6155_v2  ;;  %v6157_v9 = vld [vmem:[%s9331_s1 + $0x30] sm:$0xff]  ;;  %v71_v11 = vld [vmem:[%s9330_s0] sm:$0xff]  ;;  %vm3042_vm3 = vcmask 1043456   ;;  %vm3044_vm4 = vcmask 1045504   ;;  %vm3037_vm5 = vcmask 261126  }
  0x2a   :  { %v7502_v8 = vpack.c.bf16 %v76_v6, %v75_v5  ;;  %v6158_v10 = vld [vmem:[%s9331_s1 + $0x38] sm:$0xff]  ;;  %7499 = vmatprep.subr.bf16.mxu0 %v7498_v3  ;;  %6703 = vmatprep.mubr.msk.f32.mxu0 %vm84_vm0, %v71_v11  ;;  %v6163_v13 = vld [vmem:[%s9331_s1 + $0x40] sm:$0xff]  ;;  %v6164_v14 = vld [vmem:[%s9331_s1 + $0x48] sm:$0xff] }
  0x2b   :  { %v7510_v12 = vpack.c.bf16 %v6158_v10, %v6157_v9  ;;  %7507 = vmatprep.subr.bf16.mxu1 %v7506_v7  ;;  %7501 = vmatpush3.bf16.msra.mxu0 %v7498_v3  ;;  %v6171_v15 = vld [vmem:[%s9331_s1 + $0x60] sm:$0xff]  ;;  %v6172_v16 = vld [vmem:[%s9331_s1 + $0x68] sm:$0xff]  ;;  %v7514_v17 = vpack.c.bf16 %v6164_v14, %v6163_v13  ;;  %v6165_v19 = vld [vmem:[%s9331_s1 + $0x50] sm:$0xff] }
  0x2c   :  { %7509 = vmatpush3.bf16.msra.mxu1 %v7506_v7  ;;  %7503 = vmatprep.subr.bf16.mxu0 %v7502_v8  ;;  %v7522_v18 = vpack.c.bf16 %v6172_v16, %v6171_v15  ;;  %v6166_v20 = vld [vmem:[%s9331_s1 + $0x58] sm:$0xff]  ;;  %v6173_v21 = vld [vmem:[%s9331_s1 + $0x70] sm:$0xff]  ;;  %v72_v23 = vld [vmem:[%s9330_s0 + $0x8] sm:$0xff] }
  0x2d   :  { %7511 = vmatprep.subr.bf16.mxu1 %v7510_v12  ;;  %6714 = vmatprep.mubr.msk.f32.mxu1 %vm84_vm0, %v71_v11  ;;  %v6174_v22 = vld [vmem:[%s9331_s1 + $0x78] sm:$0xff]  ;;  %v7518_v24 = vpack.c.bf16 %v6166_v20, %v6165_v19  ;;  %v430_v26 = vld [vmem:[%s9332_s2] sm:$0xff]  ;;  %v431_v27 = vld [vmem:[%s9332_s2 + $0x8] sm:$0xff] }
  0x2e   :  { %v7526_v25 = vpack.c.bf16 %v6174_v22, %v6173_v21  ;;  %v6179_v28 = vld [vmem:[%s9332_s2 + $0x20] sm:$0xff]  ;;  %v6180_v29 = vld [vmem:[%s9332_s2 + $0x28] sm:$0xff]  ;;  %v8516_v30 = vpack.c.bf16 %v431_v27, %v430_v26  ;;  %v432_v33 = vld [vmem:[%s9332_s2 + $0x10] sm:$0xff] }
  0x2f   :  { %7505 = vmatpush3.bf16.msra.mxu0 %v7502_v8  ;;  %v8519_v32 = vpack.c.bf16 %v6180_v29, %v6179_v28  ;;  %v433_v34 = vld [vmem:[%s9332_s2 + $0x18] sm:$0xff]  ;;  %v6181_v35 = vld [vmem:[%s9332_s2 + $0x30] sm:$0xff]  ;;  %v6183_v39 = vld [vmem:[%s9332_s2 + $0x40] sm:$0xff] }
  0x30   :  { %7513 = vmatpush3.bf16.msra.mxu1 %v7510_v12  ;;  %7515 = vmatprep.subr.bf16.mxu0 %v7514_v17  ;;  %v6182_v36 = vld [vmem:[%s9332_s2 + $0x38] sm:$0xff]  ;;  %v8537_v37 = vpack.c.bf16 %v433_v34, %v432_v33  ;;  %v6184_v40 = vld [vmem:[%s9332_s2 + $0x48] sm:$0xff]  ;;  %v6187_v42 = vld [vmem:[%s9332_s2 + $0x60] sm:$0xff] }
  0x31   :  { %7523 = vmatprep.subr.bf16.mxu1 %v7522_v18  ;;  %v8541_v38 = vpack.c.bf16 %v6182_v36, %v6181_v35  ;;  %v6188_v43 = vld [vmem:[%s9332_s2 + $0x68] sm:$0xff]  ;;  %v449_v44 = vld [vmem:[%s9337_s7] sm:$0x3]  ;;  %v8564_v45 = vpack.c.bf16 %v6184_v40, %v6183_v39  ;;  %v6185_v47 = vld [vmem:[%s9332_s2 + $0x50] sm:$0xff] }
  0x32   :  { %6704 = vmatmul.mubr.msk.f32.vlgmr.msra.gmra.mrb[0].mxu0 %vm84_vm0, %v72_v23  ;;  %v8568_v46 = vpack.c.bf16 %v6188_v43, %v6187_v42  ;;  %v6186_v48 = vld [vmem:[%s9332_s2 + $0x58] sm:$0xff]  ;;  %v6189_v49 = vld [vmem:[%s9332_s2 + $0x70] sm:$0xff]  ;;  %v6152_v53 = vld [vmem:[%s9333_s3] ss:$0 sm:$0xff] }
  0x33   :  { %6715 = vmatmul.mubr.msk.f32.vlgmr.msra.gmra.mrb[0].mxu1 %vm84_vm0, %v72_v23  ;;  %7517 = vmatpush3.bf16.msra.mxu0 %v7514_v17  ;;  %v6190_v50 = vld [vmem:[%s9332_s2 + $0x78] sm:$0xff]  ;;  %v8586_v51 = vpack.c.bf16 %v6186_v48, %v6185_v47  ;;  %v6160_v54 = vld [vmem:[%s9333_s3 + $0x1] ss:$0 sm:$0xff]  ;;  %v6168_v61 = vld [vmem:[%s9333_s3 + $0x2] ss:$0 sm:$0xff] }
  0x34   :  { %7525 = vmatpush3.bf16.msra.mxu1 %v7522_v18  ;;  %7519 = vmatprep.subr.bf16.mxu0 %v7518_v24  ;;  %v8590_v52 = vpack.c.bf16 %v6190_v50, %v6189_v49  ;;  %v6176_v62 = vld [vmem:[%s9333_s3 + $0x3] ss:$0 sm:$0xff]  ;;  %v450_v33 = vld [vmem:[%s9338_s8] sm:$0x3] }
  0x35   :  { %7527 = vmatprep.subr.bf16.mxu1 %v7526_v25  ;;  %6725 = vmatprep.mubr.msk.f32.mxu0 %vm84_vm0, %v71_v11 }
  0x36   :  { %6736 = vmatprep.mubr.msk.f32.mxu1 %vm84_vm0, %v71_v11 }
  0x37   :  { %7521 = vmatpush3.bf16.msra.mxu0 %v7518_v24 }
  0x38   :  { %7529 = vmatpush3.bf16.msra.mxu1 %v7526_v25  ;;  %7530 = vmatprep.subr.bf16.mxu0 %v8342_v31 }
  0x39   :  { %7536 = vmatprep.subr.bf16.mxu1 %v8342_v31 }
  0x3a   :  { %6726 = vmatmul.mubr.msk.f32.vlgmr.msra.gmra.mrb[2].mxu0 %vm84_vm0, %v72_v23 }
  0x3b   :  { %6737 = vmatmul.mubr.msk.f32.vlgmr.msra.gmra.mrb[2].mxu1 %vm84_vm0, %v72_v23  ;;  %7532 = vmatpush3.bf16.msra.mxu0 %v8516_v30 }
  0x3c   :  { %7538 = vmatpush3.bf16.msra.mxu1 %v8519_v32  ;;  %7533 = vmatprep.subr.bf16.mxu0 %v8342_v31 }
  0x3d   :  { %7539 = vmatprep.subr.bf16.mxu1 %v8342_v31  ;;  %6747 = vmatprep.mubr.msk.f32.mxu0 %vm8343_vm1, %v8344_v41 }
  0x3e   :  { %6758 = vmatprep.mubr.msk.f32.mxu1 %vm8343_vm1, %v8344_v41 }
  0x3f   :  { %7535 = vmatpush3.bf16.msra.mxu0 %v8537_v37 }
  0x40   :  { %7541 = vmatpush3.bf16.msra.mxu1 %v8541_v38  ;;  %7542 = vmatprep.subr.bf16.mxu0 %v8342_v31 }
  0x41   :  { %7548 = vmatprep.subr.bf16.mxu1 %v8342_v31 }
  0x42   :  { %6748 = vmatmul.mubr.msk.f32.vlgmr.msra.gmra.mrb[4].mxu0 %vm84_vm0, %v449_v44 }
  0x43   :  { %6759 = vmatmul.mubr.msk.f32.vlgmr.msra.gmra.mrb[4].mxu1 %vm84_vm0, %v449_v44  ;;  %7544 = vmatpush3.bf16.msra.mxu0 %v8564_v45 }
  0x44   :  { %7550 = vmatpush3.bf16.msra.mxu1 %v8568_v46  ;;  %7545 = vmatprep.subr.bf16.mxu0 %v8342_v31 }
  0x45   :  { %7551 = vmatprep.subr.bf16.mxu1 %v8342_v31  ;;  %6769 = vmatprep.mubr.msk.f32.mxu0 %vm8343_vm1, %v8344_v41 }
  0x46   :  { %6780 = vmatprep.mubr.msk.f32.mxu1 %vm8343_vm1, %v8344_v41 }
  0x47   :  { %7547 = vmatpush3.bf16.msra.mxu0 %v8586_v51 }
  0x48   :  { %7553 = vmatpush3.bf16.msra.mxu1 %v8590_v52  ;;  %7554 = vmatprep.subr.bf16.mxu0 %v8342_v31 }
  0x49   :  { %7560 = vmatprep.subr.bf16.mxu1 %v8342_v31 }
  0x4a   :  { %6770 = vmatmul.mubr.msk.f32.vlgmr.msra.gmra.mrb[6].mxu0 %vm84_vm0, %v449_v44 }
  0x4b   :  { %6781 = vmatmul.mubr.msk.f32.vlgmr.msra.gmra.mrb[6].mxu1 %vm84_vm0, %v449_v44  ;;  %7556 = vmatpush3.bf16.msra.mxu0 %v8516_v30 }
  0x4c   :  { %7562 = vmatpush3.bf16.msra.mxu1 %v8519_v32  ;;  %7557 = vmatprep.subr.bf16.mxu0 %v8342_v31 }
  0x4d   :  { %7563 = vmatprep.subr.bf16.mxu1 %v8342_v31  ;;  %6791 = vmatprep.mubr.msk.f32.mxu0 %vm8343_vm1, %v8344_v41 }
  0x4e   :  { %6802 = vmatprep.mubr.msk.f32.mxu1 %vm8343_vm1, %v8344_v41 }
  0x4f   :  { %7559 = vmatpush3.bf16.msra.mxu0 %v8537_v37 }
  0x50   :  { %7565 = vmatpush3.bf16.msra.mxu1 %v8541_v38  ;;  %7566 = vmatprep.subr.bf16.mxu0 %v8342_v31 }
  0x51   :  { %7572 = vmatprep.subr.bf16.mxu1 %v8342_v31 }
 0x105   :  { %v6705_v55 = vpop.f32.mrb[0].mxu0 }
 0x106   :  { %v8621_v56 = vadd.f32 %v6705_v55, %v6152_v53  ;;  %v6716_v57 = vpop.f32.mrb[0].mxu1  ;;  %v157_v58 = vpop.f32.mrb[1].mxu0 }
 0x107   :  { %v8623_v59 = vadd.f32 %v6716_v57, %v6160_v54  ;;  %v245_v60 = vpop.f32.mrb[1].mxu1  ;;  %v8635_v5 = vadd.f32 %v6152_v53, %v157_v58 }
 0x108   :  { %v8637_v6 = vadd.f32 %v6160_v54, %v245_v60 }
 0x10d   :  { %v6727_v63 = vpop.f32.mrb[2].mxu0 }
 0x10e   :  { %v8631_v0 = vadd.f32 %v6727_v63, %v6168_v61  ;;  %v6738_v1 = vpop.f32.mrb[2].mxu1  ;;  %v333_v2 = vpop.f32.mrb[3].mxu0 }
 0x10f   :  { %v8633_v3 = vadd.f32 %v6738_v1, %v6176_v62  ;;  %v421_v4 = vpop.f32.mrb[3].mxu1  ;;  %v8644_v21 = vadd.f32 %v6168_v61, %v333_v2 }
 0x110   :  { %v8641_v15 = vadd.f32 %v6176_v62, %v421_v4 }
 0x115   :  { %v520_v7 = vpop.f32.mrb[4].mxu0 }
 0x116   :  { %v524_v8 = vadd.f32 %v520_v7, %v8635_v5  ;;  %v591_v9 = vpop.f32.mrb[4].mxu1  ;;  %v6749_v10 = vpop.f32.mrb[5].mxu0 }
 0x117   :  { %v595_v11 = vadd.f32 %v591_v9, %v8637_v6  ;;  %v6760_v12 = vpop.f32.mrb[5].mxu1 }
 0x118   :  { %v6195_v13 = vmul.f32 -1.442695, %v524_v8 }
 0x119   :  { %v6196_v14 = vmul.f32 -1.442695, %v595_v11 }
 0x11a   :  { %7964 = vpow2.f32 %v6195_v13 }
 0x11b   :  { %7966 = vpow2.f32 %v6196_v14 }
 0x11d   :  { %v662_v16 = vpop.f32.mrb[6].mxu0 }
 0x11e   :  { %v733_v17 = vpop.f32.mrb[6].mxu1  ;;  %v6771_v18 = vpop.f32.mrb[7].mxu0  ;;  %v666_v23 = vadd.f32 %v662_v16, %v8644_v21 }
 0x11f   :  { %v737_v19 = vadd.f32 %v733_v17, %v8641_v15  ;;  %v6782_v20 = vpop.f32.mrb[7].mxu1 }
 0x121   :  { %v6197_v22 = vmul.f32 -1.442695, %v737_v19 }
 0x123   :  { %7968 = vpow2.f32 %v6197_v22 }
 0x124   :  { %v7965_v24 = vpop.eup %7964  ;;  %7970 = vtanh.f32 %v666_v23 }
 0x125   :  { %v7967_v25 = vpop.eup %7966  ;;  %v741_v26 = vadd.f32 1.0, %v7965_v24 }
 0x126   :  { %v747_v27 = vadd.f32 1.0, %v7967_v25 }
 0x127   :  { %7972 = vrcp.f32 %v741_v26 }
 0x128   :  { %7974 = vrcp.f32 %v747_v27 }
 0x12d   :  { %v7969_v28 = vpop.eup %7968 }
 0x12e   :  { %v7971_v29 = vpop.eup %7970  ;;  %v754_v39 = vadd.f32 1.0, %v7969_v28 }
 0x130   :  { %7976 = vrcp.f32 %v754_v39 }
 0x131   :  { %v7973_v34 = vpop.eup %7972 }
 0x132   :  { %v7975_v35 = vpop.eup %7974  ;;  %v758_v36 = vmul.f32 %v7973_v34, %v7971_v29 }
 0x133   :  { %v757_v40 = vmul.f32 %v7975_v35, %v450_v33 }
 0x135   :  { %v8650_v42 = vadd.f32 %v758_v36, %v757_v40 }
 0x137   :  { %7978 = vtanh.f32 %v8650_v42  ;;  %v1081_v19 = vrot.slane %v8650_v42, 6 }
 0x13a   :  { %v7977_v43 = vpop.eup %7976 }
 0x141   :  { %v7979_v44 = vpop.eup %7978 }
 0x142   :  { %v8653_v47 = vmul.f32 %v7979_v44, %v7977_v43 }
 0x144   :  { %6792 = vmatmul.mubr.msk.f32.vlgmr.msra.gmra.mrb[8].mxu0 %vm84_vm0, %v8653_v47  ;;  %6803 = vmatmul.mubr.msk.f32.vlgmr.msra.gmra.mrb[8].mxu1 %vm84_vm0, %v8653_v47 }
 0x145   :  { %7568 = vmatpush3.bf16.msra.mxu0 %v8564_v45  ;;  %7574 = vmatpush3.bf16.msra.mxu1 %v8568_v46 }
 0x146   :  { %7569 = vmatprep.subr.bf16.mxu0 %v8342_v31  ;;  %7575 = vmatprep.subr.bf16.mxu1 %v8342_v31 }
 0x147   :  { %6813 = vmatprep.mubr.msk.f32.mxu0 %vm8343_vm1, %v8344_v41  ;;  %6824 = vmatprep.mubr.msk.f32.mxu1 %vm8343_vm1, %v8344_v41 }
 0x149   :  { %7571 = vmatpush3.bf16.msra.mxu0 %v8586_v51  ;;  %7577 = vmatpush3.bf16.msra.mxu1 %v8590_v52 }
 0x14a   :  { %7578 = vmatprep.subr.bf16.mxu0 %v8342_v31  ;;  %7584 = vmatprep.subr.bf16.mxu1 %v8342_v31 }
 0x14c   :  { %6814 = vmatmul.mubr.msk.f32.vlgmr.msra.gmra.mrb[10].mxu0 %vm84_vm0, %v8653_v47  ;;  %6825 = vmatmul.mubr.msk.f32.vlgmr.msra.gmra.mrb[10].mxu1 %vm84_vm0, %v8653_v47 }
 0x14d   :  { %7580 = vmatpush3.bf16.msra.mxu0 %v8516_v30  ;;  %7586 = vmatpush3.bf16.msra.mxu1 %v8519_v32 }
 0x14e   :  { %7581 = vmatprep.subr.bf16.mxu0 %v8342_v31  ;;  %7587 = vmatprep.subr.bf16.mxu1 %v8342_v31 }
 0x14f   :  { %6835 = vmatprep.mubr.msk.f32.mxu0 %vm8343_vm1, %v8344_v41  ;;  %6846 = vmatprep.mubr.msk.f32.mxu1 %vm8343_vm1, %v8344_v41 }
 0x151   :  { %7583 = vmatpush3.bf16.msra.mxu0 %v8537_v37  ;;  %7589 = vmatpush3.bf16.msra.mxu1 %v8541_v38 }
 0x152   :  { %7590 = vmatprep.subr.bf16.mxu0 %v8342_v31  ;;  %7596 = vmatprep.subr.bf16.mxu1 %v8342_v31 }
 0x217   :  { %v831_v48 = vpop.f32.mrb[8].mxu0  ;;  %v905_v49 = vpop.f32.mrb[8].mxu1 }
 0x218   :  { %v836_v50 = vrot.slane %v831_v48, 6  ;;  %v910_v53 = vrot.slane %v905_v49, 6  ;;  %v6793_v54 = vpop.f32.mrb[9].mxu0  ;;  %v6804_v55 = vpop.f32.mrb[9].mxu1 }
 0x21a   :  { %v838_v57 = vadd.f32 %v836_v50, %v8635_v5  ;;  %v912_v58 = vadd.f32 %v910_v53, %v8637_v6 }
 0x21c   :  { %v6202_v60 = vmul.f32 -1.442695, %v838_v57  ;;  %v6203_v61 = vmul.f32 -1.442695, %v912_v58 }
 0x21e   :  { %7980 = vpow2.f32 %v6202_v60 }
 0x21f   :  { %7982 = vpow2.f32 %v6203_v61  ;;  %v979_v62 = vpop.f32.mrb[10].mxu0  ;;  %v1053_v63 = vpop.f32.mrb[10].mxu1 }
 0x220   :  { %v1058_v1 = vrot.slane %v1053_v63, 6  ;;  %v6815_v2 = vpop.f32.mrb[11].mxu0  ;;  %v6826_v4 = vpop.f32.mrb[11].mxu1  ;;  %v984_v7 = vrot.slane %v979_v62, 6 }
 0x222   :  { %v1060_v8 = vadd.f32 %v1058_v1, %v8641_v15  ;;  %v986_v10 = vadd.f32 %v984_v7, %v8644_v21 }
 0x224   :  { %v6204_v9 = vmul.f32 -1.442695, %v1060_v8 }
 0x226   :  { %7984 = vpow2.f32 %v6204_v9 }
 0x227   :  { %7986 = vtanh.f32 %v986_v10 }
 0x228   :  { %v7981_v11 = vpop.eup %7980 }
 0x229   :  { %v7983_v12 = vpop.eup %7982  ;;  %v1064_v13 = vadd.f32 1.0, %v7981_v11 }
 0x22a   :  { %v1070_v14 = vadd.f32 1.0, %v7983_v12 }
 0x22b   :  { %7988 = vrcp.f32 %v1064_v13 }
 0x22c   :  { %7990 = vrcp.f32 %v1070_v14 }
 0x230   :  { %v7985_v16 = vpop.eup %7984 }
 0x231   :  { %v7987_v17 = vpop.eup %7986  ;;  %v1077_v23 = vadd.f32 1.0, %v7985_v16 }
 0x233   :  { %7992 = vrcp.f32 %v1077_v23 }
 0x235   :  { %v7989_v18 = vpop.eup %7988 }
 0x236   :  { %v7991_v20 = vpop.eup %7990  ;;  %v1084_v22 = vmul.f32 %v7989_v18, %v7987_v17 }
 0x237   :  { %v1083_v24 = vmul.f32 %v7991_v20, %v1081_v19 }
 0x239   :  { %v8692_v25 = vadd.f32 %v1084_v22, %v1083_v24 }
 0x23b   :  { %7994 = vtanh.f32 %v8692_v25  ;;  %v1408_v9 = vrot.slane %v8692_v25, 6 }
 0x23d   :  { %v7993_v26 = vpop.eup %7992 }
 0x245   :  { %v7995_v27 = vpop.eup %7994 }
 0x246   :  { %v8695_v28 = vmul.f32 %v7995_v27, %v7993_v26 }
 0x248   :  { %v1089_v29 = vrot.slane %v8695_v28, 2  ;;  %v3041_v19 = vsel %vm3040_vm2, %v8653_v47, %v8695_v28 }
 0x24a   :  { %6836 = vmatmul.mubr.msk.f32.vlgmr.msra.gmra.mrb[12].mxu0 %vm84_vm0, %v1089_v29  ;;  %6847 = vmatmul.mubr.msk.f32.vlgmr.msra.gmra.mrb[12].mxu1 %vm84_vm0, %v1089_v29 }
 0x24b   :  { %7592 = vmatpush3.bf16.msra.mxu0 %v8564_v45  ;;  %7598 = vmatpush3.bf16.msra.mxu1 %v8568_v46 }
 0x24c   :  { %7593 = vmatprep.subr.bf16.mxu0 %v8342_v31  ;;  %7599 = vmatprep.subr.bf16.mxu1 %v8342_v31 }
 0x24d   :  { %6857 = vmatprep.mubr.msk.f32.mxu0 %vm8343_vm1, %v8344_v41  ;;  %6868 = vmatprep.mubr.msk.f32.mxu1 %vm8343_vm1, %v8344_v41 }
 0x24f   :  { %7595 = vmatpush3.bf16.msra.mxu0 %v8586_v51  ;;  %7601 = vmatpush3.bf16.msra.mxu1 %v8590_v52 }
 0x250   :  { %7602 = vmatprep.subr.bf16.mxu0 %v8342_v31  ;;  %7608 = vmatprep.subr.bf16.mxu1 %v8342_v31 }
 0x252   :  { %6858 = vmatmul.mubr.msk.f32.vlgmr.msra.gmra.mrb[14].mxu0 %vm84_vm0, %v1089_v29  ;;  %6869 = vmatmul.mubr.msk.f32.vlgmr.msra.gmra.mrb[14].mxu1 %vm84_vm0, %v1089_v29 }
 0x253   :  { %7604 = vmatpush3.bf16.msra.mxu0 %v8516_v30  ;;  %7610 = vmatpush3.bf16.msra.mxu1 %v8519_v32 }
 0x254   :  { %7605 = vmatprep.subr.bf16.mxu0 %v8342_v31  ;;  %7611 = vmatprep.subr.bf16.mxu1 %v8342_v31 }
 0x255   :  { %6879 = vmatprep.mubr.msk.f32.mxu0 %vm8343_vm1, %v8344_v41  ;;  %6890 = vmatprep.mubr.msk.f32.mxu1 %vm8343_vm1, %v8344_v41 }
 0x257   :  { %7607 = vmatpush3.bf16.msra.mxu0 %v8537_v37  ;;  %7613 = vmatpush3.bf16.msra.mxu1 %v8541_v38 }
 0x258   :  { %7614 = vmatprep.subr.bf16.mxu0 %v8342_v31  ;;  %7620 = vmatprep.subr.bf16.mxu1 %v8342_v31 }
 0x31d   :  { %v1158_v33 = vpop.f32.mrb[12].mxu0  ;;  %v1232_v34 = vpop.f32.mrb[12].mxu1 }
 0x31e   :  { %v1163_v35 = vrot.slane %v1158_v33, 4  ;;  %v1237_v36 = vrot.slane %v1232_v34, 4  ;;  %v6837_v39 = vpop.f32.mrb[13].mxu0  ;;  %v6848_v40 = vpop.f32.mrb[13].mxu1 }
 0x320   :  { %v1165_v42 = vadd.f32 %v1163_v35, %v8635_v5  ;;  %v1239_v43 = vadd.f32 %v1237_v36, %v8637_v6 }
 0x322   :  { %v6209_v44 = vmul.f32 -1.442695, %v1165_v42  ;;  %v6210_v48 = vmul.f32 -1.442695, %v1239_v43 }
 0x324   :  { %7996 = vpow2.f32 %v6209_v44 }
 0x325   :  { %7998 = vpow2.f32 %v6210_v48  ;;  %v1306_v49 = vpop.f32.mrb[14].mxu0  ;;  %v1380_v50 = vpop.f32.mrb[14].mxu1 }
 0x326   :  { %v1385_v53 = vrot.slane %v1380_v50, 4  ;;  %v6859_v54 = vpop.f32.mrb[15].mxu0  ;;  %v6870_v55 = vpop.f32.mrb[15].mxu1  ;;  %v1311_v57 = vrot.slane %v1306_v49, 4 }
 0x328   :  { %v1387_v58 = vadd.f32 %v1385_v53, %v8641_v15  ;;  %v1313_v61 = vadd.f32 %v1311_v57, %v8644_v21 }
 0x32a   :  { %v6211_v60 = vmul.f32 -1.442695, %v1387_v58 }
 0x32c   :  { %8000 = vpow2.f32 %v6211_v60 }
 0x32d   :  { %8002 = vtanh.f32 %v1313_v61 }
 0x32e   :  { %v7997_v62 = vpop.eup %7996 }
 0x32f   :  { %v7999_v63 = vpop.eup %7998  ;;  %v1391_v1 = vadd.f32 1.0, %v7997_v62 }
 0x330   :  { %v1397_v2 = vadd.f32 1.0, %v7999_v63 }
 0x331   :  { %8004 = vrcp.f32 %v1391_v1 }
 0x332   :  { %8006 = vrcp.f32 %v1397_v2 }
 0x336   :  { %v8001_v4 = vpop.eup %8000 }
 0x337   :  { %v8003_v7 = vpop.eup %8002  ;;  %v1404_v12 = vadd.f32 1.0, %v8001_v4 }
 0x339   :  { %8008 = vrcp.f32 %v1404_v12 }
 0x33b   :  { %v8005_v8 = vpop.eup %8004 }
 0x33c   :  { %v8007_v10 = vpop.eup %8006  ;;  %v1411_v11 = vmul.f32 %v8005_v8, %v8003_v7 }
 0x33d   :  { %v1410_v13 = vmul.f32 %v8007_v10, %v1408_v9 }
 0x33f   :  { %v8731_v14 = vadd.f32 %v1411_v11, %v1410_v13 }
 0x341   :  { %8010 = vtanh.f32 %v8731_v14  ;;  %v1735_v58 = vrot.slane %v8731_v14, 6 }
 0x343   :  { %v8009_v16 = vpop.eup %8008 }
 0x34b   :  { %v8011_v17 = vpop.eup %8010 }
 0x34c   :  { %v1414_v18 = vmul.f32 %v8011_v17, %v8009_v16 }
 0x34e   :  { %v1416_v20 = vrot.slane %v1414_v18, 4  ;;  %v8738_v22 = vsel %vm3042_vm3, %v3041_v19, %v1414_v18 }
 0x350   :  { %6880 = vmatmul.mubr.msk.f32.vlgmr.msra.gmra.mrb[16].mxu0 %vm84_vm0, %v1416_v20  ;;  %6891 = vmatmul.mubr.msk.f32.vlgmr.msra.gmra.mrb[16].mxu1 %vm84_vm0, %v1416_v20 }
 0x351   :  { %7616 = vmatpush3.bf16.msra.mxu0 %v8564_v45  ;;  %7622 = vmatpush3.bf16.msra.mxu1 %v8568_v46 }
 0x352   :  { %7617 = vmatprep.subr.bf16.mxu0 %v8342_v31  ;;  %7623 = vmatprep.subr.bf16.mxu1 %v8342_v31 }
 0x353   :  { %6901 = vmatprep.mubr.msk.f32.mxu0 %vm8343_vm1, %v8344_v41  ;;  %6912 = vmatprep.mubr.msk.f32.mxu1 %vm8343_vm1, %v8344_v41 }
 0x355   :  { %7619 = vmatpush3.bf16.msra.mxu0 %v8586_v51  ;;  %7625 = vmatpush3.bf16.msra.mxu1 %v8590_v52 }
 0x356   :  { %7626 = vmatprep.subr.bf16.mxu0 %v8342_v31  ;;  %7632 = vmatprep.subr.bf16.mxu1 %v8342_v31 }
 0x358   :  { %6902 = vmatmul.mubr.msk.f32.vlgmr.msra.gmra.mrb[18].mxu0 %vm84_vm0, %v1416_v20  ;;  %6913 = vmatmul.mubr.msk.f32.vlgmr.msra.gmra.mrb[18].mxu1 %vm84_vm0, %v1416_v20 }
 0x359   :  { %7628 = vmatpush3.bf16.msra.mxu0 %v8516_v30  ;;  %7634 = vmatpush3.bf16.msra.mxu1 %v8519_v32 }
 0x35a   :  { %7629 = vmatprep.subr.bf16.mxu0 %v8342_v31  ;;  %7635 = vmatprep.subr.bf16.mxu1 %v8342_v31 }
 0x35b   :  { %6923 = vmatprep.mubr.msk.f32.mxu0 %vm8343_vm1, %v8344_v41  ;;  %6934 = vmatprep.mubr.msk.f32.mxu1 %vm8343_vm1, %v8344_v41 }
 0x35d   :  { %7631 = vmatpush3.bf16.msra.mxu0 %v8537_v37  ;;  %7637 = vmatpush3.bf16.msra.mxu1 %v8541_v38 }
 0x35e   :  { %7638 = vmatprep.subr.bf16.mxu0 %v8342_v31  ;;  %7644 = vmatprep.subr.bf16.mxu1 %v8342_v31 }
 0x423   :  { %v1485_v47 = vpop.f32.mrb[16].mxu0  ;;  %v1559_v23 = vpop.f32.mrb[16].mxu1 }
 0x424   :  { %v1490_v24 = vrot.slane %v1485_v47, 2  ;;  %v1564_v25 = vrot.slane %v1559_v23, 2  ;;  %v6881_v26 = vpop.f32.mrb[17].mxu0  ;;  %v6892_v27 = vpop.f32.mrb[17].mxu1 }
 0x426   :  { %v1492_v28 = vadd.f32 %v1490_v24, %v8635_v5  ;;  %v1566_v29 = vadd.f32 %v1564_v25, %v8637_v6 }
 0x428   :  { %v6216_v33 = vmul.f32 -1.442695, %v1492_v28  ;;  %v6217_v34 = vmul.f32 -1.442695, %v1566_v29 }
 0x42a   :  { %8012 = vpow2.f32 %v6216_v33 }
 0x42b   :  { %8014 = vpow2.f32 %v6217_v34  ;;  %v1633_v35 = vpop.f32.mrb[18].mxu0  ;;  %v1707_v36 = vpop.f32.mrb[18].mxu1 }
 0x42c   :  { %v1712_v39 = vrot.slane %v1707_v36, 2  ;;  %v6903_v40 = vpop.f32.mrb[19].mxu0  ;;  %v6914_v42 = vpop.f32.mrb[19].mxu1  ;;  %v1638_v43 = vrot.slane %v1633_v35, 2 }
 0x42e   :  { %v1714_v44 = vadd.f32 %v1712_v39, %v8641_v15  ;;  %v1640_v49 = vadd.f32 %v1638_v43, %v8644_v21 }
 0x430   :  { %v6218_v48 = vmul.f32 -1.442695, %v1714_v44 }
 0x432   :  { %8016 = vpow2.f32 %v6218_v48 }
 0x433   :  { %8018 = vtanh.f32 %v1640_v49 }
 0x434   :  { %v8013_v50 = vpop.eup %8012 }
 0x435   :  { %v8015_v53 = vpop.eup %8014  ;;  %v1718_v5 = vadd.f32 1.0, %v8013_v50 }
 0x436   :  { %v1724_v6 = vadd.f32 1.0, %v8015_v53 }
 0x437   :  { %8020 = vrcp.f32 %v1718_v5 }
 0x438   :  { %8022 = vrcp.f32 %v1724_v6 }
 0x43c   :  { %v8017_v54 = vpop.eup %8016 }
 0x43d   :  { %v8019_v55 = vpop.eup %8018  ;;  %v1731_v62 = vadd.f32 1.0, %v8017_v54 }
 0x43f   :  { %8024 = vrcp.f32 %v1731_v62 }
 0x441   :  { %v8021_v57 = vpop.eup %8020 }
 0x442   :  { %v8023_v60 = vpop.eup %8022  ;;  %v1738_v61 = vmul.f32 %v8021_v57, %v8019_v55 }
 0x443   :  { %v1737_v15 = vmul.f32 %v8023_v60, %v1735_v58 }
 0x445   :  { %v8773_v63 = vadd.f32 %v1738_v61, %v1737_v15 }
 0x447   :  { %8026 = vtanh.f32 %v8773_v63  ;;  %v2050_v34 = vrot.slane %v8773_v63, 6 }
 0x449   :  { %v8025_v21 = vpop.eup %8024 }
 0x451   :  { %v8027_v1 = vpop.eup %8026 }
 0x452   :  { %v1741_v2 = vmul.f32 %v8027_v1, %v8025_v21 }
 0x454   :  { %v1743_v4 = vrot.slane %v1741_v2, 6  ;;  %v8778_v7 = vsel %vm3044_vm4, %v8738_v22, %v1741_v2 }
 0x456   :  { %6924 = vmatmul.mubr.msk.f32.vlgmr.msra.gmra.mrb[20].mxu0 %vm84_vm0, %v1743_v4  ;;  %6935 = vmatmul.mubr.msk.f32.vlgmr.msra.gmra.mrb[20].mxu1 %vm84_vm0, %v1743_v4 }
 0x457   :  { %7640 = vmatpush3.bf16.msra.mxu0 %v8564_v45  ;;  %7646 = vmatpush3.bf16.msra.mxu1 %v8568_v46 }
 0x458   :  { %7641 = vmatprep.subr.bf16.mxu0 %v8342_v31  ;;  %7647 = vmatprep.subr.bf16.mxu1 %v8342_v31 }
 0x459   :  { %6945 = vmatprep.mubr.msk.f32.mxu0 %vm8343_vm1, %v8344_v41  ;;  %6956 = vmatprep.mubr.msk.f32.mxu1 %vm8343_vm1, %v8344_v41 }
 0x45b   :  { %7643 = vmatpush3.bf16.msra.mxu0 %v8586_v51  ;;  %7649 = vmatpush3.bf16.msra.mxu1 %v8590_v52 }
 0x45c   :  { %7650 = vmatprep.subr.bf16.mxu0 %v8342_v31  ;;  %7656 = vmatprep.subr.bf16.mxu1 %v8342_v31 }
 0x45e   :  { %6946 = vmatmul.mubr.msk.f32.vlgmr.msra.gmra.mrb[22].mxu0 %vm84_vm0, %v1743_v4  ;;  %6957 = vmatmul.mubr.msk.f32.vlgmr.msra.gmra.mrb[22].mxu1 %vm84_vm0, %v1743_v4 }
 0x45f   :  { %7652 = vmatpush3.bf16.msra.mxu0 %v8516_v30  ;;  %7658 = vmatpush3.bf16.msra.mxu1 %v8519_v32 }
 0x460   :  { %7653 = vmatprep.subr.bf16.mxu0 %v8342_v31  ;;  %7659 = vmatprep.subr.bf16.mxu1 %v8342_v31 }
 0x461   :  { %6967 = vmatprep.mubr.msk.f32.mxu0 %vm8343_vm1, %v8344_v41  ;;  %6978 = vmatprep.mubr.msk.f32.mxu1 %vm8343_vm1, %v8344_v41 }
 0x463   :  { %7655 = vmatpush3.bf16.msra.mxu0 %v8537_v37  ;;  %7661 = vmatpush3.bf16.msra.mxu1 %v8541_v38 }
 0x464   :  { %7662 = vmatprep.subr.bf16.mxu0 %v8342_v31  ;;  %7668 = vmatprep.subr.bf16.mxu1 %v8342_v31 }
 0x529   :  { %v1812_v8 = vpop.f32.mrb[20].mxu0  ;;  %v1883_v9 = vpop.f32.mrb[20].mxu1 }
 0x52a   :  { %v1816_v10 = vadd.f32 %v1812_v8, %v8621_v56  ;;  %v1887_v11 = vadd.f32 %v1883_v9, %v8623_v59  ;;  %v6925_v12 = vpop.f32.mrb[21].mxu0  ;;  %v6936_v13 = vpop.f32.mrb[21].mxu1 }
 0x52c   :  { %v6223_v14 = vmul.f32 -1.442695, %v1816_v10  ;;  %v6224_v16 = vmul.f32 -1.442695, %v1887_v11 }
 0x52e   :  { %8028 = vpow2.f32 %v6223_v14 }
 0x52f   :  { %8030 = vpow2.f32 %v6224_v16 }
 0x531   :  { %v1954_v17 = vpop.f32.mrb[22].mxu0  ;;  %v2025_v18 = vpop.f32.mrb[22].mxu1 }
 0x532   :  { %v2029_v19 = vadd.f32 %v2025_v18, %v8633_v3  ;;  %v6947_v20 = vpop.f32.mrb[23].mxu0  ;;  %v6958_v22 = vpop.f32.mrb[23].mxu1  ;;  %v1958_v23 = vadd.f32 %v1954_v17, %v8631_v0 }
 0x534   :  { %v6225_v47 = vmul.f32 -1.442695, %v2029_v19 }
 0x536   :  { %8032 = vpow2.f32 %v6225_v47 }
 0x537   :  { %8034 = vtanh.f32 %v1958_v23 }
 0x538   :  { %v8029_v24 = vpop.eup %8028 }
 0x539   :  { %v8031_v25 = vpop.eup %8030  ;;  %v2033_v26 = vadd.f32 1.0, %v8029_v24 }
 0x53a   :  { %v2039_v27 = vadd.f32 1.0, %v8031_v25 }
 0x53b   :  { %8036 = vrcp.f32 %v2033_v26 }
 0x53c   :  { %8038 = vrcp.f32 %v2039_v27 }
 0x540   :  { %v8033_v28 = vpop.eup %8032 }
 0x541   :  { %v8035_v29 = vpop.eup %8034  ;;  %v2046_v39 = vadd.f32 1.0, %v8033_v28 }
 0x543   :  { %8040 = vrcp.f32 %v2046_v39 }
 0x545   :  { %v8037_v33 = vpop.eup %8036 }
 0x546   :  { %v8039_v35 = vpop.eup %8038  ;;  %v2053_v36 = vmul.f32 %v8037_v33, %v8035_v29 }
 0x547   :  { %v2052_v40 = vmul.f32 %v8039_v35, %v2050_v34 }
 0x549   :  { %v8813_v42 = vadd.f32 %v2053_v36, %v2052_v40 }
 0x54b   :  { %8042 = vtanh.f32 %v8813_v42  ;;  %v2376_v17 = vrot.slane %v8813_v42, 6 }
 0x54d   :  { %v8041_v43 = vpop.eup %8040 }
 0x555   :  { %v8043_v44 = vpop.eup %8042 }
 0x556   :  { %v8816_v48 = vmul.f32 %v8043_v44, %v8041_v43 }
 0x558   :  { %6968 = vmatmul.mubr.msk.f32.vlgmr.msra.gmra.mrb[24].mxu0 %vm84_vm0, %v8816_v48  ;;  %6979 = vmatmul.mubr.msk.f32.vlgmr.msra.gmra.mrb[24].mxu1 %vm84_vm0, %v8816_v48 }
 0x559   :  { %7664 = vmatpush3.bf16.msra.mxu0 %v8564_v45  ;;  %7670 = vmatpush3.bf16.msra.mxu1 %v8568_v46 }
 0x55a   :  { %7665 = vmatprep.subr.bf16.mxu0 %v8342_v31  ;;  %7671 = vmatprep.subr.bf16.mxu1 %v8342_v31 }
 0x55b   :  { %6989 = vmatprep.mubr.msk.f32.mxu0 %vm8343_vm1, %v8344_v41  ;;  %7000 = vmatprep.mubr.msk.f32.mxu1 %vm8343_vm1, %v8344_v41 }
 0x55d   :  { %7667 = vmatpush3.bf16.msra.mxu0 %v8586_v51  ;;  %7673 = vmatpush3.bf16.msra.mxu1 %v8590_v52 }
 0x55e   :  { %7674 = vmatprep.subr.bf16.mxu0 %v8342_v31  ;;  %7680 = vmatprep.subr.bf16.mxu1 %v8342_v31 }
 0x560   :  { %6990 = vmatmul.mubr.msk.f32.vlgmr.msra.gmra.mrb[26].mxu0 %vm84_vm0, %v8816_v48  ;;  %7001 = vmatmul.mubr.msk.f32.vlgmr.msra.gmra.mrb[26].mxu1 %vm84_vm0, %v8816_v48 }
 0x561   :  { %7676 = vmatpush3.bf16.msra.mxu0 %v8516_v30  ;;  %7682 = vmatpush3.bf16.msra.mxu1 %v8519_v32 }
 0x562   :  { %7677 = vmatprep.subr.bf16.mxu0 %v8342_v31  ;;  %7683 = vmatprep.subr.bf16.mxu1 %v8342_v31 }
 0x563   :  { %7011 = vmatprep.mubr.msk.f32.mxu0 %vm8343_vm1, %v8344_v41  ;;  %7022 = vmatprep.mubr.msk.f32.mxu1 %vm8343_vm1, %v8344_v41 }
 0x565   :  { %7679 = vmatpush3.bf16.msra.mxu0 %v8537_v37  ;;  %7685 = vmatpush3.bf16.msra.mxu1 %v8541_v38 }
 0x566   :  { %7686 = vmatprep.subr.bf16.mxu0 %v8342_v31  ;;  %7692 = vmatprep.subr.bf16.mxu1 %v8342_v31 }
 0x62b   :  { %v2126_v49 = vpop.f32.mrb[24].mxu0  ;;  %v2200_v50 = vpop.f32.mrb[24].mxu1 }
 0x62c   :  { %v2131_v53 = vrot.slane %v2126_v49, 6  ;;  %v2205_v5 = vrot.slane %v2200_v50, 6  ;;  %v6969_v6 = vpop.f32.mrb[25].mxu0  ;;  %v6980_v54 = vpop.f32.mrb[25].mxu1 }
 0x62e   :  { %v2133_v55 = vadd.f32 %v2131_v53, %v8621_v56  ;;  %v2207_v57 = vadd.f32 %v2205_v5, %v8623_v59 }
 0x630   :  { %v6230_v58 = vmul.f32 -1.442695, %v2133_v55  ;;  %v6231_v60 = vmul.f32 -1.442695, %v2207_v57 }
 0x632   :  { %8044 = vpow2.f32 %v6230_v58 }
 0x633   :  { %8046 = vpow2.f32 %v6231_v60  ;;  %v2274_v61 = vpop.f32.mrb[26].mxu0  ;;  %v2348_v62 = vpop.f32.mrb[26].mxu1 }
 0x634   :  { %v2353_v15 = vrot.slane %v2348_v62, 6  ;;  %v6991_v63 = vpop.f32.mrb[27].mxu0  ;;  %v7002_v21 = vpop.f32.mrb[27].mxu1  ;;  %v2279_v1 = vrot.slane %v2274_v61, 6 }
 0x636   :  { %v2355_v2 = vadd.f32 %v2353_v15, %v8633_v3  ;;  %v2281_v8 = vadd.f32 %v2279_v1, %v8631_v0 }
 0x638   :  { %v6232_v4 = vmul.f32 -1.442695, %v2355_v2 }
 0x63a   :  { %8048 = vpow2.f32 %v6232_v4 }
 0x63b   :  { %8050 = vtanh.f32 %v2281_v8 }
 0x63c   :  { %v8045_v9 = vpop.eup %8044 }
 0x63d   :  { %v8047_v10 = vpop.eup %8046  ;;  %v2359_v11 = vadd.f32 1.0, %v8045_v9 }
 0x63e   :  { %v2365_v12 = vadd.f32 1.0, %v8047_v10 }
 0x63f   :  { %8052 = vrcp.f32 %v2359_v11 }
 0x640   :  { %8054 = vrcp.f32 %v2365_v12 }
 0x644   :  { %v8049_v13 = vpop.eup %8048 }
 0x645   :  { %v8051_v14 = vpop.eup %8050  ;;  %v2372_v20 = vadd.f32 1.0, %v8049_v13  ;;  %v3143_v13 = vld [vmem:[#allocation2 + $0x28] sm:$0xff] }
 0x647   :  { %8056 = vrcp.f32 %v2372_v20 }
 0x649   :  { %v8053_v16 = vpop.eup %8052 }
 0x64a   :  { %v8055_v18 = vpop.eup %8054  ;;  %v2379_v19 = vmul.f32 %v8053_v16, %v8051_v14  ;;  %v3051_v14 = vld [vmem:[#allocation2 + $0x10] sm:$0xff]  ;;  %v3052_v16 = vld [vmem:[#allocation2 + $0x18] sm:$0xff] }
 0x64b   :  { %v2378_v22 = vmul.f32 %v8055_v18, %v2376_v17  ;;  %v7726_v17 = vpack.c.bf16 %v3052_v16, %v3051_v14  ;;  %v3145_v18 = vld [vmem:[#allocation2 + $0x38] sm:$0xff]  ;;  %v3407_v14 = vld [vmem:[#allocation5 + $0x10] sm:$0xff] }
 0x64c   :  { %v3408_v16 = vld [vmem:[#allocation5 + $0x18] sm:$0xff] }
 0x64d   :  { %v8855_v47 = vadd.f32 %v2379_v19, %v2378_v22  ;;  %v3230_v19 = vld [vmem:[#allocation2 + $0x40] sm:$0xff]  ;;  %v3231_v22 = vld [vmem:[#allocation2 + $0x48] sm:$0xff] }
 0x64f   :  { %8058 = vtanh.f32 %v8855_v47  ;;  %v2703_v61 = vrot.slane %v8855_v47, 6  ;;  %v3318_v47 = vld [vmem:[#allocation2 + $0x60] sm:$0xff] }
 0x651   :  { %v8057_v23 = vpop.eup %8056 }
 0x659   :  { %v8059_v24 = vpop.eup %8058 }
 0x65a   :  { %v8858_v25 = vmul.f32 %v8059_v24, %v8057_v23  ;;  %v3319_v23 = vld [vmem:[#allocation2 + $0x68] sm:$0xff]  ;;  %v7738_v24 = vpack.c.bf16 %v3231_v22, %v3230_v19 }
 0x65b   :  { %v3416_v19 = vld [vmem:[#allocation5 + $0x48] sm:$0xff] }
 0x65c   :  { %v2384_v26 = vrot.slane %v8858_v25, 2  ;;  %v3046_v9 = vsel %vm3040_vm2, %v8816_v48, %v8858_v25  ;;  %v3142_v48 = vld [vmem:[#allocation2 + $0x20] sm:$0xff]  ;;  %v7746_v25 = vpack.c.bf16 %v3319_v23, %v3318_v47  ;;  %v3421_v22 = vld [vmem:[#allocation5 + $0x68] sm:$0xff] }
 0x65d   :  { %v6262_v47 = vld [vmem:[%s9337_s7 + $0x2] sm:$0x3] }
 0x65e   :  { %7012 = vmatmul.mubr.msk.f32.vlgmr.msra.gmra.mrb[28].mxu0 %vm84_vm0, %v2384_v26  ;;  %7023 = vmatmul.mubr.msk.f32.vlgmr.msra.gmra.mrb[28].mxu1 %vm84_vm0, %v2384_v26 }
 0x65f   :  { %7688 = vmatpush3.bf16.msra.mxu0 %v8564_v45  ;;  %7694 = vmatpush3.bf16.msra.mxu1 %v8568_v46 }
 0x660   :  { %7689 = vmatprep.subr.bf16.mxu0 %v8342_v31  ;;  %7695 = vmatprep.subr.bf16.mxu1 %v8342_v31 }
 0x661   :  { %7033 = vmatprep.mubr.msk.f32.mxu0 %vm8343_vm1, %v8344_v41  ;;  %7044 = vmatprep.mubr.msk.f32.mxu1 %vm8343_vm1, %v8344_v41 }
 0x663   :  { %7691 = vmatpush3.bf16.msra.mxu0 %v8586_v51  ;;  %7697 = vmatpush3.bf16.msra.mxu1 %v8590_v52 }
 0x664   :  { %7698 = vmatprep.subr.bf16.mxu0 %v8342_v31  ;;  %7704 = vmatprep.subr.bf16.mxu1 %v8342_v31 }
 0x666   :  { %7034 = vmatmul.mubr.msk.f32.vlgmr.msra.gmra.mrb[30].mxu0 %vm84_vm0, %v2384_v26  ;;  %7045 = vmatmul.mubr.msk.f32.vlgmr.msra.gmra.mrb[30].mxu1 %vm84_vm0, %v2384_v26 }
 0x667   :  { %7700 = vmatpush3.bf16.msra.mxu0 %v8516_v30  ;;  %7706 = vmatpush3.bf16.msra.mxu1 %v8519_v32 }
 0x668   :  { %7701 = vmatprep.subr.bf16.mxu0 %v8342_v31  ;;  %7707 = vmatprep.subr.bf16.mxu1 %v8342_v31 }
 0x669   :  { %7055 = vmatprep.mubr.msk.f32.mxu0 %vm8343_vm1, %v8344_v41  ;;  %7066 = vmatprep.mubr.msk.f32.mxu1 %vm8343_vm1, %v8344_v41 }
 0x66b   :  { %7703 = vmatpush3.bf16.msra.mxu0 %v8537_v37  ;;  %7709 = vmatpush3.bf16.msra.mxu1 %v8541_v38 }
 0x66c   :  { %7710 = vmatprep.subr.bf16.mxu0 %v8342_v31  ;;  %7716 = vmatprep.subr.bf16.mxu1 %v8342_v31 }
 0x731   :  { %v2453_v30 = vpop.f32.mrb[28].mxu0  ;;  %v2527_v32 = vpop.f32.mrb[28].mxu1 }
 0x732   :  { %v2458_v27 = vrot.slane %v2453_v30, 4  ;;  %v2532_v28 = vrot.slane %v2527_v32, 4  ;;  %v7013_v29 = vpop.f32.mrb[29].mxu0  ;;  %v7024_v33 = vpop.f32.mrb[29].mxu1 }
 0x734   :  { %v2460_v34 = vadd.f32 %v2458_v27, %v8621_v56  ;;  %v2534_v35 = vadd.f32 %v2532_v28, %v8623_v59 }
 0x736   :  { %v6237_v36 = vmul.f32 -1.442695, %v2460_v34  ;;  %v6238_v39 = vmul.f32 -1.442695, %v2534_v35 }
 0x738   :  { %8060 = vpow2.f32 %v6237_v36 }
 0x739   :  { %8062 = vpow2.f32 %v6238_v39  ;;  %v2601_v37 = vpop.f32.mrb[30].mxu0  ;;  %v2675_v38 = vpop.f32.mrb[30].mxu1 }
 0x73a   :  { %v2680_v40 = vrot.slane %v2675_v38, 4  ;;  %v7035_v42 = vpop.f32.mrb[31].mxu0  ;;  %v7046_v43 = vpop.f32.mrb[31].mxu1  ;;  %v2606_v44 = vrot.slane %v2601_v37, 4 }
 0x73c   :  { %v2682_v49 = vadd.f32 %v2680_v40, %v8633_v3  ;;  %v2608_v53 = vadd.f32 %v2606_v44, %v8631_v0 }
 0x73e   :  { %v6239_v50 = vmul.f32 -1.442695, %v2682_v49 }
 0x740   :  { %8064 = vpow2.f32 %v6239_v50 }
 0x741   :  { %8066 = vtanh.f32 %v2608_v53 }
 0x742   :  { %v8061_v5 = vpop.eup %8060 }
 0x743   :  { %v8063_v6 = vpop.eup %8062  ;;  %v2686_v54 = vadd.f32 1.0, %v8061_v5 }
 0x744   :  { %v2692_v55 = vadd.f32 1.0, %v8063_v6 }
 0x745   :  { %8068 = vrcp.f32 %v2686_v54 }
 0x746   :  { %8070 = vrcp.f32 %v2692_v55 }
 0x74a   :  { %v8065_v57 = vpop.eup %8064 }
 0x74b   :  { %v8067_v58 = vpop.eup %8066  ;;  %v2699_v63 = vadd.f32 1.0, %v8065_v57 }
 0x74d   :  { %8072 = vrcp.f32 %v2699_v63 }
 0x74f   :  { %v8069_v60 = vpop.eup %8068 }
 0x750   :  { %v8071_v62 = vpop.eup %8070  ;;  %v2706_v15 = vmul.f32 %v8069_v60, %v8067_v58 }
 0x751   :  { %v2705_v21 = vmul.f32 %v8071_v62, %v2703_v61 }
 0x753   :  { %v8894_v1 = vadd.f32 %v2706_v15, %v2705_v21  ;;  %v3232_v15 = vld [vmem:[#allocation2 + $0x50] sm:$0xff]  ;;  %v3233_v21 = vld [vmem:[#allocation2 + $0x58] sm:$0xff] }
 0x755   :  { %8074 = vtanh.f32 %v8894_v1  ;;  %v3030_v57 = vrot.slane %v8894_v1, 6 }
 0x757   :  { %v8073_v2 = vpop.eup %8072 }
 0x75f   :  { %v8075_v4 = vpop.eup %8074 }
 0x760   :  { %v2709_v8 = vmul.f32 %v8075_v4, %v8073_v2  ;;  %v3320_v2 = vld [vmem:[#allocation2 + $0x70] sm:$0xff]  ;;  %v3321_v4 = vld [vmem:[#allocation2 + $0x78] sm:$0xff] }
 0x762   :  { %v2711_v10 = vrot.slane %v2709_v8, 4  ;;  %v8901_v11 = vsel %vm3042_vm3, %v3046_v9, %v2709_v8  ;;  %v7742_v9 = vpack.c.bf16 %v3233_v21, %v3232_v15 }
 0x764   :  { %7056 = vmatmul.mubr.msk.f32.vlgmr.msra.gmra.mrb[32].mxu0 %vm84_vm0, %v2711_v10  ;;  %7067 = vmatmul.mubr.msk.f32.vlgmr.msra.gmra.mrb[32].mxu1 %vm84_vm0, %v2711_v10 }
 0x765   :  { %7712 = vmatpush3.bf16.msra.mxu0 %v8564_v45  ;;  %7718 = vmatpush3.bf16.msra.mxu1 %v8568_v46  ;;  %v3049_v45 = vld [vmem:[#allocation2] sm:$0xff]  ;;  %v3050_v46 = vld [vmem:[#allocation2 + $0x8] sm:$0xff] }
 0x766   :  { %7713 = vmatprep.subr.bf16.mxu0 %v8342_v31  ;;  %7719 = vmatprep.subr.bf16.mxu1 %v8342_v31  ;;  %v7722_v12 = vpack.c.bf16 %v3050_v46, %v3049_v45  ;;  %v3405_v45 = vld [vmem:[#allocation5] sm:$0xff]  ;;  %v3406_v46 = vld [vmem:[#allocation5 + $0x8] sm:$0xff] }
 0x767   :  { %7077 = vmatprep.mubr.msk.f32.mxu0 %vm8343_vm1, %v8344_v41  ;;  %7088 = vmatprep.mubr.msk.f32.mxu1 %vm8343_vm1, %v8344_v41 }
 0x769   :  { %7715 = vmatpush3.bf16.msra.mxu0 %v8586_v51  ;;  %7721 = vmatpush3.bf16.msra.mxu1 %v8590_v52  ;;  %v7730_v51 = vpack.c.bf16 %v3143_v13, %v3142_v48  ;;  %v3144_v52 = vld [vmem:[#allocation2 + $0x30] sm:$0xff]  ;;  %v3410_v48 = vld [vmem:[#allocation5 + $0x20] sm:$0xff] }
 0x76a   :  { %7723 = vmatprep.subr.bf16.mxu0 %v7722_v12  ;;  %v7734_v20 = vpack.c.bf16 %v3145_v18, %v3144_v52  ;;  %v3415_v18 = vld [vmem:[#allocation5 + $0x40] sm:$0xff] }
 0x76b   :  { %7731 = vmatprep.subr.bf16.mxu1 %v7730_v51  ;;  %v8961_v23 = vpack.c.bf16 %v3416_v19, %v3415_v18 }
 0x76c   :  { %7078 = vmatmul.mubr.msk.f32.vlgmr.msra.gmra.mrb[34].mxu0 %vm84_vm0, %v2711_v10  ;;  %7089 = vmatmul.mubr.msk.f32.vlgmr.msra.gmra.mrb[34].mxu1 %vm84_vm0, %v2711_v10  ;;  %v7750_v10 = vpack.c.bf16 %v3321_v4, %v3320_v2 }
 0x76d   :  { %7099 = vmatprep.mubr.msk.f32.mxu0 %vm84_vm0, %v8778_v7  ;;  %7110 = vmatprep.mubr.msk.f32.mxu1 %vm84_vm0, %v8778_v7 }
 0x76e   :  { %7725 = vmatpush3.bf16.msra.mxu0 %v7722_v12  ;;  %7733 = vmatpush3.bf16.msra.mxu1 %v7730_v51  ;;  %v8936_v12 = vpack.c.bf16 %v3406_v46, %v3405_v45  ;;  %v3412_v51 = vld [vmem:[#allocation5 + $0x30] sm:$0xff] }
 0x76f   :  { %7727 = vmatprep.subr.bf16.mxu0 %v7726_v17  ;;  %7735 = vmatprep.subr.bf16.mxu1 %v7734_v20 }
 0x772   :  { %7729 = vmatpush3.bf16.msra.mxu0 %v7726_v17  ;;  %7737 = vmatpush3.bf16.msra.mxu1 %v7734_v20  ;;  %v3413_v17 = vld [vmem:[#allocation5 + $0x38] sm:$0xff]  ;;  %v3420_v20 = vld [vmem:[#allocation5 + $0x60] sm:$0xff] }
 0x773   :  { %7739 = vmatprep.subr.bf16.mxu0 %v7738_v24  ;;  %7747 = vmatprep.subr.bf16.mxu1 %v7746_v25  ;;  %v8948_v52 = vpack.c.bf16 %v3413_v17, %v3412_v51 }
 0x837   :  { %v2780_v26 = vpop.f32.mrb[32].mxu0  ;;  %v2854_v30 = vpop.f32.mrb[32].mxu1 }
 0x838   :  { %v2785_v32 = vrot.slane %v2780_v26, 2  ;;  %v2859_v27 = vrot.slane %v2854_v30, 2  ;;  %v7057_v28 = vpop.f32.mrb[33].mxu0  ;;  %v7068_v29 = vpop.f32.mrb[33].mxu1  ;;  %v3418_v26 = vld [vmem:[#allocation5 + $0x58] sm:$0xff]  ;;  %v3422_v30 = vld [vmem:[#allocation5 + $0x70] sm:$0xff] }
 0x839   :  { %v6247_v29 = vld [vmem:[%s9336_s6] ss:$0 sm:$0xff] }
 0x83a   :  { %v2787_v33 = vadd.f32 %v2785_v32, %v8621_v56  ;;  %v2861_v34 = vadd.f32 %v2859_v27, %v8623_v59  ;;  %v3423_v32 = vld [vmem:[#allocation5 + $0x78] sm:$0xff] }
 0x83b   :  { %v8973_v28 = vpack.c.bf16 %v3423_v32, %v3422_v30 }
 0x83c   :  { %v6244_v35 = vmul.f32 -1.442695, %v2787_v33  ;;  %v6245_v36 = vmul.f32 -1.442695, %v2861_v34  ;;  %v6251_v33 = vld [vmem:[%s9336_s6 + $0x1] ss:$0 sm:$0xff] }
 0x83e   :  { %8076 = vpow2.f32 %v6244_v35 }
 0x83f   :  { %8078 = vpow2.f32 %v6245_v36  ;;  %v2928_v39 = vpop.f32.mrb[34].mxu0  ;;  %v3002_v37 = vpop.f32.mrb[34].mxu1 }
 0x840   :  { %v3007_v38 = vrot.slane %v3002_v37, 2  ;;  %v7079_v40 = vpop.f32.mrb[35].mxu0  ;;  %v7090_v42 = vpop.f32.mrb[35].mxu1  ;;  %v2933_v43 = vrot.slane %v2928_v39, 2 }
 0x841   :  { %v6255_v40 = vld [vmem:[%s9336_s6 + $0x2] ss:$0 sm:$0xff]  ;;  %v6259_v42 = vld [vmem:[%s9336_s6 + $0x3] ss:$0 sm:$0xff] }
 0x842   :  { %v3009_v44 = vadd.f32 %v3007_v38, %v8633_v3  ;;  %v2935_v50 = vadd.f32 %v2933_v43, %v8631_v0 }
 0x844   :  { %v6246_v49 = vmul.f32 -1.442695, %v3009_v44 }
 0x846   :  { %8080 = vpow2.f32 %v6246_v49 }
 0x847   :  { %8082 = vtanh.f32 %v2935_v50 }
 0x848   :  { %v8077_v53 = vpop.eup %8076 }
 0x849   :  { %v8079_v5 = vpop.eup %8078  ;;  %v3013_v56 = vadd.f32 1.0, %v8077_v53 }
 0x84a   :  { %v3019_v59 = vadd.f32 1.0, %v8079_v5 }
 0x84b   :  { %8084 = vrcp.f32 %v3013_v56 }
 0x84c   :  { %8086 = vrcp.f32 %v3019_v59 }
 0x850   :  { %v8081_v6 = vpop.eup %8080 }
 0x851   :  { %v8083_v54 = vpop.eup %8082  ;;  %v3026_v61 = vadd.f32 1.0, %v8081_v6 }
 0x853   :  { %8088 = vrcp.f32 %v3026_v61 }
 0x855   :  { %v8085_v55 = vpop.eup %8084 }
 0x856   :  { %v8087_v58 = vpop.eup %8086  ;;  %v3033_v60 = vmul.f32 %v8085_v55, %v8083_v54 }
 0x857   :  { %v3032_v3 = vmul.f32 %v8087_v58, %v3030_v57 }
 0x859   :  { %v3034_v62 = vadd.f32 %v3033_v60, %v3032_v3 }
 0x85b   :  { %8090 = vtanh.f32 %v3034_v62  ;;  %3039 = vst.msk [vmem:[#allocation10 - $0x6] sm:$0xc0] %vm3037_vm5, %v3034_v62 }
 0x85d   :  { %v8089_v0 = vpop.eup %8088 }
 0x865   :  { %v8091_v63 = vpop.eup %8090 }
 0x866   :  { %v3036_v8 = vmul.f32 %v8091_v63, %v8089_v0 }
 0x868   :  { %v3048_v1 = vsel %vm3044_vm4, %v8901_v11, %v3036_v8  ;;  %3038 = vst.msk [vmem:[#allocation8 - $0x6] sm:$0xc0] %vm3037_vm5, %v3036_v8  ;;  %v3411_v11 = vld [vmem:[#allocation5 + $0x28] sm:$0xff] }
 0x869   :  { %7100 = vmatmul.mubr.msk.f32.vlgmr.msra.gmra.mrb[36].mxu0 %vm84_vm0, %v3048_v1  ;;  %7111 = vmatmul.mubr.msk.f32.vlgmr.msra.gmra.mrb[36].mxu1 %vm84_vm0, %v3048_v1  ;;  %v8938_v13 = vpack.c.bf16 %v3411_v11, %v3410_v48 }
 0x86a   :  { %7741 = vmatpush3.bf16.msra.mxu0 %v7738_v24  ;;  %7749 = vmatpush3.bf16.msra.mxu1 %v7746_v25  ;;  %v8963_v24 = vpack.c.bf16 %v3421_v22, %v3420_v20  ;;  %v3417_v25 = vld [vmem:[#allocation5 + $0x50] sm:$0xff] }
 0x86b   :  { %7121 = vmatprep.mubr.msk.f32.mxu0 %vm84_vm0, %v8778_v7  ;;  %7132 = vmatprep.mubr.msk.f32.mxu1 %vm84_vm0, %v8778_v7  ;;  %v8946_v7 = vpack.c.bf16 %v3408_v16, %v3407_v14  ;;  %v8971_v27 = vpack.c.bf16 %v3418_v26, %v3417_v25  ;;  %v6263_v14 = vld [vmem:[%s9338_s8 + $0x2] sm:$0x3] }
 0x86c   :  { %7743 = vmatprep.subr.bf16.mxu0 %v7742_v9  ;;  %7751 = vmatprep.subr.bf16.mxu1 %v7750_v10 }
 0x86e   :  { %7745 = vmatpush3.bf16.msra.mxu0 %v7742_v9  ;;  %7753 = vmatpush3.bf16.msra.mxu1 %v7750_v10 }
 0x86f   :  { %7754 = vmatprep.subr.bf16.mxu0 %v8342_v31  ;;  %7760 = vmatprep.subr.bf16.mxu1 %v8342_v31 }
 0x871   :  { %7122 = vmatmul.mubr.msk.f32.vlgmr.msra.gmra.mrb[38].mxu0 %vm84_vm0, %v3048_v1  ;;  %7133 = vmatmul.mubr.msk.f32.vlgmr.msra.gmra.mrb[38].mxu1 %vm84_vm0, %v3048_v1 }
 0x872   :  { %7756 = vmatpush3.bf16.msra.mxu0 %v8936_v12  ;;  %7762 = vmatpush3.bf16.msra.mxu1 %v8938_v13 }
 0x873   :  { %7757 = vmatprep.subr.bf16.mxu0 %v8342_v31  ;;  %7763 = vmatprep.subr.bf16.mxu1 %v8342_v31 }
 0x874   :  { %7143 = vmatprep.mubr.msk.f32.mxu0 %vm8343_vm1, %v8344_v41  ;;  %7154 = vmatprep.mubr.msk.f32.mxu1 %vm8343_vm1, %v8344_v41 }
 0x876   :  { %7759 = vmatpush3.bf16.msra.mxu0 %v8946_v7  ;;  %7765 = vmatpush3.bf16.msra.mxu1 %v8948_v52 }
 0x877   :  { %7766 = vmatprep.subr.bf16.mxu0 %v8342_v31  ;;  %7772 = vmatprep.subr.bf16.mxu1 %v8342_v31 }
 0x879   :  { %7144 = vmatmul.mubr.msk.f32.vlgmr.msra.gmra.mrb[40].mxu0 %vm84_vm0, %v6262_v47  ;;  %7155 = vmatmul.mubr.msk.f32.vlgmr.msra.gmra.mrb[40].mxu1 %vm84_vm0, %v6262_v47 }
 0x87a   :  { %7768 = vmatpush3.bf16.msra.mxu0 %v8961_v23  ;;  %7774 = vmatpush3.bf16.msra.mxu1 %v8963_v24 }
 0x87b   :  { %7769 = vmatprep.subr.bf16.mxu0 %v8342_v31  ;;  %7775 = vmatprep.subr.bf16.mxu1 %v8342_v31 }
 0x87c   :  { %7165 = vmatprep.mubr.msk.f32.mxu0 %vm8343_vm1, %v8344_v41  ;;  %7176 = vmatprep.mubr.msk.f32.mxu1 %vm8343_vm1, %v8344_v41 }
 0x87e   :  { %7771 = vmatpush3.bf16.msra.mxu0 %v8971_v27  ;;  %7777 = vmatpush3.bf16.msra.mxu1 %v8973_v28 }
 0x87f   :  { %7778 = vmatprep.subr.bf16.mxu0 %v8342_v31  ;;  %7784 = vmatprep.subr.bf16.mxu1 %v8342_v31 }
 0x881   :  { %7166 = vmatmul.mubr.msk.f32.vlgmr.msra.gmra.mrb[42].mxu0 %vm84_vm0, %v6262_v47  ;;  %7177 = vmatmul.mubr.msk.f32.vlgmr.msra.gmra.mrb[42].mxu1 %vm84_vm0, %v6262_v47 }
 0x882   :  { %7780 = vmatpush3.bf16.msra.mxu0 %v8936_v12  ;;  %7786 = vmatpush3.bf16.msra.mxu1 %v8938_v13 }
 0x883   :  { %7781 = vmatprep.subr.bf16.mxu0 %v8342_v31  ;;  %7787 = vmatprep.subr.bf16.mxu1 %v8342_v31 }
 0x884   :  { %7187 = vmatprep.mubr.msk.f32.mxu0 %vm8343_vm1, %v8344_v41  ;;  %7198 = vmatprep.mubr.msk.f32.mxu1 %vm8343_vm1, %v8344_v41 }
 0x886   :  { %7783 = vmatpush3.bf16.msra.mxu0 %v8946_v7  ;;  %7789 = vmatpush3.bf16.msra.mxu1 %v8948_v52 }
 0x887   :  { %7790 = vmatprep.subr.bf16.mxu0 %v8342_v31  ;;  %7796 = vmatprep.subr.bf16.mxu1 %v8342_v31 }
 0x93c   :  { %v7101_v34 = vpop.f32.mrb[36].mxu0  ;;  %v7112_v35 = vpop.f32.mrb[36].mxu1 }
 0x93d   :  { %v9005_v36 = vadd.f32 %v7101_v34, %v6247_v29  ;;  %v9007_v39 = vadd.f32 %v7112_v35, %v6251_v33  ;;  %v3132_v37 = vpop.f32.mrb[37].mxu0  ;;  %v3220_v38 = vpop.f32.mrb[37].mxu1 }
 0x93e   :  { %v9019_v56 = vadd.f32 %v6247_v29, %v3132_v37  ;;  %v9021_v59 = vadd.f32 %v6251_v33, %v3220_v38 }
 0x944   :  { %v7123_v43 = vpop.f32.mrb[38].mxu0  ;;  %v7134_v44 = vpop.f32.mrb[38].mxu1 }
 0x945   :  { %v9015_v49 = vadd.f32 %v7123_v43, %v6255_v40  ;;  %v9017_v50 = vadd.f32 %v7134_v44, %v6259_v42  ;;  %v3308_v53 = vpop.f32.mrb[39].mxu0  ;;  %v3396_v5 = vpop.f32.mrb[39].mxu1 }
 0x946   :  { %v9025_v62 = vadd.f32 %v6259_v42, %v3396_v5  ;;  %v9028_v4 = vadd.f32 %v6255_v40, %v3308_v53 }
 0x94c   :  { %v3497_v6 = vpop.f32.mrb[40].mxu0  ;;  %v3568_v54 = vpop.f32.mrb[40].mxu1 }
 0x94d   :  { %v3501_v55 = vadd.f32 %v3497_v6, %v9019_v56  ;;  %v3572_v57 = vadd.f32 %v3568_v54, %v9021_v59  ;;  %v7145_v58 = vpop.f32.mrb[41].mxu0  ;;  %v7156_v60 = vpop.f32.mrb[41].mxu1 }
 0x94f   :  { %v6268_v61 = vmul.f32 -1.442695, %v3501_v55  ;;  %v6269_v3 = vmul.f32 -1.442695, %v3572_v57 }
 0x951   :  { %8092 = vpow2.f32 %v6268_v61 }
 0x952   :  { %8094 = vpow2.f32 %v6269_v3 }
 0x954   :  { %v3639_v0 = vpop.f32.mrb[42].mxu0  ;;  %v3710_v15 = vpop.f32.mrb[42].mxu1 }
 0x955   :  { %v3714_v63 = vadd.f32 %v3710_v15, %v9025_v62  ;;  %v7167_v21 = vpop.f32.mrb[43].mxu0  ;;  %v7178_v2 = vpop.f32.mrb[43].mxu1  ;;  %v3643_v1 = vadd.f32 %v3639_v0, %v9028_v4 }
 0x957   :  { %v6270_v8 = vmul.f32 -1.442695, %v3714_v63 }
 0x959   :  { %8096 = vpow2.f32 %v6270_v8 }
 0x95a   :  { %8098 = vtanh.f32 %v3643_v1 }
 0x95b   :  { %v8093_v9 = vpop.eup %8092 }
 0x95c   :  { %v8095_v10 = vpop.eup %8094  ;;  %v3718_v45 = vadd.f32 1.0, %v8093_v9 }
 0x95d   :  { %v3724_v46 = vadd.f32 1.0, %v8095_v10 }
 0x95e   :  { %8100 = vrcp.f32 %v3718_v45 }
 0x95f   :  { %8102 = vrcp.f32 %v3724_v46 }
 0x963   :  { %v8097_v48 = vpop.eup %8096 }
 0x964   :  { %v8099_v11 = vpop.eup %8098  ;;  %v3731_v18 = vadd.f32 1.0, %v8097_v48 }
 0x966   :  { %8104 = vrcp.f32 %v3731_v18 }
 0x968   :  { %v8101_v16 = vpop.eup %8100 }
 0x969   :  { %v8103_v51 = vpop.eup %8102  ;;  %v3735_v17 = vmul.f32 %v8101_v16, %v8099_v11 }
 0x96a   :  { %v3734_v19 = vmul.f32 %v8103_v51, %v6263_v14 }
 0x96c   :  { %v9034_v20 = vadd.f32 %v3735_v17, %v3734_v19 }
 0x96e   :  { %8106 = vtanh.f32 %v9034_v20  ;;  %v4058_v21 = vrot.slane %v9034_v20, 6 }
 0x970   :  { %v8105_v22 = vpop.eup %8104 }
 0x978   :  { %v8107_v47 = vpop.eup %8106 }
 0x979   :  { %v3738_v25 = vmul.f32 %v8107_v47, %v8105_v22 }
 0x97b   :  { %7188 = vmatmul.mubr.msk.f32.vlgmr.msra.gmra.mrb[44].mxu0 %vm84_vm0, %v3738_v25  ;;  %7199 = vmatmul.mubr.msk.f32.vlgmr.msra.gmra.mrb[44].mxu1 %vm84_vm0, %v3738_v25 }
 0x97c   :  { %7792 = vmatpush3.bf16.msra.mxu0 %v8961_v23  ;;  %7798 = vmatpush3.bf16.msra.mxu1 %v8963_v24 }
 0x97d   :  { %7793 = vmatprep.subr.bf16.mxu0 %v8342_v31  ;;  %7799 = vmatprep.subr.bf16.mxu1 %v8342_v31 }
 0x97e   :  { %7209 = vmatprep.mubr.msk.f32.mxu0 %vm8343_vm1, %v8344_v41  ;;  %7220 = vmatprep.mubr.msk.f32.mxu1 %vm8343_vm1, %v8344_v41 }
 0x980   :  { %7795 = vmatpush3.bf16.msra.mxu0 %v8971_v27  ;;  %7801 = vmatpush3.bf16.msra.mxu1 %v8973_v28 }
 0x981   :  { %7802 = vmatprep.subr.bf16.mxu0 %v8342_v31  ;;  %7808 = vmatprep.subr.bf16.mxu1 %v8342_v31 }
 0x983   :  { %7210 = vmatmul.mubr.msk.f32.vlgmr.msra.gmra.mrb[46].mxu0 %vm84_vm0, %v3738_v25  ;;  %7221 = vmatmul.mubr.msk.f32.vlgmr.msra.gmra.mrb[46].mxu1 %vm84_vm0, %v3738_v25 }
 0x984   :  { %7804 = vmatpush3.bf16.msra.mxu0 %v8936_v12  ;;  %7810 = vmatpush3.bf16.msra.mxu1 %v8938_v13 }
 0x985   :  { %7805 = vmatprep.subr.bf16.mxu0 %v8342_v31  ;;  %7811 = vmatprep.subr.bf16.mxu1 %v8342_v31 }
 0x986   :  { %7231 = vmatprep.mubr.msk.f32.mxu0 %vm8343_vm1, %v8344_v41  ;;  %7242 = vmatprep.mubr.msk.f32.mxu1 %vm8343_vm1, %v8344_v41 }
 0x988   :  { %7807 = vmatpush3.bf16.msra.mxu0 %v8946_v7  ;;  %7813 = vmatpush3.bf16.msra.mxu1 %v8948_v52 }
 0x989   :  { %7814 = vmatprep.subr.bf16.mxu0 %v8342_v31  ;;  %7820 = vmatprep.subr.bf16.mxu1 %v8342_v31 }
 0xa4e   :  { %v3808_v26 = vpop.f32.mrb[44].mxu0  ;;  %v3882_v30 = vpop.f32.mrb[44].mxu1 }
 0xa4f   :  { %v3813_v32 = vrot.slane %v3808_v26, 6  ;;  %v3887_v29 = vrot.slane %v3882_v30, 6  ;;  %v7189_v33 = vpop.f32.mrb[45].mxu0  ;;  %v7200_v34 = vpop.f32.mrb[45].mxu1 }
 0xa51   :  { %v3815_v35 = vadd.f32 %v3813_v32, %v9019_v56  ;;  %v3889_v37 = vadd.f32 %v3887_v29, %v9021_v59 }
 0xa53   :  { %v6275_v38 = vmul.f32 -1.442695, %v3815_v35  ;;  %v6276_v40 = vmul.f32 -1.442695, %v3889_v37 }
 0xa55   :  { %8108 = vpow2.f32 %v6275_v38 }
 0xa56   :  { %8110 = vpow2.f32 %v6276_v40  ;;  %v3956_v42 = vpop.f32.mrb[46].mxu0  ;;  %v4030_v43 = vpop.f32.mrb[46].mxu1 }
 0xa57   :  { %v4035_v44 = vrot.slane %v4030_v43, 6  ;;  %v7211_v53 = vpop.f32.mrb[47].mxu0  ;;  %v7222_v5 = vpop.f32.mrb[47].mxu1  ;;  %v3961_v6 = vrot.slane %v3956_v42, 6 }
 0xa59   :  { %v4037_v54 = vadd.f32 %v4035_v44, %v9025_v62  ;;  %v3963_v57 = vadd.f32 %v3961_v6, %v9028_v4 }
 0xa5b   :  { %v6277_v55 = vmul.f32 -1.442695, %v4037_v54 }
 0xa5d   :  { %8112 = vpow2.f32 %v6277_v55 }
 0xa5e   :  { %8114 = vtanh.f32 %v3963_v57 }
 0xa5f   :  { %v8109_v58 = vpop.eup %8108 }
 0xa60   :  { %v8111_v60 = vpop.eup %8110  ;;  %v4041_v61 = vadd.f32 1.0, %v8109_v58 }
 0xa61   :  { %v4047_v3 = vadd.f32 1.0, %v8111_v60 }
 0xa62   :  { %8116 = vrcp.f32 %v4041_v61 }
 0xa63   :  { %8118 = vrcp.f32 %v4047_v3 }
 0xa67   :  { %v8113_v0 = vpop.eup %8112 }
 0xa68   :  { %v8115_v15 = vpop.eup %8114  ;;  %v4054_v1 = vadd.f32 1.0, %v8113_v0 }
 0xa6a   :  { %8120 = vrcp.f32 %v4054_v1 }
 0xa6c   :  { %v8117_v63 = vpop.eup %8116 }
 0xa6d   :  { %v8119_v2 = vpop.eup %8118  ;;  %v4061_v8 = vmul.f32 %v8117_v63, %v8115_v15 }
 0xa6e   :  { %v4060_v9 = vmul.f32 %v8119_v2, %v4058_v21 }
 0xa70   :  { %v9070_v10 = vadd.f32 %v4061_v8, %v4060_v9 }
 0xa72   :  { %8122 = vtanh.f32 %v9070_v10  ;;  %v4385_v54 = vrot.slane %v9070_v10, 6 }
 0xa74   :  { %v8121_v45 = vpop.eup %8120 }
 0xa7c   :  { %v8123_v46 = vpop.eup %8122 }
 0xa7d   :  { %v4064_v48 = vmul.f32 %v8123_v46, %v8121_v45 }
 0xa7f   :  { %v4066_v11 = vrot.slane %v4064_v48, 2 }
 0xa81   :  { %7232 = vmatmul.mubr.msk.f32.vlgmr.msra.gmra.mrb[48].mxu0 %vm84_vm0, %v4066_v11  ;;  %7243 = vmatmul.mubr.msk.f32.vlgmr.msra.gmra.mrb[48].mxu1 %vm84_vm0, %v4066_v11 }
 0xa82   :  { %7816 = vmatpush3.bf16.msra.mxu0 %v8961_v23  ;;  %7822 = vmatpush3.bf16.msra.mxu1 %v8963_v24 }
 0xa83   :  { %7817 = vmatprep.subr.bf16.mxu0 %v8342_v31  ;;  %7823 = vmatprep.subr.bf16.mxu1 %v8342_v31 }
 0xa84   :  { %7253 = vmatprep.mubr.msk.f32.mxu0 %vm8343_vm1, %v8344_v41  ;;  %7264 = vmatprep.mubr.msk.f32.mxu1 %vm8343_vm1, %v8344_v41 }
 0xa86   :  { %7819 = vmatpush3.bf16.msra.mxu0 %v8971_v27  ;;  %7825 = vmatpush3.bf16.msra.mxu1 %v8973_v28 }
 0xa87   :  { %7826 = vmatprep.subr.bf16.mxu0 %v8342_v31  ;;  %7832 = vmatprep.subr.bf16.mxu1 %v8342_v31 }
 0xa89   :  { %7254 = vmatmul.mubr.msk.f32.vlgmr.msra.gmra.mrb[50].mxu0 %vm84_vm0, %v4066_v11  ;;  %7265 = vmatmul.mubr.msk.f32.vlgmr.msra.gmra.mrb[50].mxu1 %vm84_vm0, %v4066_v11 }
 0xa8a   :  { %7828 = vmatpush3.bf16.msra.mxu0 %v8936_v12  ;;  %7834 = vmatpush3.bf16.msra.mxu1 %v8938_v13 }
 0xa8b   :  { %7829 = vmatprep.subr.bf16.mxu0 %v8342_v31  ;;  %7835 = vmatprep.subr.bf16.mxu1 %v8342_v31 }
 0xa8c   :  { %7275 = vmatprep.mubr.msk.f32.mxu0 %vm8343_vm1, %v8344_v41  ;;  %7286 = vmatprep.mubr.msk.f32.mxu1 %vm8343_vm1, %v8344_v41 }
 0xa8e   :  { %7831 = vmatpush3.bf16.msra.mxu0 %v8946_v7  ;;  %7837 = vmatpush3.bf16.msra.mxu1 %v8948_v52 }
 0xa8f   :  { %7838 = vmatprep.subr.bf16.mxu0 %v8342_v31  ;;  %7844 = vmatprep.subr.bf16.mxu1 %v8342_v31 }
 0xb54   :  { %v4135_v14 = vpop.f32.mrb[48].mxu0  ;;  %v4209_v16 = vpop.f32.mrb[48].mxu1 }
 0xb55   :  { %v4140_v51 = vrot.slane %v4135_v14, 4  ;;  %v4214_v17 = vrot.slane %v4209_v16, 4  ;;  %v7233_v18 = vpop.f32.mrb[49].mxu0  ;;  %v7244_v19 = vpop.f32.mrb[49].mxu1 }
 0xb57   :  { %v4142_v20 = vadd.f32 %v4140_v51, %v9019_v56  ;;  %v4216_v22 = vadd.f32 %v4214_v17, %v9021_v59 }
 0xb59   :  { %v6282_v47 = vmul.f32 -1.442695, %v4142_v20  ;;  %v6283_v25 = vmul.f32 -1.442695, %v4216_v22 }
 0xb5b   :  { %8124 = vpow2.f32 %v6282_v47 }
 0xb5c   :  { %8126 = vpow2.f32 %v6283_v25  ;;  %v4283_v26 = vpop.f32.mrb[50].mxu0  ;;  %v4357_v30 = vpop.f32.mrb[50].mxu1 }
 0xb5d   :  { %v4362_v32 = vrot.slane %v4357_v30, 4  ;;  %v7255_v29 = vpop.f32.mrb[51].mxu0  ;;  %v7266_v33 = vpop.f32.mrb[51].mxu1  ;;  %v4288_v34 = vrot.slane %v4283_v26, 4 }
 0xb5f   :  { %v4364_v35 = vadd.f32 %v4362_v32, %v9025_v62  ;;  %v4290_v38 = vadd.f32 %v4288_v34, %v9028_v4 }
 0xb61   :  { %v6284_v37 = vmul.f32 -1.442695, %v4364_v35 }
 0xb63   :  { %8128 = vpow2.f32 %v6284_v37 }
 0xb64   :  { %8130 = vtanh.f32 %v4290_v38 }
 0xb65   :  { %v8125_v40 = vpop.eup %8124 }
 0xb66   :  { %v8127_v42 = vpop.eup %8126  ;;  %v4368_v43 = vadd.f32 1.0, %v8125_v40 }
 0xb67   :  { %v4374_v44 = vadd.f32 1.0, %v8127_v42 }
 0xb68   :  { %8132 = vrcp.f32 %v4368_v43 }
 0xb69   :  { %8134 = vrcp.f32 %v4374_v44 }
 0xb6d   :  { %v8129_v53 = vpop.eup %8128 }
 0xb6e   :  { %v8131_v5 = vpop.eup %8130  ;;  %v4381_v58 = vadd.f32 1.0, %v8129_v53 }
 0xb70   :  { %8136 = vrcp.f32 %v4381_v58 }
 0xb72   :  { %v8133_v6 = vpop.eup %8132 }
 0xb73   :  { %v8135_v55 = vpop.eup %8134  ;;  %v4388_v57 = vmul.f32 %v8133_v6, %v8131_v5 }
 0xb74   :  { %v4387_v60 = vmul.f32 %v8135_v55, %v4385_v54 }
 0xb76   :  { %v9106_v61 = vadd.f32 %v4388_v57, %v4387_v60 }
 0xb78   :  { %8138 = vtanh.f32 %v9106_v61  ;;  %v4712_v33 = vrot.slane %v9106_v61, 6 }
 0xb7a   :  { %v8137_v3 = vpop.eup %8136 }
 0xb82   :  { %v8139_v0 = vpop.eup %8138 }
 0xb83   :  { %v4391_v15 = vmul.f32 %v8139_v0, %v8137_v3 }
 0xb85   :  { %v4393_v63 = vrot.slane %v4391_v15, 4 }
 0xb87   :  { %7276 = vmatmul.mubr.msk.f32.vlgmr.msra.gmra.mrb[52].mxu0 %vm84_vm0, %v4393_v63  ;;  %7287 = vmatmul.mubr.msk.f32.vlgmr.msra.gmra.mrb[52].mxu1 %vm84_vm0, %v4393_v63 }
 0xb88   :  { %7840 = vmatpush3.bf16.msra.mxu0 %v8961_v23  ;;  %7846 = vmatpush3.bf16.msra.mxu1 %v8963_v24 }
 0xb89   :  { %7841 = vmatprep.subr.bf16.mxu0 %v8342_v31  ;;  %7847 = vmatprep.subr.bf16.mxu1 %v8342_v31 }
 0xb8a   :  { %7297 = vmatprep.mubr.msk.f32.mxu0 %vm8343_vm1, %v8344_v41  ;;  %7308 = vmatprep.mubr.msk.f32.mxu1 %vm8343_vm1, %v8344_v41 }
 0xb8c   :  { %7843 = vmatpush3.bf16.msra.mxu0 %v8971_v27  ;;  %7849 = vmatpush3.bf16.msra.mxu1 %v8973_v28 }
 0xb8d   :  { %7850 = vmatprep.subr.bf16.mxu0 %v8342_v31  ;;  %7856 = vmatprep.subr.bf16.mxu1 %v8342_v31 }
 0xb8f   :  { %7298 = vmatmul.mubr.msk.f32.vlgmr.msra.gmra.mrb[54].mxu0 %vm84_vm0, %v4393_v63  ;;  %7309 = vmatmul.mubr.msk.f32.vlgmr.msra.gmra.mrb[54].mxu1 %vm84_vm0, %v4393_v63 }
 0xb90   :  { %7852 = vmatpush3.bf16.msra.mxu0 %v8936_v12  ;;  %7858 = vmatpush3.bf16.msra.mxu1 %v8938_v13 }
 0xb91   :  { %7853 = vmatprep.subr.bf16.mxu0 %v8342_v31  ;;  %7859 = vmatprep.subr.bf16.mxu1 %v8342_v31 }
 0xb92   :  { %7319 = vmatprep.mubr.msk.f32.mxu0 %vm8343_vm1, %v8344_v41  ;;  %7330 = vmatprep.mubr.msk.f32.mxu1 %vm8343_vm1, %v8344_v41 }
 0xb94   :  { %7855 = vmatpush3.bf16.msra.mxu0 %v8946_v7  ;;  %7861 = vmatpush3.bf16.msra.mxu1 %v8948_v52 }
 0xb95   :  { %7862 = vmatprep.subr.bf16.mxu0 %v8342_v31  ;;  %7868 = vmatprep.subr.bf16.mxu1 %v8342_v31 }
 0xc5a   :  { %v4462_v21 = vpop.f32.mrb[52].mxu0  ;;  %v4536_v2 = vpop.f32.mrb[52].mxu1 }
 0xc5b   :  { %v4467_v8 = vrot.slane %v4462_v21, 2  ;;  %v4541_v1 = vrot.slane %v4536_v2, 2  ;;  %v7277_v9 = vpop.f32.mrb[53].mxu0  ;;  %v7288_v10 = vpop.f32.mrb[53].mxu1 }
 0xc5d   :  { %v4469_v45 = vadd.f32 %v4467_v8, %v9019_v56  ;;  %v4543_v46 = vadd.f32 %v4541_v1, %v9021_v59 }
 0xc5f   :  { %v6289_v48 = vmul.f32 -1.442695, %v4469_v45  ;;  %v6290_v11 = vmul.f32 -1.442695, %v4543_v46 }
 0xc61   :  { %8140 = vpow2.f32 %v6289_v48 }
 0xc62   :  { %8142 = vpow2.f32 %v6290_v11  ;;  %v4610_v14 = vpop.f32.mrb[54].mxu0  ;;  %v4684_v16 = vpop.f32.mrb[54].mxu1 }
 0xc63   :  { %v4689_v51 = vrot.slane %v4684_v16, 2  ;;  %v7299_v17 = vpop.f32.mrb[55].mxu0  ;;  %v7310_v18 = vpop.f32.mrb[55].mxu1  ;;  %v4615_v19 = vrot.slane %v4610_v14, 2 }
 0xc65   :  { %v4691_v20 = vadd.f32 %v4689_v51, %v9025_v62  ;;  %v4617_v47 = vadd.f32 %v4615_v19, %v9028_v4 }
 0xc67   :  { %v6291_v22 = vmul.f32 -1.442695, %v4691_v20 }
 0xc69   :  { %8144 = vpow2.f32 %v6291_v22 }
 0xc6a   :  { %8146 = vtanh.f32 %v4617_v47 }
 0xc6b   :  { %v8141_v25 = vpop.eup %8140 }
 0xc6c   :  { %v8143_v26 = vpop.eup %8142  ;;  %v4695_v56 = vadd.f32 1.0, %v8141_v25 }
 0xc6d   :  { %v4701_v59 = vadd.f32 1.0, %v8143_v26 }
 0xc6e   :  { %8148 = vrcp.f32 %v4695_v56 }
 0xc6f   :  { %8150 = vrcp.f32 %v4701_v59 }
 0xc73   :  { %v8145_v30 = vpop.eup %8144 }
 0xc74   :  { %v8147_v32 = vpop.eup %8146  ;;  %v4708_v37 = vadd.f32 1.0, %v8145_v30 }
 0xc76   :  { %8152 = vrcp.f32 %v4708_v37 }
 0xc78   :  { %v8149_v29 = vpop.eup %8148 }
 0xc79   :  { %v8151_v34 = vpop.eup %8150  ;;  %v4715_v35 = vmul.f32 %v8149_v29, %v8147_v32 }
 0xc7a   :  { %v4714_v62 = vmul.f32 %v8151_v34, %v4712_v33 }
 0xc7c   :  { %v9142_v38 = vadd.f32 %v4715_v35, %v4714_v62 }
 0xc7e   :  { %8154 = vtanh.f32 %v9142_v38  ;;  %v5027_v48 = vrot.slane %v9142_v38, 6 }
 0xc80   :  { %v8153_v4 = vpop.eup %8152 }
 0xc88   :  { %v8155_v40 = vpop.eup %8154 }
 0xc89   :  { %v4718_v42 = vmul.f32 %v8155_v40, %v8153_v4 }
 0xc8b   :  { %v4720_v43 = vrot.slane %v4718_v42, 6 }
 0xc8d   :  { %7320 = vmatmul.mubr.msk.f32.vlgmr.msra.gmra.mrb[56].mxu0 %vm84_vm0, %v4720_v43  ;;  %7331 = vmatmul.mubr.msk.f32.vlgmr.msra.gmra.mrb[56].mxu1 %vm84_vm0, %v4720_v43 }
 0xc8e   :  { %7864 = vmatpush3.bf16.msra.mxu0 %v8961_v23  ;;  %7870 = vmatpush3.bf16.msra.mxu1 %v8963_v24 }
 0xc8f   :  { %7865 = vmatprep.subr.bf16.mxu0 %v8342_v31  ;;  %7871 = vmatprep.subr.bf16.mxu1 %v8342_v31 }
 0xc90   :  { %7341 = vmatprep.mubr.msk.f32.mxu0 %vm8343_vm1, %v8344_v41  ;;  %7352 = vmatprep.mubr.msk.f32.mxu1 %vm8343_vm1, %v8344_v41 }
 0xc92   :  { %7867 = vmatpush3.bf16.msra.mxu0 %v8971_v27  ;;  %7873 = vmatpush3.bf16.msra.mxu1 %v8973_v28 }
 0xc93   :  { %7874 = vmatprep.subr.bf16.mxu0 %v8342_v31  ;;  %7880 = vmatprep.subr.bf16.mxu1 %v8342_v31 }
 0xc95   :  { %7342 = vmatmul.mubr.msk.f32.vlgmr.msra.gmra.mrb[58].mxu0 %vm84_vm0, %v4720_v43  ;;  %7353 = vmatmul.mubr.msk.f32.vlgmr.msra.gmra.mrb[58].mxu1 %vm84_vm0, %v4720_v43 }
 0xc96   :  { %7876 = vmatpush3.bf16.msra.mxu0 %v8936_v12  ;;  %7882 = vmatpush3.bf16.msra.mxu1 %v8938_v13 }
 0xc97   :  { %7877 = vmatprep.subr.bf16.mxu0 %v8342_v31  ;;  %7883 = vmatprep.subr.bf16.mxu1 %v8342_v31 }
 0xc98   :  { %7363 = vmatprep.mubr.msk.f32.mxu0 %vm8343_vm1, %v8344_v41  ;;  %7374 = vmatprep.mubr.msk.f32.mxu1 %vm8343_vm1, %v8344_v41 }
 0xc9a   :  { %7879 = vmatpush3.bf16.msra.mxu0 %v8946_v7  ;;  %7885 = vmatpush3.bf16.msra.mxu1 %v8948_v52 }
 0xc9b   :  { %7886 = vmatprep.subr.bf16.mxu0 %v8342_v31  ;;  %7892 = vmatprep.subr.bf16.mxu1 %v8342_v31 }
 0xd60   :  { %v4789_v44 = vpop.f32.mrb[56].mxu0  ;;  %v4860_v53 = vpop.f32.mrb[56].mxu1 }
 0xd61   :  { %v4793_v5 = vadd.f32 %v4789_v44, %v9005_v36  ;;  %v4864_v6 = vadd.f32 %v4860_v53, %v9007_v39  ;;  %v7321_v54 = vpop.f32.mrb[57].mxu0  ;;  %v7332_v55 = vpop.f32.mrb[57].mxu1 }
 0xd63   :  { %v6296_v57 = vmul.f32 -1.442695, %v4793_v5  ;;  %v6297_v58 = vmul.f32 -1.442695, %v4864_v6 }
 0xd65   :  { %8156 = vpow2.f32 %v6296_v57 }
 0xd66   :  { %8158 = vpow2.f32 %v6297_v58 }
 0xd68   :  { %v4931_v60 = vpop.f32.mrb[58].mxu0  ;;  %v5002_v61 = vpop.f32.mrb[58].mxu1 }
 0xd69   :  { %v5006_v3 = vadd.f32 %v5002_v61, %v9017_v50  ;;  %v7343_v0 = vpop.f32.mrb[59].mxu0  ;;  %v7354_v15 = vpop.f32.mrb[59].mxu1  ;;  %v4935_v21 = vadd.f32 %v4931_v60, %v9015_v49 }
 0xd6b   :  { %v6298_v63 = vmul.f32 -1.442695, %v5006_v3 }
 0xd6d   :  { %8160 = vpow2.f32 %v6298_v63 }
 0xd6e   :  { %8162 = vtanh.f32 %v4935_v21 }
 0xd6f   :  { %v8157_v2 = vpop.eup %8156 }
 0xd70   :  { %v8159_v8 = vpop.eup %8158  ;;  %v5010_v1 = vadd.f32 1.0, %v8157_v2 }
 0xd71   :  { %v5016_v9 = vadd.f32 1.0, %v8159_v8 }
 0xd72   :  { %8164 = vrcp.f32 %v5010_v1 }
 0xd73   :  { %8166 = vrcp.f32 %v5016_v9 }
 0xd77   :  { %v8161_v10 = vpop.eup %8160 }
 0xd78   :  { %v8163_v45 = vpop.eup %8162  ;;  %v5023_v16 = vadd.f32 1.0, %v8161_v10 }
 0xd7a   :  { %8168 = vrcp.f32 %v5023_v16 }
 0xd7c   :  { %v8165_v46 = vpop.eup %8164 }
 0xd7d   :  { %v8167_v11 = vpop.eup %8166  ;;  %v5030_v14 = vmul.f32 %v8165_v46, %v8163_v45 }
 0xd7e   :  { %v5029_v51 = vmul.f32 %v8167_v11, %v5027_v48 }
 0xd80   :  { %v9178_v17 = vadd.f32 %v5030_v14, %v5029_v51 }
 0xd82   :  { %8170 = vtanh.f32 %v9178_v17  ;;  %v5353_v58 = vrot.slane %v9178_v17, 6 }
 0xd84   :  { %v8169_v18 = vpop.eup %8168 }
 0xd8c   :  { %v8171_v19 = vpop.eup %8170 }
 0xd8d   :  { %v5033_v20 = vmul.f32 %v8171_v19, %v8169_v18 }
 0xd8f   :  { %7364 = vmatmul.mubr.msk.f32.vlgmr.msra.gmra.mrb[60].mxu0 %vm84_vm0, %v5033_v20  ;;  %7375 = vmatmul.mubr.msk.f32.vlgmr.msra.gmra.mrb[60].mxu1 %vm84_vm0, %v5033_v20 }
 0xd90   :  { %7888 = vmatpush3.bf16.msra.mxu0 %v8961_v23  ;;  %7894 = vmatpush3.bf16.msra.mxu1 %v8963_v24 }
 0xd91   :  { %7889 = vmatprep.subr.bf16.mxu0 %v8342_v31  ;;  %7895 = vmatprep.subr.bf16.mxu1 %v8342_v31 }
 0xd92   :  { %7385 = vmatprep.mubr.msk.f32.mxu0 %vm8343_vm1, %v8344_v41  ;;  %7396 = vmatprep.mubr.msk.f32.mxu1 %vm8343_vm1, %v8344_v41 }
 0xd94   :  { %7891 = vmatpush3.bf16.msra.mxu0 %v8971_v27  ;;  %7897 = vmatpush3.bf16.msra.mxu1 %v8973_v28 }
 0xd95   :  { %7898 = vmatprep.subr.bf16.mxu0 %v8342_v31  ;;  %7904 = vmatprep.subr.bf16.mxu1 %v8342_v31 }
 0xd97   :  { %7386 = vmatmul.mubr.msk.f32.vlgmr.msra.gmra.mrb[62].mxu0 %vm84_vm0, %v5033_v20  ;;  %7397 = vmatmul.mubr.msk.f32.vlgmr.msra.gmra.mrb[62].mxu1 %vm84_vm0, %v5033_v20 }
 0xd98   :  { %7900 = vmatpush3.bf16.msra.mxu0 %v8936_v12  ;;  %7906 = vmatpush3.bf16.msra.mxu1 %v8938_v13 }
 0xd99   :  { %7901 = vmatprep.subr.bf16.mxu0 %v8342_v31  ;;  %7907 = vmatprep.subr.bf16.mxu1 %v8342_v31 }
 0xd9a   :  { %7407 = vmatprep.mubr.msk.f32.mxu0 %vm8343_vm1, %v8344_v41  ;;  %7418 = vmatprep.mubr.msk.f32.mxu1 %vm8343_vm1, %v8344_v41 }
 0xd9c   :  { %7903 = vmatpush3.bf16.msra.mxu0 %v8946_v7  ;;  %7909 = vmatpush3.bf16.msra.mxu1 %v8948_v52 }
 0xd9d   :  { %7910 = vmatprep.subr.bf16.mxu0 %v8342_v31  ;;  %7916 = vmatprep.subr.bf16.mxu1 %v8342_v31 }
 0xe62   :  { %v5103_v22 = vpop.f32.mrb[60].mxu0  ;;  %v5177_v47 = vpop.f32.mrb[60].mxu1 }
 0xe63   :  { %v5108_v25 = vrot.slane %v5103_v22, 6  ;;  %v5182_v26 = vrot.slane %v5177_v47, 6  ;;  %v7365_v56 = vpop.f32.mrb[61].mxu0  ;;  %v7376_v59 = vpop.f32.mrb[61].mxu1 }
 0xe65   :  { %v5110_v30 = vadd.f32 %v5108_v25, %v9005_v36  ;;  %v5184_v32 = vadd.f32 %v5182_v26, %v9007_v39 }
 0xe67   :  { %v6303_v29 = vmul.f32 -1.442695, %v5110_v30  ;;  %v6304_v33 = vmul.f32 -1.442695, %v5184_v32 }
 0xe69   :  { %8172 = vpow2.f32 %v6303_v29 }
 0xe6a   :  { %8174 = vpow2.f32 %v6304_v33  ;;  %v5251_v34 = vpop.f32.mrb[62].mxu0  ;;  %v5325_v35 = vpop.f32.mrb[62].mxu1 }
 0xe6b   :  { %v5330_v37 = vrot.slane %v5325_v35, 6  ;;  %v7387_v62 = vpop.f32.mrb[63].mxu0  ;;  %v7398_v38 = vpop.f32.mrb[63].mxu1  ;;  %v5256_v4 = vrot.slane %v5251_v34, 6 }
 0xe6d   :  { %v5332_v40 = vadd.f32 %v5330_v37, %v9017_v50  ;;  %v5258_v43 = vadd.f32 %v5256_v4, %v9015_v49 }
 0xe6f   :  { %v6305_v42 = vmul.f32 -1.442695, %v5332_v40 }
 0xe71   :  { %8176 = vpow2.f32 %v6305_v42 }
 0xe72   :  { %8178 = vtanh.f32 %v5258_v43  ;;  %v6021_v43 = vld [vmem:[%s9339_s9 + $0x18] sm:$0xff] }
 0xe73   :  { %v8173_v44 = vpop.eup %8172 }
 0xe74   :  { %v8175_v53 = vpop.eup %8174  ;;  %v5336_v5 = vadd.f32 1.0, %v8173_v44 }
 0xe75   :  { %v5342_v6 = vadd.f32 1.0, %v8175_v53 }
 0xe76   :  { %8180 = vrcp.f32 %v5336_v5 }
 0xe77   :  { %8182 = vrcp.f32 %v5342_v6 }
 0xe7b   :  { %v8177_v54 = vpop.eup %8176 }
 0xe7c   :  { %v8179_v55 = vpop.eup %8178  ;;  %v5349_v3 = vadd.f32 1.0, %v8177_v54 }
 0xe7e   :  { %8184 = vrcp.f32 %v5349_v3 }
 0xe80   :  { %v8181_v57 = vpop.eup %8180 }
 0xe81   :  { %v8183_v60 = vpop.eup %8182  ;;  %v5356_v61 = vmul.f32 %v8181_v57, %v8179_v55 }
 0xe82   :  { %v5355_v0 = vmul.f32 %v8183_v60, %v5353_v58 }
 0xe84   :  { %v9214_v15 = vadd.f32 %v5356_v61, %v5355_v0 }
 0xe86   :  { %8186 = vtanh.f32 %v9214_v15  ;;  %v5680_v29 = vrot.slane %v9214_v15, 6 }
 0xe88   :  { %v8185_v63 = vpop.eup %8184 }
 0xe90   :  { %v8187_v21 = vpop.eup %8186 }
 0xe91   :  { %v5359_v2 = vmul.f32 %v8187_v21, %v8185_v63 }
 0xe93   :  { %v5361_v8 = vrot.slane %v5359_v2, 2 }
 0xe95   :  { %7408 = vmatmul.mubr.msk.f32.vlgmr.msra.gmra.mrb[64].mxu0 %vm84_vm0, %v5361_v8  ;;  %7419 = vmatmul.mubr.msk.f32.vlgmr.msra.gmra.mrb[64].mxu1 %vm84_vm0, %v5361_v8 }
 0xe96   :  { %7912 = vmatpush3.bf16.msra.mxu0 %v8961_v23  ;;  %7918 = vmatpush3.bf16.msra.mxu1 %v8963_v24 }
 0xe97   :  { %7913 = vmatprep.subr.bf16.mxu0 %v8342_v31  ;;  %7919 = vmatprep.subr.bf16.mxu1 %v8342_v31 }
 0xe98   :  { %7429 = vmatprep.mubr.msk.f32.mxu0 %vm8343_vm1, %v8344_v41  ;;  %7440 = vmatprep.mubr.msk.f32.mxu1 %vm8343_vm1, %v8344_v41 }
 0xe9a   :  { %7915 = vmatpush3.bf16.msra.mxu0 %v8971_v27  ;;  %7921 = vmatpush3.bf16.msra.mxu1 %v8973_v28 }
 0xe9b   :  { %7922 = vmatprep.subr.bf16.mxu0 %v8342_v31  ;;  %7928 = vmatprep.subr.bf16.mxu1 %v8342_v31 }
 0xe9d   :  { %7430 = vmatmul.mubr.msk.f32.vlgmr.msra.gmra.mrb[66].mxu0 %vm84_vm0, %v5361_v8  ;;  %7441 = vmatmul.mubr.msk.f32.vlgmr.msra.gmra.mrb[66].mxu1 %vm84_vm0, %v5361_v8 }
 0xe9e   :  { %7924 = vmatpush3.bf16.msra.mxu0 %v8936_v12  ;;  %7930 = vmatpush3.bf16.msra.mxu1 %v8938_v13 }
 0xe9f   :  { %7925 = vmatprep.subr.bf16.mxu0 %v8342_v31  ;;  %7931 = vmatprep.subr.bf16.mxu1 %v8342_v31 }
 0xea0   :  { %7451 = vmatprep.mubr.msk.f32.mxu0 %vm8343_vm1, %v8344_v41  ;;  %7462 = vmatprep.mubr.msk.f32.mxu1 %vm8343_vm1, %v8344_v41 }
 0xea2   :  { %7927 = vmatpush3.bf16.msra.mxu0 %v8946_v7  ;;  %7933 = vmatpush3.bf16.msra.mxu1 %v8948_v52 }
 0xea3   :  { %7934 = vmatprep.subr.bf16.mxu0 %v8342_v31  ;;  %7940 = vmatprep.subr.bf16.mxu1 %v8342_v31 }
 0xf68   :  { %v5430_v12 = vpop.f32.mrb[64].mxu0  ;;  %v5504_v13 = vpop.f32.mrb[64].mxu1 }
 0xf69   :  { %v5435_v1 = vrot.slane %v5430_v12, 4  ;;  %v5509_v9 = vrot.slane %v5504_v13, 4  ;;  %v7409_v10 = vpop.f32.mrb[65].mxu0  ;;  %v7420_v45 = vpop.f32.mrb[65].mxu1 }
 0xf6b   :  { %v5437_v46 = vadd.f32 %v5435_v1, %v9005_v36  ;;  %v5511_v48 = vadd.f32 %v5509_v9, %v9007_v39 }
 0xf6d   :  { %v6310_v11 = vmul.f32 -1.442695, %v5437_v46  ;;  %v6311_v14 = vmul.f32 -1.442695, %v5511_v48 }
 0xf6f   :  { %8188 = vpow2.f32 %v6310_v11 }
 0xf70   :  { %8190 = vpow2.f32 %v6311_v14  ;;  %v5578_v7 = vpop.f32.mrb[66].mxu0  ;;  %v5652_v52 = vpop.f32.mrb[66].mxu1 }
 0xf71   :  { %v5657_v16 = vrot.slane %v5652_v52, 4  ;;  %v7431_v51 = vpop.f32.mrb[67].mxu0  ;;  %v7442_v17 = vpop.f32.mrb[67].mxu1  ;;  %v5583_v18 = vrot.slane %v5578_v7, 4 }
 0xf73   :  { %v5659_v19 = vadd.f32 %v5657_v16, %v9017_v50  ;;  %v5585_v22 = vadd.f32 %v5583_v18, %v9015_v49 }
 0xf75   :  { %v6312_v20 = vmul.f32 -1.442695, %v5659_v19 }
 0xf77   :  { %8192 = vpow2.f32 %v6312_v20 }
 0xf78   :  { %8194 = vtanh.f32 %v5585_v22 }
 0xf79   :  { %v8189_v47 = vpop.eup %8188 }
 0xf7a   :  { %v8191_v25 = vpop.eup %8190  ;;  %v5663_v26 = vadd.f32 1.0, %v8189_v47 }
 0xf7b   :  { %v5669_v56 = vadd.f32 1.0, %v8191_v25 }
 0xf7c   :  { %8196 = vrcp.f32 %v5663_v26 }
 0xf7d   :  { %8198 = vrcp.f32 %v5669_v56 }
 0xf81   :  { %v8193_v59 = vpop.eup %8192 }
 0xf82   :  { %v8195_v30 = vpop.eup %8194  ;;  %v5676_v35 = vadd.f32 1.0, %v8193_v59 }
 0xf84   :  { %8200 = vrcp.f32 %v5676_v35 }
 0xf86   :  { %v8197_v32 = vpop.eup %8196 }
 0xf87   :  { %v8199_v33 = vpop.eup %8198  ;;  %v5683_v34 = vmul.f32 %v8197_v32, %v8195_v30 }
 0xf88   :  { %v5682_v37 = vmul.f32 %v8199_v33, %v5680_v29 }
 0xf8a   :  { %v9250_v62 = vadd.f32 %v5683_v34, %v5682_v37 }
 0xf8c   :  { %8202 = vtanh.f32 %v9250_v62  ;;  %v6007_v46 = vrot.slane %v9250_v62, 6 }
 0xf8e   :  { %v8201_v38 = vpop.eup %8200 }
 0xf96   :  { %v8203_v4 = vpop.eup %8202 }
 0xf97   :  { %v5686_v40 = vmul.f32 %v8203_v4, %v8201_v38 }
 0xf99   :  { %v5688_v42 = vrot.slane %v5686_v40, 4 }
 0xf9b   :  { %7452 = vmatmul.mubr.msk.f32.vlgmr.msra.gmra.mrb[68].mxu0 %vm84_vm0, %v5688_v42  ;;  %7463 = vmatmul.mubr.msk.f32.vlgmr.msra.gmra.mrb[68].mxu1 %vm84_vm0, %v5688_v42 }
 0xf9c   :  { %7936 = vmatpush3.bf16.msra.mxu0 %v8961_v23  ;;  %7942 = vmatpush3.bf16.msra.mxu1 %v8963_v24  ;;  %v6018_v23 = vld [vmem:[%s9339_s9] sm:$0xff]  ;;  %v6019_v24 = vld [vmem:[%s9339_s9 + $0x8] sm:$0xff] }
 0xf9d   :  { %7937 = vmatprep.subr.bf16.mxu0 %v8342_v31  ;;  %7943 = vmatprep.subr.bf16.mxu1 %v8342_v31 }
 0xf9e   :  { %7473 = vmatprep.mubr.msk.f32.mxu0 %vm8343_vm1, %v8344_v41  ;;  %7484 = vmatprep.mubr.msk.f32.mxu1 %vm8343_vm1, %v8344_v41 }
 0xfa0   :  { %7939 = vmatpush3.bf16.msra.mxu0 %v8971_v27  ;;  %7945 = vmatpush3.bf16.msra.mxu1 %v8973_v28  ;;  %v6020_v27 = vld [vmem:[%s9339_s9 + $0x10] sm:$0xff]  ;;  %v7947_v28 = vpack.c.bf16 %v6019_v24, %v6018_v23  ;;  %s8345_s9 = smov [#allocation8]  }
 0xfa1   :  { %7946 = vmatprep.subr.bf16.mxu0 %v8342_v31  ;;  %v7950_v44 = vpack.c.bf16 %v6021_v43, %v6020_v27  ;;  %s6120_s28 = sshll.u32 %s8345_s9, 4  ;;  %s6121_s28 = int_to_ptr.vmem [resolvable:$true] %s6120_s28 }
 0xfa2   :  { %s8264_s29 = scalar_lea.vmem %s6121_s28, 64  ;;  %p8269_p3 = scmp.lt.s32.totalorder %s6121_s28, %s6121_s28 }
 0xfa3   :  { %7474 = vmatmul.mubr.msk.f32.vlgmr.msra.gmra.mrb[70].mxu0 %vm84_vm0, %v5688_v42  ;;  %7485 = vmatmul.mubr.msk.f32.vlgmr.msra.gmra.mrb[70].mxu1 %vm84_vm0, %v5688_v42  ;;  %p8265_p2 = scmp.ne.s32.totalorder %s6121_s28, %s8264_s29  ;;  %p8270_p4 = scmp.lt.s32.totalorder %s8264_s29, %s8264_s29 }
 0xfa4   :  { %7495 = vmatprep.mubr.msk.f32.mxu0 %vm8343_vm1, %v8344_v41  ;;  %7948 = vmatpush3.bf16.msra.mxu0 %v7947_v28 }
 0xfa5   :  { %7949 = vmatprep.subr.bf16.mxu0 %v8342_v31  ;;  %p8271_p5 = por %p8270_p4, %p8269_p3 }
 0xfa7   :  { %p8272_p6 = pnand %p8271_p5, %p8265_p2 }
 0xfa8   :  { %7951 = vmatpush3.bf16.msra.mxu0 %v7950_v44 }
0x106e   :  { %v5757_v41 = vpop.f32.mrb[68].mxu0  ;;  %v5831_v53 = vpop.f32.mrb[68].mxu1 }
0x106f   :  { %v5762_v5 = vrot.slane %v5757_v41, 2  ;;  %v5836_v6 = vrot.slane %v5831_v53, 2  ;;  %v7453_v54 = vpop.f32.mrb[69].mxu0  ;;  %v7464_v55 = vpop.f32.mrb[69].mxu1 }
0x1071   :  { %v5764_v57 = vadd.f32 %v5762_v5, %v9005_v36  ;;  %v5838_v58 = vadd.f32 %v5836_v6, %v9007_v39 }
0x1073   :  { %v6317_v60 = vmul.f32 -1.442695, %v5764_v57  ;;  %v6318_v61 = vmul.f32 -1.442695, %v5838_v58 }
0x1075   :  { %8204 = vpow2.f32 %v6317_v60 }
0x1076   :  { %8206 = vpow2.f32 %v6318_v61  ;;  %v5905_v3 = vpop.f32.mrb[70].mxu0  ;;  %v5979_v0 = vpop.f32.mrb[70].mxu1 }
0x1077   :  { %v5984_v15 = vrot.slane %v5979_v0, 2  ;;  %v7475_v63 = vpop.f32.mrb[71].mxu0  ;;  %v7486_v31 = vpop.f32.mrb[71].mxu1  ;;  %v5910_v21 = vrot.slane %v5905_v3, 2 }
0x1079   :  { %v5986_v2 = vadd.f32 %v5984_v15, %v9017_v50  ;;  %v5912_v12 = vadd.f32 %v5910_v21, %v9015_v49 }
0x107b   :  { %v6319_v8 = vmul.f32 -1.442695, %v5986_v2 }
0x107d   :  { %8208 = vpow2.f32 %v6319_v8 }
0x107e   :  { %8210 = vtanh.f32 %v5912_v12 }
0x107f   :  { %v8205_v13 = vpop.eup %8204 }
0x1080   :  { %v8207_v1 = vpop.eup %8206  ;;  %v5990_v36 = vadd.f32 1.0, %v8205_v13 }
0x1081   :  { %v5996_v39 = vadd.f32 1.0, %v8207_v1 }
0x1082   :  { %8212 = vrcp.f32 %v5990_v36 }
0x1083   :  { %8214 = vrcp.f32 %v5996_v39 }
0x1087   :  { %v8209_v9 = vpop.eup %8208 }
0x1088   :  { %v8211_v10 = vpop.eup %8210  ;;  %v6003_v14 = vadd.f32 1.0, %v8209_v9 }
0x108a   :  { %8216 = vrcp.f32 %v6003_v14 }
0x108c   :  { %v8213_v45 = vpop.eup %8212 }
0x108d   :  { %v8215_v48 = vpop.eup %8214  ;;  %v6010_v11 = vmul.f32 %v8213_v45, %v8211_v10 }
0x108e   :  { %v6009_v50 = vmul.f32 %v8215_v48, %v6007_v46 }
0x1090   :  { %v6011_v7 = vadd.f32 %v6010_v11, %v6009_v50 }
0x1092   :  { %8218 = vtanh.f32 %v6011_v7  ;;  %6017 = vst.msk [vmem:[#allocation10 - $0x4] sm:$0xc0] %vm3037_vm5, %v6011_v7 }
0x1094   :  { %v8217_v49 = vpop.eup %8216 }
0x109c   :  { %v8219_v52 = vpop.eup %8218 }
0x109d   :  { %v6013_v16 = vmul.f32 %v8219_v52, %v8217_v49 }
0x109f   :  { %v6030_v51 = vrot.slane %v6013_v16, 6  ;;  %6015 = vst.msk [vmem:[#allocation8 - $0x4] sm:$0xc0] %vm3037_vm5, %v6013_v16 }
0x10a1   :  { %7496 = vmatmul.mubr.msk.f32.vlgmr.msra.gmra.mrb[72].mxu0 %vm84_vm0, %v6030_v51 }
0x10a2   :  { %8275 = shalt.err (!%p8272_p6)
}
0x10a3   :  { %s8276_s3 = scalar_lea.hbm %s9342_s12, 64 }
0x10a4   :  { %p8277_p7 = scmp.ne.s32.totalorder %s9342_s12, %s8276_s3  ;;  %p8280_p8 = scmp.lt.u32.totalorder %s8276_s3, %s9342_s12 }
0x10a6   :  { %p8282_p9 = pnand %p8280_p8, %p8277_p7 }
0x10a8   :  { %8285 = shalt.err (!%p8282_p9)
}
0x10a9   :  { %s8346_s1 = smov 32   ;;  %s8347_s16 = smov 2  }
0x10aa   :  { %6126 = dma.vmem_to_hbm [thread:$0]  %s6121_s28, 64, %s9342_s12, [#allocation9], %s8346_s1, %s8346_s1, %s8347_s16  }
0x10ab   :  { %s8348_s20 = smov [#allocation10]  }
0x10ac   :  { %s6132_s21 = sshll.u32 %s8348_s20, 4  ;;  %s6133_s21 = int_to_ptr.vmem [resolvable:$true] %s6132_s21 }
0x10ad   :  { %s8286_s22 = scalar_lea.vmem %s6133_s21, 64  ;;  %p8291_p11 = scmp.lt.s32.totalorder %s6133_s21, %s6133_s21 }
0x10ae   :  { %p8287_p10 = scmp.ne.s32.totalorder %s6133_s21, %s8286_s22  ;;  %p8292_p12 = scmp.lt.s32.totalorder %s8286_s22, %s8286_s22 }
0x10b0   :  { %p8293_p13 = por %p8292_p12, %p8291_p11 }
0x10b2   :  { %p8294_p0 = pnand %p8293_p13, %p8287_p10 }
0x10b4   :  { %8297 = shalt.err (!%p8294_p0)
}
0x10b5   :  { %s8298_s8 = scalar_lea.hbm %s9343_s13, 64 }
0x10b6   :  { %p8299_p1 = scmp.ne.s32.totalorder %s9343_s13, %s8298_s8  ;;  %p8302_p2 = scmp.lt.u32.totalorder %s8298_s8, %s9343_s13 }
0x10b8   :  { %p8304_p3 = pnand %p8302_p2, %p8299_p1 }
0x10ba   :  { %8307 = shalt.err (!%p8304_p3)
}
0x10bb   :  { %6138 = dma.vmem_to_hbm [thread:$0]  %s6133_s21, 64, %s9343_s13, [#allocation9], %s8346_s1, %s8346_s1, %s8347_s16   ;;  %vm6103_vm6 = vcmask 402432  }
0x10bc   :  { %v6320_v17 = vld [vmem:[%s9340_s10] ss:$0 sm:$0xff]  ;;  %s8349_s9 = smov [#allocation7]  }
0x10bd   :  { %s6111_s28 = sshll.u32 %s8349_s9, 4  ;;  %s6112_s28 = int_to_ptr.vmem [resolvable:$true] %s6111_s28 }
0x10be   :  { %s8308_s29 = scalar_lea.vmem %s6112_s28, 32  ;;  %p8313_p5 = scmp.lt.s32.totalorder %s6112_s28, %s6112_s28 }
0x10bf   :  { %p8309_p4 = scmp.ne.s32.totalorder %s6112_s28, %s8308_s29  ;;  %p8314_p6 = scmp.lt.s32.totalorder %s8308_s29, %s8308_s29 }
0x10c1   :  { %p8315_p7 = por %p8314_p6, %p8313_p5 }
0x10c3   :  { %p8316_p8 = pnand %p8315_p7, %p8309_p4 }
0x1174   :  { %v6099_v18 = vpop.f32.mrb[72].mxu0 }
0x1175   :  { %v6100_v19 = vadd.f32 %v6320_v17, %v6099_v18  ;;  %v7497_v20 = vpop.f32.mrb[73].mxu0 }
0x1177   :  { %6104 = vst.msk [vmem:[#allocation7] sm:$0x3] %vm6103_vm6, %v6100_v19 }
0x1178   :  { %8319 = shalt.err (!%p8316_p8)
}
0x1179   :  { %s8320_s14 = scalar_lea.hbm %s9341_s11, 32 }
0x117a   :  { %p8321_p9 = scmp.ne.s32.totalorder %s9341_s11, %s8320_s14  ;;  %p8324_p10 = scmp.lt.u32.totalorder %s8320_s14, %s9341_s11 }
0x117c   :  { %p8326_p11 = pnand %p8324_p10, %p8321_p9 }
0x117e   :  { %8329 = shalt.err (!%p8326_p11)
}
0x117f   :  { %6114 = dma.vmem_to_hbm [thread:$0]  %s6112_s28, 32, %s9341_s11, [#allocation4]  }
0x1180   :  { %8334 = dma.done.wait [#allocation4], 32  }
0x1181   :  { %8335 = vsyncadd [#allocation4], 4294967264 }
0x1182   :  { %8336 = dma.done.wait [#allocation9], 128  }
0x1183   :  { %8337 = vsyncadd [#allocation9], 4294967168 }
0x1184   :  { %6148 = vsyncpa [#allocation3], 1 }
0x1185   :  { %6149 = vsyncpa [#allocation6], 1 }
0x1186   :  { %6150 = vsyncpa [#allocation4], 1 }
0x1187   :  { %6151 = vsyncpa [#allocation9], 1 }

</bundles_post_ra>
